<compile_context>
chip_gen: v7x
topology: tpu7x:2x2x1
jax: 0.10.0
libtpu: 0.0.40
codegen_flags: <defaults>
</compile_context>

<pallas_src>
import jax
import jax.numpy as jnp
from jax.experimental import pallas as pl
from jax.experimental.pallas import tpu as pltpu


def _basic_block2_kernel(x_ref, w1_ref, s1_ref, b1_ref, w2_ref, s2_ref, b2_ref,
                         o_ref, pad_ref):
    # x_ref:  (1, H, W*C)  f32, lane-dense (one batch image per grid step)
    # w*_ref: (3, W*C, W*C) bf16, per-kh block-banded conv weights (kw taps + W-pad folded in)
    # s*/b*:  (1, W*C)     f32, folded BatchNorm scale / bias (tiled over W)
    # pad_ref:(1, H+2, W*C) f32 scratch, H-halo padded conv input (reused for conv1 and conv2)
    Nb, H, WC = x_ref.shape
    Hp = H + 2
    R = Nb * H

    # H-halo rows zeroed once; W-boundary zero padding is inside the banded weights.
    pad_ref[:, 0:1, :] = jnp.zeros((Nb, 1, WC), pad_ref.dtype)
    pad_ref[:, Hp - 1:Hp, :] = jnp.zeros((Nb, 1, WC), pad_ref.dtype)
    pad_ref[:, 1:Hp - 1, :] = x_ref[...]

    def conv3x3(w_ref):
        # 3 MXU matmuls (one per kh); slabs are pure sublane-offset, lane-dense slices.
        acc = jnp.zeros((R, WC), jnp.float32)
        for kh in range(3):
            slab = pad_ref[:, kh:kh + H, :].reshape(R, WC).astype(jnp.bfloat16)
            acc = acc + jnp.dot(slab, w_ref[kh],
                                preferred_element_type=jnp.float32)
        return acc

    # conv1 -> bn1 (folded FMA) -> relu, all f32 epilogue on the VPU.
    h1 = jnp.maximum(conv3x3(w1_ref) * s1_ref[...] + b1_ref[...], 0.0)

    # Reuse the same padded scratch for conv2's input (halo rows are still zero).
    pad_ref[:, 1:Hp - 1, :] = h1.reshape(Nb, H, WC)

    # conv2 -> bn2 (folded FMA)
    h2 = conv3x3(w2_ref) * s2_ref[...] + b2_ref[...]

    # Identity shortcut straight from the unpadded lane-dense input + final relu.
    out = jnp.maximum(h2 + x_ref[...].reshape(R, WC), 0.0)
    o_ref[...] = out.reshape(Nb, H, WC).astype(o_ref.dtype)


def basic_block2(x, conv1_w, bn1, conv2_w, bn2, *, stride=1, eps=1e-5):
    """Fused BasicBlock2 forward.  x: NCHW, conv weights: OIHW (PyTorch layout)."""
    N, Cin, H, W = x.shape
    Cout = conv1_w.shape[0]
    assert stride == 1 and Cin == Cout, (
        "only the identity-shortcut BasicBlock2 (stride=1, in_planes==planes) is implemented")
    assert conv1_w.shape == (Cout, Cin, 3, 3) and conv2_w.shape == (Cout, Cout, 3, 3)

    WCi = W * Cin
    WCo = W * Cout   # == WCi here; 512 = 4*128 lanes for the test shapes -> fully lane-dense

    # ---- fold BatchNorm (inference) into per-channel scale/bias, tiled over W ----
    def fold_bn(bn):
        gamma, beta, mean, var = bn
        scale = gamma * jax.lax.rsqrt(var + eps)
        bias = beta - mean * scale
        return (jnp.tile(scale, W).reshape(1, WCo).astype(jnp.float32),
                jnp.tile(bias, W).reshape(1, WCo).astype(jnp.float32))

    s1, b1 = fold_bn(bn1)
    s2, b2 = fold_bn(bn2)

    # ---- build per-kh block-banded weights: (3, W*Cin, W*Cout), bf16 for the MXU ----
    # B[kh, w_in*Cin + cin, j*Cout + cout] = w[cout, cin, kh, w_in - j + 1] if |w_in-j|<=1 else 0
    # (the zero rows outside the band implement the W-boundary zero padding).
    def band_weights(w):
        Co, Ci = w.shape[0], w.shape[1]
        wi = jnp.arange(W)[:, None]
        j = jnp.arange(W)[None, :]
        kw = wi - j + 1
        valid = (kw >= 0) & (kw <= 2)
        kw_c = jnp.clip(kw, 0, 2)
        w_t = jnp.transpose(w, (2, 3, 1, 0)).astype(jnp.float32)     # (kh, kw, Ci, Co)
        sel = w_t[:, kw_c]                                           # (3, W, W, Ci, Co)
        sel = jnp.where(valid[None, :, :, None, None], sel, 0.0)
        band = jnp.transpose(sel, (0, 1, 3, 2, 4)).reshape(3, W * Ci, W * Co)
        return band.astype(jnp.bfloat16)

    w1b = band_weights(conv1_w)
    w2b = band_weights(conv2_w)

    # NCHW -> lane-dense (N, H, W*C) f32 (channels on the lane axis).
    x_flat = jnp.transpose(x, (0, 2, 3, 1)).reshape(N, H, WCi).astype(jnp.float32)

    out_flat = pl.pallas_call(
        _basic_block2_kernel,
        out_shape=jax.ShapeDtypeStruct((N, H, WCo), jnp.float32),
        grid_spec=pltpu.PrefetchScalarGridSpec(
            num_scalar_prefetch=0,
            grid=(N,),
            in_specs=[
                pl.BlockSpec((1, H, WCi), lambda n: (n, 0, 0)),      # x (per-image)
                pl.BlockSpec((3, WCi, WCo), lambda n: (0, 0, 0)),    # w1 (resident)
                pl.BlockSpec((1, WCo), lambda n: (0, 0)),            # s1 (resident)
                pl.BlockSpec((1, WCo), lambda n: (0, 0)),            # b1
                pl.BlockSpec((3, WCo, WCo), lambda n: (0, 0, 0)),    # w2 (resident)
                pl.BlockSpec((1, WCo), lambda n: (0, 0)),            # s2
                pl.BlockSpec((1, WCo), lambda n: (0, 0)),            # b2
            ],
            out_specs=pl.BlockSpec((1, H, WCo), lambda n: (n, 0, 0)),
            scratch_shapes=[pltpu.VMEM((1, H + 2, WCo), jnp.float32)],
        ),
        # "parallel" over the batch: v7x's two TensorCores split the grid steps.
        compiler_params=pltpu.CompilerParams(dimension_semantics=("parallel",)),
    )(x_flat, w1b, s1, b1, w2b, s2, b2)

    out = jnp.transpose(out_flat.reshape(N, H, W, Cout), (0, 3, 1, 2))
    return out.astype(x.dtype)


def basic_block2_ref(x, conv1_w, bn1, conv2_w, bn2, *, eps=1e-5, conv_dtype=jnp.float32):
    """Pure-JAX reference mirroring the PyTorch forward (BN in inference mode).

    conv_dtype controls the convolution operand precision (accumulation stays f32):
    with jnp.bfloat16 it mirrors the kernel's MXU operand precision exactly.
    """
    def bn_apply(y, bn):
        gamma, beta, mean, var = bn
        inv = gamma * jax.lax.rsqrt(var + eps)
        return (y - mean[None, :, None, None]) * inv[None, :, None, None] \
            + beta[None, :, None, None]

    def conv(y, w):
        return jax.lax.conv_general_dilated(
            y.astype(conv_dtype), w.astype(conv_dtype),
            window_strides=(1, 1), padding=((1, 1), (1, 1)),
            dimension_numbers=("NCHW", "OIHW", "NCHW"),
            preferred_element_type=jnp.float32)

    out = jax.nn.relu(bn_apply(conv(x, conv1_w), bn1))
    out = bn_apply(conv(out, conv2_w), bn2)
    out = out + x                      # identity shortcut (f32)
    return jax.nn.relu(out)


if __name__ == "__main__":
    # Identity-shortcut block: in_planes == planes == 32, stride = 1, kernel_size = 3.
    # W*C = 512 = 4*128 -> fully lane-dense activations.
    N, C, H, W = 2, 32, 16, 16

    key = jax.random.PRNGKey(0)
    ks = jax.random.split(key, 11)

    x = jax.random.normal(ks[0], (N, C, H, W), jnp.float32)
    conv1_w = 0.1 * jax.random.normal(ks[1], (C, C, 3, 3), jnp.float32)
    conv2_w = 0.1 * jax.random.normal(ks[2], (C, C, 3, 3), jnp.float32)
    bn1 = (jax.random.uniform(ks[3], (C,), jnp.float32, 0.5, 1.5),      # gamma
           jax.random.uniform(ks[4], (C,), jnp.float32, -0.1, 0.1),     # beta
           0.1 * jax.random.normal(ks[5], (C,), jnp.float32),           # running_mean
           jax.random.uniform(ks[6], (C,), jnp.float32, 0.5, 1.5))      # running_var
    bn2 = (jax.random.uniform(ks[7], (C,), jnp.float32, 0.5, 1.5),
           jax.random.uniform(ks[8], (C,), jnp.float32, -0.1, 0.1),
           0.1 * jax.random.normal(ks[9], (C,), jnp.float32),
           jax.random.uniform(ks[10], (C,), jnp.float32, 0.5, 1.5))

    out = basic_block2(x, conv1_w, bn1, conv2_w, bn2)
    jax.block_until_ready(out)

    # Primary check: reference with the SAME conv-operand precision as the kernel
    # (bf16 operands, f32 accumulation) -> remaining differences are reduction order
    # plus rare one-ulp bf16 boundary flips on the intermediate activation.
    ref_matched = basic_block2_ref(x, conv1_w, bn1, conv2_w, bn2, conv_dtype=jnp.bfloat16)
    ok_matched = bool(jnp.allclose(out, ref_matched, atol=5e-2, rtol=2e-2))

    # Sanity check against the exact f32 forward: the deviation here is purely the bf16
    # MXU-operand rounding the performance review recommended (two chained convs with BN
    # scale up to ~2.1 -> expected max-abs deviation ~0.05-0.2), hence the loose bound.
    ref_f32 = basic_block2_ref(x, conv1_w, bn1, conv2_w, bn2)
    ok_f32 = bool(jnp.allclose(out, ref_f32, atol=3e-1, rtol=1e-1))

    if ok_matched and ok_f32:
        print("KERNEL_OK")
    else:
        print("MISMATCH: max|out-ref_bf16| =",
              float(jnp.max(jnp.abs(out - ref_matched))),
              " max|out-ref_f32| =",
              float(jnp.max(jnp.abs(out - ref_f32))))
</pallas_src>

<mosaic_0001>
module attributes {stable_mosaic.version = 11 : i64} {
  func.func @_basic_block2_kernel(%arg0: i32, %arg1: memref<1x16x512xf32, #tpu.memory_space<vmem>>, %arg2: memref<3x512x512xbf16, #tpu.memory_space<vmem>>, %arg3: memref<1x512xf32, #tpu.memory_space<vmem>>, %arg4: memref<1x512xf32, #tpu.memory_space<vmem>>, %arg5: memref<3x512x512xbf16, #tpu.memory_space<vmem>>, %arg6: memref<1x512xf32, #tpu.memory_space<vmem>>, %arg7: memref<1x512xf32, #tpu.memory_space<vmem>>, %arg8: memref<1x16x512xf32, #tpu.memory_space<vmem>>, %arg9: memref<1x18x512xf32, #tpu.memory_space<vmem>>) attributes {dimension_semantics = [#tpu.dimension_semantics<parallel>], iteration_bounds = array<i64: 2>, scalar_prefetch = 0 : i64, scratch_operands = 1 : i64, tpu.core_type = #tpu.core_type<tc>, window_params = [{transform_indices = @transform_0, window_bounds = array<i64: 1, 16, 512>}, {pipeline_mode = #tpu.pipeline_mode<synchronous>, transform_indices = @transform_1, window_bounds = array<i64: 3, 512, 512>}, {pipeline_mode = #tpu.pipeline_mode<synchronous>, transform_indices = @transform_2, window_bounds = array<i64: 1, 512>}, {pipeline_mode = #tpu.pipeline_mode<synchronous>, transform_indices = @transform_3, window_bounds = array<i64: 1, 512>}, {pipeline_mode = #tpu.pipeline_mode<synchronous>, transform_indices = @transform_4, window_bounds = array<i64: 3, 512, 512>}, {pipeline_mode = #tpu.pipeline_mode<synchronous>, transform_indices = @transform_5, window_bounds = array<i64: 1, 512>}, {pipeline_mode = #tpu.pipeline_mode<synchronous>, transform_indices = @transform_6, window_bounds = array<i64: 1, 512>}, {transform_indices = @transform_7, window_bounds = array<i64: 1, 16, 512>}]} {
    %cst = arith.constant 0.000000e+00 : f32
    %0 = vector.broadcast %cst : f32 to vector<1x1x512xf32>
    %c0 = arith.constant 0 : index
    %c0_0 = arith.constant 0 : index
    %c0_1 = arith.constant 0 : index
    %1 = vector.load %arg9[%c0, %c0_0, %c0_1] : memref<1x18x512xf32, #tpu.memory_space<vmem>>, vector<1x1x512xf32>
    tpu.vector_store %arg9[%c0, %c0_0, %c0_1], %0 {strides = array<i32>} : memref<1x18x512xf32, #tpu.memory_space<vmem>>, vector<1x1x512xf32>,
    %cst_2 = arith.constant 0.000000e+00 : f32
    %2 = vector.broadcast %cst_2 : f32 to vector<1x1x512xf32>
    %c0_3 = arith.constant 0 : index
    %c17 = arith.constant 17 : index
    %c0_4 = arith.constant 0 : index
    %3 = vector.load %arg9[%c0_3, %c17, %c0_4] : memref<1x18x512xf32, #tpu.memory_space<vmem>>, vector<1x1x512xf32>
    tpu.vector_store %arg9[%c0_3, %c17, %c0_4], %2 {strides = array<i32>} : memref<1x18x512xf32, #tpu.memory_space<vmem>>, vector<1x1x512xf32>,
    %c0_5 = arith.constant 0 : index
    %c0_6 = arith.constant 0 : index
    %c0_7 = arith.constant 0 : index
    %4 = vector.load %arg1[%c0_5, %c0_6, %c0_7] : memref<1x16x512xf32, #tpu.memory_space<vmem>>, vector<1x16x512xf32>
    %c0_8 = arith.constant 0 : index
    %c1 = arith.constant 1 : index
    %c0_9 = arith.constant 0 : index
    %5 = vector.load %arg9[%c0_8, %c1, %c0_9] : memref<1x18x512xf32, #tpu.memory_space<vmem>>, vector<1x16x512xf32>
    tpu.vector_store %arg9[%c0_8, %c1, %c0_9], %4 {strides = array<i32>} : memref<1x18x512xf32, #tpu.memory_space<vmem>>, vector<1x16x512xf32>,
    %cst_10 = arith.constant 0.000000e+00 : f32
    %6 = vector.broadcast %cst_10 : f32 to vector<16x512xf32>
    %c0_11 = arith.constant 0 : index
    %c0_12 = arith.constant 0 : index
    %c0_13 = arith.constant 0 : index
    %7 = vector.load %arg9[%c0_11, %c0_12, %c0_13] : memref<1x18x512xf32, #tpu.memory_space<vmem>>, vector<1x16x512xf32>
    %8 = vector.shape_cast %7 : vector<1x16x512xf32> to vector<16x512xf32>
    %9 = arith.truncf %8 : vector<16x512xf32> to vector<16x512xbf16>
    %c0_14 = arith.constant 0 : index
    %c0_15 = arith.constant 0 : index
    %c0_16 = arith.constant 0 : index
    %10 = vector.load %arg2[%c0_14, %c0_15, %c0_16] : memref<3x512x512xbf16, #tpu.memory_space<vmem>>, vector<1x512x512xbf16>
    %11 = vector.shape_cast %10 : vector<1x512x512xbf16> to vector<512x512xbf16>
    %cst_17 = arith.constant dense<0.000000e+00> : vector<16x512xf32>
    %12 = tpu.matmul %9, %11, %cst_17 {dimension_numbers = #tpu.dot_dimension_numbers<[1], [0], [0], [1], [0, 0, 1, 1], [], []>} : vector<16x512xbf16>, vector<512x512xbf16>, vector<16x512xf32> -> vector<16x512xf32>
    %13 = arith.addf %6, %12 : vector<16x512xf32>
    %c0_18 = arith.constant 0 : index
    %c1_19 = arith.constant 1 : index
    %c0_20 = arith.constant 0 : index
    %14 = vector.load %arg9[%c0_18, %c1_19, %c0_20] : memref<1x18x512xf32, #tpu.memory_space<vmem>>, vector<1x16x512xf32>
    %15 = vector.shape_cast %14 : vector<1x16x512xf32> to vector<16x512xf32>
    %16 = arith.truncf %15 : vector<16x512xf32> to vector<16x512xbf16>
    %c1_21 = arith.constant 1 : index
    %c0_22 = arith.constant 0 : index
    %c0_23 = arith.constant 0 : index
    %17 = vector.load %arg2[%c1_21, %c0_22, %c0_23] : memref<3x512x512xbf16, #tpu.memory_space<vmem>>, vector<1x512x512xbf16>
    %18 = vector.shape_cast %17 : vector<1x512x512xbf16> to vector<512x512xbf16>
    %cst_24 = arith.constant dense<0.000000e+00> : vector<16x512xf32>
    %19 = tpu.matmul %16, %18, %cst_24 {dimension_numbers = #tpu.dot_dimension_numbers<[1], [0], [0], [1], [0, 0, 1, 1], [], []>} : vector<16x512xbf16>, vector<512x512xbf16>, vector<16x512xf32> -> vector<16x512xf32>
    %20 = arith.addf %13, %19 : vector<16x512xf32>
    %c0_25 = arith.constant 0 : index
    %c2 = arith.constant 2 : index
    %c0_26 = arith.constant 0 : index
    %21 = vector.load %arg9[%c0_25, %c2, %c0_26] : memref<1x18x512xf32, #tpu.memory_space<vmem>>, vector<1x16x512xf32>
    %22 = vector.shape_cast %21 : vector<1x16x512xf32> to vector<16x512xf32>
    %23 = arith.truncf %22 : vector<16x512xf32> to vector<16x512xbf16>
    %c2_27 = arith.constant 2 : index
    %c0_28 = arith.constant 0 : index
    %c0_29 = arith.constant 0 : index
    %24 = vector.load %arg2[%c2_27, %c0_28, %c0_29] : memref<3x512x512xbf16, #tpu.memory_space<vmem>>, vector<1x512x512xbf16>
    %25 = vector.shape_cast %24 : vector<1x512x512xbf16> to vector<512x512xbf16>
    %cst_30 = arith.constant dense<0.000000e+00> : vector<16x512xf32>
    %26 = tpu.matmul %23, %25, %cst_30 {dimension_numbers = #tpu.dot_dimension_numbers<[1], [0], [0], [1], [0, 0, 1, 1], [], []>} : vector<16x512xbf16>, vector<512x512xbf16>, vector<16x512xf32> -> vector<16x512xf32>
    %27 = arith.addf %20, %26 : vector<16x512xf32>
    %c0_31 = arith.constant 0 : index
    %c0_32 = arith.constant 0 : index
    %28 = vector.load %arg3[%c0_31, %c0_32] : memref<1x512xf32, #tpu.memory_space<vmem>>, vector<1x512xf32>
    %29 = vector.broadcast %28 : vector<1x512xf32> to vector<16x512xf32>
    %30 = arith.mulf %27, %29 : vector<16x512xf32>
    %c0_33 = arith.constant 0 : index
    %c0_34 = arith.constant 0 : index
    %31 = vector.load %arg4[%c0_33, %c0_34] : memref<1x512xf32, #tpu.memory_space<vmem>>, vector<1x512xf32>
    %32 = vector.broadcast %31 : vector<1x512xf32> to vector<16x512xf32>
    %33 = arith.addf %30, %32 : vector<16x512xf32>
    %cst_35 = arith.constant 0.000000e+00 : f32
    %34 = vector.broadcast %cst_35 : f32 to vector<16x512xf32>
    %35 = arith.maximumf %33, %34 : vector<16x512xf32>
    %36 = vector.shape_cast %35 : vector<16x512xf32> to vector<1x16x512xf32>
    %c0_36 = arith.constant 0 : index
    %c1_37 = arith.constant 1 : index
    %c0_38 = arith.constant 0 : index
    %37 = vector.load %arg9[%c0_36, %c1_37, %c0_38] : memref<1x18x512xf32, #tpu.memory_space<vmem>>, vector<1x16x512xf32>
    tpu.vector_store %arg9[%c0_36, %c1_37, %c0_38], %36 {strides = array<i32>} : memref<1x18x512xf32, #tpu.memory_space<vmem>>, vector<1x16x512xf32>,
    %cst_39 = arith.constant 0.000000e+00 : f32
    %38 = vector.broadcast %cst_39 : f32 to vector<16x512xf32>
    %c0_40 = arith.constant 0 : index
    %c0_41 = arith.constant 0 : index
    %c0_42 = arith.constant 0 : index
    %39 = vector.load %arg9[%c0_40, %c0_41, %c0_42] : memref<1x18x512xf32, #tpu.memory_space<vmem>>, vector<1x16x512xf32>
    %40 = vector.shape_cast %39 : vector<1x16x512xf32> to vector<16x512xf32>
    %41 = arith.truncf %40 : vector<16x512xf32> to vector<16x512xbf16>
    %c0_43 = arith.constant 0 : index
    %c0_44 = arith.constant 0 : index
    %c0_45 = arith.constant 0 : index
    %42 = vector.load %arg5[%c0_43, %c0_44, %c0_45] : memref<3x512x512xbf16, #tpu.memory_space<vmem>>, vector<1x512x512xbf16>
    %43 = vector.shape_cast %42 : vector<1x512x512xbf16> to vector<512x512xbf16>
    %cst_46 = arith.constant dense<0.000000e+00> : vector<16x512xf32>
    %44 = tpu.matmul %41, %43, %cst_46 {dimension_numbers = #tpu.dot_dimension_numbers<[1], [0], [0], [1], [0, 0, 1, 1], [], []>} : vector<16x512xbf16>, vector<512x512xbf16>, vector<16x512xf32> -> vector<16x512xf32>
    %45 = arith.addf %38, %44 : vector<16x512xf32>
    %c0_47 = arith.constant 0 : index
    %c1_48 = arith.constant 1 : index
    %c0_49 = arith.constant 0 : index
    %46 = vector.load %arg9[%c0_47, %c1_48, %c0_49] : memref<1x18x512xf32, #tpu.memory_space<vmem>>, vector<1x16x512xf32>
    %47 = vector.shape_cast %46 : vector<1x16x512xf32> to vector<16x512xf32>
    %48 = arith.truncf %47 : vector<16x512xf32> to vector<16x512xbf16>
    %c1_50 = arith.constant 1 : index
    %c0_51 = arith.constant 0 : index
    %c0_52 = arith.constant 0 : index
    %49 = vector.load %arg5[%c1_50, %c0_51, %c0_52] : memref<3x512x512xbf16, #tpu.memory_space<vmem>>, vector<1x512x512xbf16>
    %50 = vector.shape_cast %49 : vector<1x512x512xbf16> to vector<512x512xbf16>
    %cst_53 = arith.constant dense<0.000000e+00> : vector<16x512xf32>
    %51 = tpu.matmul %48, %50, %cst_53 {dimension_numbers = #tpu.dot_dimension_numbers<[1], [0], [0], [1], [0, 0, 1, 1], [], []>} : vector<16x512xbf16>, vector<512x512xbf16>, vector<16x512xf32> -> vector<16x512xf32>
    %52 = arith.addf %45, %51 : vector<16x512xf32>
    %c0_54 = arith.constant 0 : index
    %c2_55 = arith.constant 2 : index
    %c0_56 = arith.constant 0 : index
    %53 = vector.load %arg9[%c0_54, %c2_55, %c0_56] : memref<1x18x512xf32, #tpu.memory_space<vmem>>, vector<1x16x512xf32>
    %54 = vector.shape_cast %53 : vector<1x16x512xf32> to vector<16x512xf32>
    %55 = arith.truncf %54 : vector<16x512xf32> to vector<16x512xbf16>
    %c2_57 = arith.constant 2 : index
    %c0_58 = arith.constant 0 : index
    %c0_59 = arith.constant 0 : index
    %56 = vector.load %arg5[%c2_57, %c0_58, %c0_59] : memref<3x512x512xbf16, #tpu.memory_space<vmem>>, vector<1x512x512xbf16>
    %57 = vector.shape_cast %56 : vector<1x512x512xbf16> to vector<512x512xbf16>
    %cst_60 = arith.constant dense<0.000000e+00> : vector<16x512xf32>
    %58 = tpu.matmul %55, %57, %cst_60 {dimension_numbers = #tpu.dot_dimension_numbers<[1], [0], [0], [1], [0, 0, 1, 1], [], []>} : vector<16x512xbf16>, vector<512x512xbf16>, vector<16x512xf32> -> vector<16x512xf32>
    %59 = arith.addf %52, %58 : vector<16x512xf32>
    %c0_61 = arith.constant 0 : index
    %c0_62 = arith.constant 0 : index
    %60 = vector.load %arg6[%c0_61, %c0_62] : memref<1x512xf32, #tpu.memory_space<vmem>>, vector<1x512xf32>
    %61 = vector.broadcast %60 : vector<1x512xf32> to vector<16x512xf32>
    %62 = arith.mulf %59, %61 : vector<16x512xf32>
    %c0_63 = arith.constant 0 : index
    %c0_64 = arith.constant 0 : index
    %63 = vector.load %arg7[%c0_63, %c0_64] : memref<1x512xf32, #tpu.memory_space<vmem>>, vector<1x512xf32>
    %64 = vector.broadcast %63 : vector<1x512xf32> to vector<16x512xf32>
    %65 = arith.addf %62, %64 : vector<16x512xf32>
    %c0_65 = arith.constant 0 : index
    %c0_66 = arith.constant 0 : index
    %c0_67 = arith.constant 0 : index
    %66 = vector.load %arg1[%c0_65, %c0_66, %c0_67] : memref<1x16x512xf32, #tpu.memory_space<vmem>>, vector<1x16x512xf32>
    %67 = vector.shape_cast %66 : vector<1x16x512xf32> to vector<16x512xf32>
    %68 = arith.addf %65, %67 : vector<16x512xf32>
    %cst_68 = arith.constant 0.000000e+00 : f32
    %69 = vector.broadcast %cst_68 : f32 to vector<16x512xf32>
    %70 = arith.maximumf %68, %69 : vector<16x512xf32>
    %71 = vector.shape_cast %70 : vector<16x512xf32> to vector<1x16x512xf32>
    %c0_69 = arith.constant 0 : index
    %c0_70 = arith.constant 0 : index
    %c0_71 = arith.constant 0 : index
    %72 = vector.load %arg8[%c0_69, %c0_70, %c0_71] : memref<1x16x512xf32, #tpu.memory_space<vmem>>, vector<1x16x512xf32>
    tpu.vector_store %arg8[%c0_69, %c0_70, %c0_71], %71 {strides = array<i32>} : memref<1x16x512xf32, #tpu.memory_space<vmem>>, vector<1x16x512xf32>,
    return
  }
  func.func @transform_0(%arg0: i32) -> (i32, i32, i32) {
    %c0_i32 = arith.constant 0 : i32
    %c0_i32_0 = arith.constant 0 : i32
    %c0_i32_1 = arith.constant 0 : i32
    return %arg0, %c0_i32, %c0_i32_0 : i32, i32, i32
  }
  func.func @transform_1(%arg0: i32) -> (i32, i32, i32) {
    %c0_i32 = arith.constant 0 : i32
    %c0_i32_0 = arith.constant 0 : i32
    %c0_i32_1 = arith.constant 0 : i32
    %c0_i32_2 = arith.constant 0 : i32
    return %c0_i32, %c0_i32_0, %c0_i32_1 : i32, i32, i32
  }
  func.func @transform_2(%arg0: i32) -> (i32, i32) {
    %c0_i32 = arith.constant 0 : i32
    %c0_i32_0 = arith.constant 0 : i32
    %c0_i32_1 = arith.constant 0 : i32
    return %c0_i32, %c0_i32_0 : i32, i32
  }
  func.func @transform_3(%arg0: i32) -> (i32, i32) {
    %c0_i32 = arith.constant 0 : i32
    %c0_i32_0 = arith.constant 0 : i32
    %c0_i32_1 = arith.constant 0 : i32
    return %c0_i32, %c0_i32_0 : i32, i32
  }
  func.func @transform_4(%arg0: i32) -> (i32, i32, i32) {
    %c0_i32 = arith.constant 0 : i32
    %c0_i32_0 = arith.constant 0 : i32
    %c0_i32_1 = arith.constant 0 : i32
    %c0_i32_2 = arith.constant 0 : i32
    return %c0_i32, %c0_i32_0, %c0_i32_1 : i32, i32, i32
  }
  func.func @transform_5(%arg0: i32) -> (i32, i32) {
    %c0_i32 = arith.constant 0 : i32
    %c0_i32_0 = arith.constant 0 : i32
    %c0_i32_1 = arith.constant 0 : i32
    return %c0_i32, %c0_i32_0 : i32, i32
  }
  func.func @transform_6(%arg0: i32) -> (i32, i32) {
    %c0_i32 = arith.constant 0 : i32
    %c0_i32_0 = arith.constant 0 : i32
    %c0_i32_1 = arith.constant 0 : i32
    return %c0_i32, %c0_i32_0 : i32, i32
  }
  func.func @transform_7(%arg0: i32) -> (i32, i32, i32) {
    %c0_i32 = arith.constant 0 : i32
    %c0_i32_0 = arith.constant 0 : i32
    %c0_i32_1 = arith.constant 0 : i32
    return %arg0, %c0_i32, %c0_i32_0 : i32, i32, i32
  }
}

</mosaic_0001>

<bundles_post_ra>
// kernel: tpu_custom_call.1
= control target key start
LH: loop header
LB: loop body
LE: loop exit
PB: predicated region body
PF: predicated region fallthrough
CT: control target
= control target key end

     0   :  { %12 = vsyncpa [#allocation4], 0  ;;  %s9609_s0 = inlined_call_operand.hbm [shape: f32[2,16,512], index: 0, kind: input, shape index: {}]   ;;  %s9610_s1 = inlined_call_operand.hbm [shape: bf16[3,512,512], index: 1, kind: input, shape index: {}]   ;;  %s9611_s2 = inlined_call_operand.hbm [shape: f32[1,512], index: 2, kind: input, shape index: {}]   ;;  %s9612_s3 = inlined_call_operand.hbm [shape: f32[1,512], index: 3, kind: input, shape index: {}]   ;;  %s9613_s4 = inlined_call_operand.hbm [shape: bf16[3,512,512], index: 4, kind: input, shape index: {}]   ;;  %s9614_s5 = inlined_call_operand.hbm [shape: f32[1,512], index: 5, kind: input, shape index: {}]   ;;  %s9615_s6 = inlined_call_operand.hbm [shape: f32[1,512], index: 6, kind: input, shape index: {}]   ;;  %s9616_s7 = inlined_call_operand.hbm [shape: f32[2,16,512], index: 7, kind: output, shape index: {}]  }
   0x1   :  { %14 = vsyncpa [#allocation4 + $0x1], 0 }
   0x2   :  { %15 = vsyncpa [#allocation7], 0 }
   0x3   :  { %16 = vsyncpa [#allocation10], 0 }
   0x4   :  { %17 = vsyncpa [#allocation13], 0 }
   0x5   :  { %18 = vsyncpa [#allocation5], 0 }
   0x6   :  { %20 = vsyncpa [#allocation5 + $0x1], 0  ;;  %s9166_s24 = smov 0   ;;  %s9168_s25 = smov 0  }
   0x7   :  { %s9170_s26 = smov 0   ;;  %s9172_s27 = smov 0  }
   0x8 LB: > { %s9111_s28 = smov [#allocation6]   ;;  %s9187_s30 = sadd.s32 4294967295, %s9109_s27   ;;  %s9109_s27 = sphi %s9172_s27, %s9642_s27   ;;  %s9105_s26 = sphi %s9170_s26, %s9641_s26   ;;  %s9101_s25 = sphi %s9168_s25, %s9640_s25   ;;  %s9097_s24 = sphi %s9166_s24, %s9639_s24  }
   0x9   : > { %s221_s29 = sshll.u32 %s9111_s28, 4  ;;  %p6689_p0 = scmp.ge.s32.totalorder %s9109_s27, 1  ;;  %s9192_s29 = int_to_ptr.vmem [resolvable:$true] %s221_s29 }
   0xa   : > { %p9617_p1 = scmp.eq.s32.totalorder %s9187_s30, 0  ;;  %p209_p2 = scmp.lt.s32.totalorder %s9109_s27, 3 }
   0xb   : > { %s9112_s9 = smov [#allocation9]   ;;  %s9113_s12 = smov [#allocation12]  }
   0xc   : > { %p9194_p3 = pnand %p6689_p0, %p209_p2  ;;  %s246_s10 = sshll.u32 %s9112_s9, 4  ;;  %s9207_s10 = int_to_ptr.vmem [resolvable:$true] %s246_s10 }
   0xd   : > { %s270_s13 = sshll.u32 %s9113_s12, 4  ;;  %s8833_s16 = scalar_lea.hbm %s9610_s1, 49152  ;;  %s9209_s13 = int_to_ptr.vmem [resolvable:$true] %s270_s13 }
   0xe   : > { %s9620_s8 = scalar_select %p9194_p3, 1, 0 }
   0xf   : > { %p7592_p5 = pneg %p9194_p3  ;;  %p8834_p7 = scmp.ne.s32.totalorder %s9610_s1, %s8833_s16 }
  0x10   : > { %p8840_p11 = scmp.lt.u32.totalorder %s8833_s16, %s9610_s1 }
  0x11   : > { %p9203_p6 = pnand %p7592_p5, %p9617_p1 }
  0x13   : > { %p9219_p8 = pneg %p9203_p6 }
  0x15   : > { %p8836_p9 = pnand %p9219_p8, %p8834_p7 }
  0x17   : > { %p8837_p10 = pneg %p8836_p9 }
  0x19   : > { %p8842_p12 = pnand %p8840_p11, %p8837_p10 }
  0x1b   : > { %8845 = shalt.err (!%p8842_p12)
}
  0x1c   : > { %s8846_s22 = scalar_lea.vmem %s9192_s29, 49152  ;;  %p8854_p5 = scmp.lt.s32.totalorder %s9192_s29, %s9192_s29 }
  0x1d   : > { %p8847_p13 = scmp.ne.s32.totalorder %s9192_s29, %s8846_s22  ;;  %p8855_p4 = scmp.lt.s32.totalorder %s8846_s22, %s8846_s22 }
  0x1f   : > { %p8849_p0 = pnand %p8847_p13, %p9219_p8  ;;  %p8856_p7 = por %p8855_p4, %p8854_p5 }
  0x21   : > { %p8850_p2 = pneg %p8849_p0 }
  0x23   : > { %p8857_p9 = pnand %p8856_p7, %p8850_p2 }
  0x25   : > { %8860 = shalt.err (!%p8857_p9)
}
  0x26   : > { %s9114_s23 = smov 256   ;;  %s9115_s28 = smov 16  }
  0x27   : > { %7595 = dma.hbm_to_vmem [thread:$0]  (!%p9203_p6), %s9610_s1, 49152, %s9192_s29, [#allocation7], %s9114_s23, %s9114_s23, %s9115_s28  }
  0x28   : > { %s8861_s16 = scalar_lea.hbm %s9612_s3, 64 }
  0x29   : > { %p8862_p4 = scmp.ne.s32.totalorder %s9612_s3, %s8861_s16  ;;  %p8868_p12 = scmp.lt.u32.totalorder %s8861_s16, %s9612_s3 }
  0x2b   : > { %p8864_p10 = pnand %p8862_p4, %p9219_p8 }
  0x2d   : > { %p8865_p11 = pneg %p8864_p10 }
  0x2f   : > { %p8870_p13 = pnand %p8868_p12, %p8865_p11 }
  0x31   : > { %8873 = shalt.err (!%p8870_p13)
}
  0x32   : > { %s8874_s29 = scalar_lea.vmem %s9207_s10, 64  ;;  %p8882_p7 = scmp.lt.s32.totalorder %s9207_s10, %s9207_s10 }
  0x33   : > { %p8875_p0 = scmp.ne.s32.totalorder %s9207_s10, %s8874_s29  ;;  %p8883_p9 = scmp.lt.s32.totalorder %s8874_s29, %s8874_s29 }
  0x35   : > { %p8877_p2 = pnand %p8875_p0, %p9219_p8  ;;  %p8884_p4 = por %p8883_p9, %p8882_p7 }
  0x37   : > { %p8878_p5 = pneg %p8877_p2 }
  0x39   : > { %p8885_p10 = pnand %p8884_p4, %p8878_p5 }
  0x3b   : > { %8888 = shalt.err (!%p8885_p10)
}
  0x3c   : > { %7601 = dma.hbm_to_vmem [thread:$0]  (!%p9203_p6), %s9612_s3, 64, %s9207_s10, [#allocation10]  }
  0x3d   : > { %s8889_s15 = scalar_lea.hbm %s9614_s5, 64 }
  0x3e   : > { %p8890_p11 = scmp.ne.s32.totalorder %s9614_s5, %s8889_s15  ;;  %p8896_p0 = scmp.lt.u32.totalorder %s8889_s15, %s9614_s5 }
  0x40   : > { %p8892_p12 = pnand %p8890_p11, %p9219_p8 }
  0x42   : > { %p8893_p13 = pneg %p8892_p12 }
  0x44   : > { %p8898_p2 = pnand %p8896_p0, %p8893_p13 }
  0x46   : > { %8901 = shalt.err (!%p8898_p2)
}
  0x47   : > { %s8902_s10 = scalar_lea.vmem %s9209_s13, 64  ;;  %p8910_p4 = scmp.lt.s32.totalorder %s9209_s13, %s9209_s13 }
  0x48   : > { %p8903_p5 = scmp.ne.s32.totalorder %s9209_s13, %s8902_s10  ;;  %p8911_p10 = scmp.lt.s32.totalorder %s8902_s10, %s8902_s10 }
  0x4a   : > { %p8905_p7 = pnand %p8903_p5, %p9219_p8  ;;  %p8912_p11 = por %p8911_p10, %p8910_p4 }
  0x4c   : > { %p8906_p9 = pneg %p8905_p7 }
  0x4e   : > { %p8913_p12 = pnand %p8912_p11, %p8906_p9 }
  0x50   : > { %8916 = shalt.err (!%p8913_p12)
}
  0x51   : > { %7607 = dma.hbm_to_vmem [thread:$0]  (!%p9203_p6), %s9614_s5, 64, %s9209_s13, [#allocation13]  }
  0x52   : > { %s9116_s22 = smov [#allocation8]   ;;  %s9117_s12 = smov [#allocation11]  }
  0x53   : > { %s235_s9 = sshll.u32 %s9116_s22, 4  ;;  %s256_s14 = sshll.u32 %s9117_s12, 4  ;;  %s236_s9 = int_to_ptr.vmem [resolvable:$true] %s235_s9  ;;  %s257_s14 = int_to_ptr.vmem [resolvable:$true] %s256_s14 }
  0x54   : > { %s8917_s17 = scalar_lea.hbm %s9611_s2, 64 }
  0x55   : > { %p8918_p13 = scmp.ne.s32.totalorder %s9611_s2, %s8917_s17  ;;  %p8924_p5 = scmp.lt.u32.totalorder %s8917_s17, %s9611_s2 }
  0x57   : > { %p8920_p0 = pnand %p8918_p13, %p9219_p8 }
  0x59   : > { %p8921_p2 = pneg %p8920_p0 }
  0x5b   : > { %p8926_p7 = pnand %p8924_p5, %p8921_p2 }
  0x5d   : > { %8929 = shalt.err (!%p8926_p7)
}
  0x5e   : > { %s8930_s13 = scalar_lea.vmem %s236_s9, 64  ;;  %p8938_p11 = scmp.lt.s32.totalorder %s236_s9, %s236_s9 }
  0x5f   : > { %p8931_p9 = scmp.ne.s32.totalorder %s236_s9, %s8930_s13  ;;  %p8939_p12 = scmp.lt.s32.totalorder %s8930_s13, %s8930_s13 }
  0x61   : > { %p8933_p4 = pnand %p8931_p9, %p9219_p8  ;;  %p8940_p1 = por %p8939_p12, %p8938_p11 }
  0x63   : > { %p8934_p10 = pneg %p8933_p4 }
  0x65   : > { %p8941_p3 = pnand %p8940_p1, %p8934_p10 }
  0x67   : > { %8944 = shalt.err (!%p8941_p3)
}
  0x68   : > { %7598 = dma.hbm_to_vmem [thread:$0]  (!%p9203_p6), %s9611_s2, 64, %s236_s9, [#allocation7]  }
  0x69   : > { %s8945_s16 = scalar_lea.hbm %s9613_s4, 49152 }
  0x6a   : > { %p8946_p13 = scmp.ne.s32.totalorder %s9613_s4, %s8945_s16  ;;  %p8952_p3 = scmp.lt.u32.totalorder %s8945_s16, %s9613_s4 }
  0x6c   : > { %p8948_p0 = pnand %p8946_p13, %p9219_p8 }
  0x6e   : > { %p8949_p1 = pneg %p8948_p0 }
  0x70   : > { %p8954_p2 = pnand %p8952_p3, %p8949_p1 }
  0x72   : > { %8957 = shalt.err (!%p8954_p2)
}
  0x73   : > { %s8958_s21 = scalar_lea.vmem %s257_s14, 49152  ;;  %p8966_p4 = scmp.lt.s32.totalorder %s257_s14, %s257_s14 }
  0x74   : > { %p8959_p5 = scmp.ne.s32.totalorder %s257_s14, %s8958_s21  ;;  %p8967_p10 = scmp.lt.s32.totalorder %s8958_s21, %s8958_s21 }
  0x76   : > { %p8961_p7 = pnand %p8959_p5, %p9219_p8  ;;  %p8968_p11 = por %p8967_p10, %p8966_p4 }
  0x78   : > { %p8962_p9 = pneg %p8961_p7 }
  0x7a   : > { %p8969_p12 = pnand %p8968_p11, %p8962_p9 }
  0x7c   : > { %8972 = shalt.err (!%p8969_p12)
}
  0x7d   : > { %7604 = dma.hbm_to_vmem [thread:$0]  (!%p9203_p6), %s9613_s4, 49152, %s257_s14, [#allocation10], %s9114_s23, %s9114_s23, %s9115_s28  }
  0x7e   : > { %s9118_s29 = smov [#allocation14]   ;;  %s8973_s16 = scalar_lea.hbm %s9615_s6, 64 }
  0x7f   : > { %s281_s22 = sshll.u32 %s9118_s29, 4  ;;  %p8974_p13 = scmp.ne.s32.totalorder %s9615_s6, %s8973_s16  ;;  %s282_s22 = int_to_ptr.vmem [resolvable:$true] %s281_s22 }
  0x80   : > { %p8980_p3 = scmp.lt.u32.totalorder %s8973_s16, %s9615_s6 }
  0x81   : > { %p8976_p0 = pnand %p8974_p13, %p9219_p8 }
  0x83   : > { %p8977_p1 = pneg %p8976_p0 }
  0x85   : > { %p8982_p2 = pnand %p8980_p3, %p8977_p1 }
  0x87   : > { %8985 = shalt.err (!%p8982_p2)
}
  0x88   : > { %s8986_s23 = scalar_lea.vmem %s282_s22, 64  ;;  %p8994_p4 = scmp.lt.s32.totalorder %s282_s22, %s282_s22 }
  0x89   : > { %p8987_p5 = scmp.ne.s32.totalorder %s282_s22, %s8986_s23  ;;  %p8995_p10 = scmp.lt.s32.totalorder %s8986_s23, %s8986_s23 }
  0x8b   : > { %p8989_p7 = pnand %p8987_p5, %p9219_p8  ;;  %p8996_p11 = por %p8995_p10, %p8994_p4 }
  0x8d   : > { %p8990_p9 = pneg %p8989_p7 }
  0x8f   : > { %p8997_p12 = pnand %p8996_p11, %p8990_p9 }
  0x91   : > { %9000 = shalt.err (!%p8997_p12)
}
  0x92   : > { %7610 = dma.hbm_to_vmem [thread:$0]  (!%p9203_p6), %s9615_s6, 64, %s282_s22, [#allocation13]  }
  0x93   : > { %s6688_s19 = sadd.s32 4294967294, %s9109_s27   ;;  %s9348_s11 = sadd.s32 1, %s9109_s27  }
  0x94   : > { %s30_s21 = ssub.s32 %s9109_s27, %s9348_s11  ;;  %s33_s9 = sadd.s32 1, %s9105_s26 }
  0x95   : > { %p31_p8 = scmp.eq.s32.totalorder %s30_s21, 0  ;;  %p40_p13 = scmp.ne.s32.totalorder %s9105_s26, %s9101_s25 }
  0x96   : > { %p41_p0 = scmp.eq.s32.totalorder %s9109_s27, 0  ;;  %p46_p1 = scmp.ne.s32.totalorder %s9101_s25, %s9097_s24 }
  0x97   : > { %s9359_s13 = scalar_select %p31_p8, %s9105_s26, %s33_s9  }
  0x98   : > { %p9361_p3 = por %p41_p0, %p40_p13  ;;  %p9624_p2 = scmp.eq.s32.totalorder %s9187_s30, 0 }
  0x99   : > { %p196_p5 = scmp.eq.s32.totalorder %s9187_s30, 1  ;;  %p202_p7 = scmp.eq.s32.totalorder %s6688_s19, 1 }
  0x9a   : > { %p9367_p6 = por %p9624_p2, %p46_p1  ;;  %p7625_p9 = scmp.lt.s32.totalorder %s9109_s27, 2 }
  0x9b   : > { %s292_s12 = sand.u32 1, %s9105_s26   ;;  %p9374_p4 = por %p196_p5, %p40_p13 }
  0x9c   : > { %p9378_p10 = por %p202_p7, %p46_p1  ;;  %s6697_s17 = sshll.u32 %s292_s12, 6 }
  0x9d   : > { %s9626_s15 = scalar_select %p9374_p4, 1, 0 }
  0x9e   : > { %s9627_s16 = scalar_select %p9378_p10, 1, 0 }
  0x9f   : > { %s7482_s18 = sshll.u32 %s9109_s27, 10  ;;  %s296_s28 = scalar_lea.vmem [#allocation3], %s6697_s17 }
  0xa0   : > { %s9386_s23 = scalar_lea.hbm %s9609_s0, %s7482_s18  ;;  %s303_s14 = sshll.u32 %s296_s28, 4  ;;  %s9388_s14 = int_to_ptr.vmem [resolvable:$true] %s303_s14 }
  0xa1   : > { %p9392_p11 = pnand %p7625_p9, %p9361_p3  ;;  %s9396_s21 = scalar_lea.sflag [#allocation4], %s292_s12 }
  0xa2   : > { %s9001_s9 = scalar_lea.hbm %s9386_s23, 1024  ;;  %s9006_s29 = scalar_lea.hbm %s9609_s0, 2048 }
  0xa3   : > { %p9002_p12 = scmp.ne.s32.totalorder %s9386_s23, %s9001_s9  ;;  %p9003_p8 = pneg %p9392_p11 }
  0xa4   : > { %p9007_p1 = scmp.lt.u32.totalorder %s9386_s23, %s9609_s0  ;;  %p9008_p3 = scmp.lt.u32.totalorder %s9006_s29, %s9001_s9 }
  0xa5   : > { %p9004_p13 = pnand %p9003_p8, %p9002_p12  ;;  %p9010_p5 = scmp.lt.u32.totalorder %s9001_s9, %s9386_s23 }
  0xa6   : > { %p9009_p2 = por %p9008_p3, %p9007_p1 }
  0xa7   : > { %p9005_p0 = pneg %p9004_p13 }
  0xa8   : > { %p9011_p7 = por %p9010_p5, %p9009_p2 }
  0xaa   : > { %p9012_p9 = pnand %p9011_p7, %p9005_p0 }
  0xac   : > { %9015 = shalt.err (!%p9012_p9)
}
  0xad   : > { %s9016_s12 = scalar_lea.vmem %s9388_s14, 1024  ;;  %s9119_s28 = smov [#allocation3]  }
  0xae   : > { %p9017_p12 = scmp.ne.s32.totalorder %s9388_s14, %s9016_s12  ;;  %s9021_s17 = sshll.u32 %s9119_s28, 4  ;;  %s9022_s17 = int_to_ptr.vmem [resolvable:$false] %s9021_s17 }
  0xaf   : > { %s9023_s18 = scalar_lea.vmem %s9022_s17, 2048  ;;  %p9024_p4 = scmp.lt.s32.totalorder %s9388_s14, %s9022_s17 }
  0xb0   : > { %p9019_p13 = pnand %p9017_p12, %p9003_p8  ;;  %p9025_p1 = scmp.lt.s32.totalorder %s9023_s18, %s9016_s12 }
  0xb2   : > { %p9020_p10 = pneg %p9019_p13  ;;  %p9026_p3 = por %p9025_p1, %p9024_p4 }
  0xb4   : > { %p9027_p2 = pnand %p9026_p3, %p9020_p10 }
  0xb6   : > { %9030 = shalt.err (!%p9027_p2)
}
  0xb7   : > { %s9120_s9 = smov 512   ;;  %s9121_s29 = smov 32  }
  0xb8   : > { %7614 = dma.hbm_to_vmem [thread:$0]  (!%p9392_p11), %s9386_s23, 1024, %s9388_s14, %s9396_s21, %s9120_s9, %s9120_s9, %s9121_s29  }
  0xb9   : > { %p9629_p8 = scmp.ne.s32.totalorder %s9620_s8, 0 }
  0xba   : > { %s9427_s20 = sand.u32 (!%p9629_p8), 1, %s9101_s25  }
  0xbb   : > { %315 = sbr.rel (%p9629_p8) target bundleno = 1389 (0x56d), region = 48  ;;  %s6701_s10 = sshll.u32 (!%p9629_p8), %s9427_s20, 6 }
  0xbc   : > { %s318_s12 = scalar_lea.sflag (!%p9629_p8), [#allocation4], %s9427_s20  ;;  %s9433_s28 = scalar_lea.vmem (!%p9629_p8), [#allocation3], %s6701_s10 }
  0xc2   : > { %9076 = dma.done.wait (%p9367_p6), %s318_s12, 1024  }
  0xc3   : > { %9078 = vsyncadd (%p9367_p6), %s318_s12, 4294966272  ;;  %p9630_p4 = scmp.eq.s32.totalorder %s9187_s30, 0 }
  0xc5   : > { %9080 = dma.done.wait (%p9630_p4), [#allocation7], 49216   ;;  %p9631_p10 = pmov %p9630_p4 }
  0xc6   : > { %p9632_p11 = pmov %p9630_p4 }
  0xc7   : > { %9082 = vsyncadd (%p9631_p10), [#allocation7], 4294918080 }
  0xc8   : > { %9084 = dma.done.wait (%p9632_p11), [#allocation10], 49216   ;;  %p9633_p0 = pmov %p9630_p4 }
  0xca   : > { %9086 = vsyncadd (%p9633_p0), [#allocation10], 4294918080  ;;  %p9634_p5 = pmov %p9633_p0 }
  0xcb   : > { %p9635_p7 = pmov %p9633_p0 }
  0xcc   : > { %9088 = dma.done.wait (%p9634_p5), [#allocation13], 128  }
  0xcd   : > { %9090 = vsyncadd (%p9635_p7), [#allocation13], 4294967168  ;;  %v7678_v0 = vld [vmem:[#allocation6 + $0x404] ss:$16 sps:$4 sm:$0xff]   ;;  %v7680_v1 = vld [vmem:[#allocation6 + $0x40c] ss:$16 sps:$4 sm:$0xff]  }
  0xce   : > { %1416 = vmatprep.subr.bf16.mxu0 %v7678_v0  ;;  %v7682_v2 = vld [vmem:[#allocation6 + $0x400] ss:$16 sps:$4 sm:$0xff]   ;;  %v7683_v3 = vld [vmem:[#allocation6 + $0x408] ss:$16 sps:$4 sm:$0xff]   ;;  %1502 = vmatprep.subr.bf16.mxu1 %v7680_v1  ;;  %v7684_v4 = vld [vmem:[#allocation6 + $0x424] ss:$16 sps:$4 sm:$0xff]  }
  0xcf   : > { %1417 = vmatpush1.bf16.msra.mxu0 %v7682_v2  ;;  %1503 = vmatpush1.bf16.msra.mxu1 %v7683_v3  ;;  %v7686_v5 = vld [vmem:[#allocation6 + $0x42c] ss:$16 sps:$4 sm:$0xff]   ;;  %v7688_v6 = vld [vmem:[#allocation6 + $0x420] ss:$16 sps:$4 sm:$0xff]   ;;  %v7689_v7 = vld [vmem:[#allocation6 + $0x428] ss:$16 sps:$4 sm:$0xff]  }
  0xd0   : > { %1418 = vmatprep.subr.bf16.mxu0 %v7684_v4  ;;  %1504 = vmatprep.subr.bf16.mxu1 %v7686_v5  ;;  %v7690_v8 = vld [vmem:[#allocation6 + $0x444] ss:$16 sps:$4 sm:$0xff]   ;;  %v7692_v9 = vld [vmem:[#allocation6 + $0x44c] ss:$16 sps:$4 sm:$0xff]   ;;  %v7694_v10 = vld [vmem:[#allocation6 + $0x440] ss:$16 sps:$4 sm:$0xff]  }
  0xd1   : > { %v7695_v11 = vld [vmem:[#allocation6 + $0x448] ss:$16 sps:$4 sm:$0xff]   ;;  %v7696_v12 = vld [vmem:[#allocation6 + $0x464] ss:$16 sps:$4 sm:$0xff]   ;;  %v7698_v13 = vld [vmem:[#allocation6 + $0x46c] ss:$16 sps:$4 sm:$0xff]  }
  0xd2   : > { %v7700_v14 = vld [vmem:[#allocation6 + $0x460] ss:$16 sps:$4 sm:$0xff]   ;;  %v7701_v15 = vld [vmem:[#allocation6 + $0x468] ss:$16 sps:$4 sm:$0xff]   ;;  %v7702_v16 = vld [vmem:[#allocation6 + $0x484] ss:$16 sps:$4 sm:$0xff]  }
  0xd3   : > { %1419 = vmatpush1.bf16.msra.mxu0 %v7688_v6  ;;  %1505 = vmatpush1.bf16.msra.mxu1 %v7689_v7  ;;  %v7704_v17 = vld [vmem:[#allocation6 + $0x48c] ss:$16 sps:$4 sm:$0xff]   ;;  %v7706_v18 = vld [vmem:[#allocation6 + $0x480] ss:$16 sps:$4 sm:$0xff]   ;;  %v7707_v19 = vld [vmem:[#allocation6 + $0x488] ss:$16 sps:$4 sm:$0xff]  }
  0xd4   : > { %1420 = vmatprep.subr.bf16.mxu0 %v7690_v8  ;;  %1506 = vmatprep.subr.bf16.mxu1 %v7692_v9  ;;  %v7708_v20 = vld [vmem:[#allocation6 + $0x4a4] ss:$16 sps:$4 sm:$0xff]   ;;  %v7710_v21 = vld [vmem:[#allocation6 + $0x4ac] ss:$16 sps:$4 sm:$0xff]   ;;  %v7712_v22 = vld [vmem:[#allocation6 + $0x4a0] ss:$16 sps:$4 sm:$0xff]  }
  0xd5   : > { %v7713_v23 = vld [vmem:[#allocation6 + $0x4a8] ss:$16 sps:$4 sm:$0xff]   ;;  %v7714_v24 = vld [vmem:[#allocation6 + $0x4c4] ss:$16 sps:$4 sm:$0xff]   ;;  %v7716_v25 = vld [vmem:[#allocation6 + $0x4cc] ss:$16 sps:$4 sm:$0xff]  }
  0xd6   : > { %v7718_v26 = vld [vmem:[#allocation6 + $0x4c0] ss:$16 sps:$4 sm:$0xff]   ;;  %v7719_v27 = vld [vmem:[#allocation6 + $0x4c8] ss:$16 sps:$4 sm:$0xff]   ;;  %v7720_v28 = vld [vmem:[#allocation6 + $0x4e4] ss:$16 sps:$4 sm:$0xff]  }
  0xd7   : > { %1421 = vmatpush1.bf16.msra.mxu0 %v7694_v10  ;;  %1507 = vmatpush1.bf16.msra.mxu1 %v7695_v11  ;;  %v7722_v29 = vld [vmem:[#allocation6 + $0x4ec] ss:$16 sps:$4 sm:$0xff]   ;;  %v7724_v30 = vld [vmem:[#allocation6 + $0x4e0] ss:$16 sps:$4 sm:$0xff]   ;;  %v7725_v31 = vld [vmem:[#allocation6 + $0x4e8] ss:$16 sps:$4 sm:$0xff]  }
  0xd8   : > { %1422 = vmatprep.subr.bf16.mxu0 %v7696_v12  ;;  %1508 = vmatprep.subr.bf16.mxu1 %v7698_v13  ;;  %v7726_v32 = vld [vmem:[#allocation6 + $0x504] ss:$16 sps:$4 sm:$0xff]   ;;  %v7728_v33 = vld [vmem:[#allocation6 + $0x50c] ss:$16 sps:$4 sm:$0xff]   ;;  %v7730_v34 = vld [vmem:[#allocation6 + $0x500] ss:$16 sps:$4 sm:$0xff]  }
  0xd9   : > { %v7731_v35 = vld [vmem:[#allocation6 + $0x508] ss:$16 sps:$4 sm:$0xff]   ;;  %v7732_v36 = vld [vmem:[#allocation6 + $0x524] ss:$16 sps:$4 sm:$0xff]   ;;  %v7734_v37 = vld [vmem:[#allocation6 + $0x52c] ss:$16 sps:$4 sm:$0xff]  }
  0xda   : > { %v7736_v38 = vld [vmem:[#allocation6 + $0x520] ss:$16 sps:$4 sm:$0xff]   ;;  %v7737_v39 = vld [vmem:[#allocation6 + $0x528] ss:$16 sps:$4 sm:$0xff]   ;;  %v7738_v40 = vld [vmem:[#allocation6 + $0x544] ss:$16 sps:$4 sm:$0xff]  }
  0xdb   : > { %1423 = vmatpush1.bf16.msra.mxu0 %v7700_v14  ;;  %1509 = vmatpush1.bf16.msra.mxu1 %v7701_v15  ;;  %v7740_v41 = vld [vmem:[#allocation6 + $0x54c] ss:$16 sps:$4 sm:$0xff]   ;;  %v7742_v42 = vld [vmem:[#allocation6 + $0x540] ss:$16 sps:$4 sm:$0xff]   ;;  %v7743_v43 = vld [vmem:[#allocation6 + $0x548] ss:$16 sps:$4 sm:$0xff]   ;;  %v376_v15 = vlaneseq }
  0xdc   : > { %1424 = vmatprep.subr.bf16.mxu0 %v7702_v16  ;;  %1510 = vmatprep.subr.bf16.mxu1 %v7704_v17  ;;  %v7744_v44 = vld [vmem:[#allocation6 + $0x564] ss:$16 sps:$4 sm:$0xff]   ;;  %v7746_v45 = vld [vmem:[#allocation6 + $0x56c] ss:$16 sps:$4 sm:$0xff]   ;;  %v7748_v49 = vld [vmem:[#allocation6 + $0x560] ss:$16 sps:$4 sm:$0xff]  }
  0xdd   : > { %v386_v46 = vld [vmem:[%s9433_s28 + $0x8] sm:$0xff]  ;;  %v7750_v52 = vld [vmem:[#allocation6 + $0x584] ss:$16 sps:$4 sm:$0xff]   ;;  %vm401_vm0 = vcmask 1040384   ;;  %v7754_v56 = vld [vmem:[#allocation6 + $0x580] ss:$16 sps:$4 sm:$0xff]  }
  0xde   : > { %v390_v47 = vld [vmem:[%s9433_s28 + $0x28] sm:$0xff]  ;;  %v403_v48 = vrot.slane %v386_v46, 7  ;;  %v385_v54 = vld [vmem:[%s9433_s28] sm:$0xff]  ;;  %vm723_vm1 = vsmask.f32 7424  ;;  %vm378_vm2 = vcmp.lt.s32.totalorder %v376_v15, 512 }
  0xdf   : > { %1425 = vmatpush1.bf16.msra.mxu0 %v7706_v18  ;;  %1511 = vmatpush1.bf16.msra.mxu1 %v7707_v19  ;;  %v7749_v50 = vld [vmem:[#allocation6 + $0x568] ss:$16 sps:$4 sm:$0xff]   ;;  %v408_v51 = vrot.slane %v390_v47, 7  ;;  %v7752_v53 = vld [vmem:[#allocation6 + $0x58c] ss:$16 sps:$4 sm:$0xff]   ;;  %v389_v55 = vld [vmem:[%s9433_s28 + $0x20] sm:$0xff] }
  0xe0   : > { %1426 = vmatprep.subr.bf16.mxu0 %v7708_v20  ;;  %1512 = vmatprep.subr.bf16.mxu1 %v7710_v21  ;;  %427 = vst [vmem:[#allocation2 + $0x8] sm:$0xfe] %v403_v48  ;;  %v402_v57 = vrot.slane %v385_v54, 7  ;;  %v406_v58 = vrot.slane %v389_v55, 7  ;;  %v7755_v59 = vld [vmem:[#allocation6 + $0x588] ss:$16 sps:$4 sm:$0xff]  }
  0xe1   : > { %435 = vst [vmem:[#allocation2 + $0x48] sm:$0x1] %v408_v51  ;;  %v7756_v60 = vld [vmem:[#allocation6 + $0x5a4] ss:$16 sps:$4 sm:$0xff]   ;;  %v7758_v61 = vld [vmem:[#allocation6 + $0x5ac] ss:$16 sps:$4 sm:$0xff]   ;;  %v9456_v62 = vsel %vm401_vm0, %v403_v48, %v408_v51 }
  0xe2   : > { %426 = vst [vmem:[#allocation2] sm:$0xfe] %v402_v57  ;;  %434 = vst [vmem:[#allocation2 + $0x40] sm:$0x1] %v406_v58  ;;  %v7760_v63 = vld [vmem:[#allocation6 + $0x5a0] ss:$16 sps:$4 sm:$0xff]   ;;  %v9460_v8 = vsel %vm401_vm0, %v402_v57, %v406_v58 }
  0xe3   : > { %1427 = vmatpush1.bf16.msra.mxu0 %v7712_v22  ;;  %1513 = vmatpush1.bf16.msra.mxu1 %v7713_v23  ;;  %v7761_v0 = vld [vmem:[#allocation6 + $0x5a8] ss:$16 sps:$4 sm:$0xff]   ;;  %v7762_v2 = vld [vmem:[#allocation6 + $0x5c4] ss:$16 sps:$4 sm:$0xff]   ;;  %v7764_v3 = vld [vmem:[#allocation6 + $0x5cc] ss:$16 sps:$4 sm:$0xff]  }
  0xe4   : > { %1428 = vmatprep.subr.bf16.mxu0 %v7714_v24  ;;  %1514 = vmatprep.subr.bf16.mxu1 %v7716_v25  ;;  %v7766_v6 = vld [vmem:[#allocation6 + $0x5c0] ss:$16 sps:$4 sm:$0xff]   ;;  %v7767_v9 = vld [vmem:[#allocation6 + $0x5c8] ss:$16 sps:$4 sm:$0xff]   ;;  %v7768_v16 = vld [vmem:[#allocation6 + $0x5e4] ss:$16 sps:$4 sm:$0xff]  }
  0xe5   : > { %v7770_v17 = vld [vmem:[#allocation6 + $0x5ec] ss:$16 sps:$4 sm:$0xff]   ;;  %v7772_v22 = vld [vmem:[#allocation6 + $0x5e0] ss:$16 sps:$4 sm:$0xff]   ;;  %v7794_v46 = vld [vmem:[#allocation6 + $0x664] ss:$16 sps:$4 sm:$0xff]  }
  0xe6   : > { %v7797_v47 = vld [vmem:[#allocation6 + $0x66c] ss:$16 sps:$4 sm:$0xff]   ;;  %v7792_v48 = vld [vmem:[#allocation6 + $0x660] ss:$16 sps:$4 sm:$0xff]   ;;  %v7806_v54 = vld [vmem:[#allocation6 + $0x6a4] ss:$16 sps:$4 sm:$0xff]  }
  0xe7   : > { %1429 = vmatpush1.bf16.msra.mxu0 %v7718_v26  ;;  %1515 = vmatpush1.bf16.msra.mxu1 %v7719_v27  ;;  %v579_v1 = vld [vmem:[#allocation2 + $0x8] sm:$0xfe]  ;;  %v7812_v58 = vld [vmem:[#allocation6 + $0x6c4] ss:$16 sps:$4 sm:$0xff]   ;;  %vm2553_vm3 = vcmask 1046528   ;;  %s7483_s8 = sshll.u32 %s9187_s30, 10 }
  0xe8   : > { %1430 = vmatprep.subr.bf16.mxu0 %v7720_v28  ;;  %1516 = vmatprep.subr.bf16.mxu1 %v7722_v29  ;;  %v583_v4 = vld [vmem:[#allocation2 + $0x48] sm:$0x1]  ;;  %v587_v5 = vpack.c.bf16 %v9456_v62, %v579_v1  ;;  %v7776_v29 = vld [vmem:[#allocation6 + $0x604] ss:$16 sps:$4 sm:$0xff]   ;;  %v7803_v51 = vld [vmem:[#allocation6 + $0x68c] ss:$16 sps:$4 sm:$0xff]   ;;  %s9563_s30 = scalar_lea.hbm %s9616_s7, %s7483_s8 }
  0xe9   : > { %v591_v7 = vpack.c.bf16 %v583_v4, %v583_v4  ;;  %v578_v13 = vld [vmem:[#allocation2] sm:$0xfe]  ;;  %v582_v14 = vld [vmem:[#allocation2 + $0x40] sm:$0x1]  ;;  %v7773_v27 = vld [vmem:[#allocation6 + $0x5e8] ss:$16 sps:$4 sm:$0xff]  }
  0xea   : > { %v737_v10 = vshrl.u32 %v587_v5, 16  ;;  %v739_v11 = vshll.u32 %v587_v5, 16  ;;  %v586_v19 = vpack.c.bf16 %v9460_v8, %v578_v13  ;;  %v590_v20 = vpack.c.bf16 %v582_v14, %v582_v14  ;;  %v7809_v55 = vld [vmem:[#allocation6 + $0x6ac] ss:$16 sps:$4 sm:$0xff]   ;;  %v7807_v57 = vld [vmem:[#allocation6 + $0x6a8] ss:$16 sps:$4 sm:$0xff]  }
  0xeb   : > { %1431 = vmatpush1.bf16.msra.mxu0 %v7724_v30  ;;  %1517 = vmatpush1.bf16.msra.mxu1 %v7725_v31  ;;  %v744_v12 = vshll.u32 %v591_v7, 16  ;;  %v7779_v30 = vld [vmem:[#allocation6 + $0x60c] ss:$16 sps:$4 sm:$0xff]   ;;  %v7816_v4 = vld [vmem:[#allocation6 + $0x6e0] ss:$16 sps:$4 sm:$0xff]   ;;  %s375_s22 = scalar_lea.vmem [#allocation15], %s6701_s10 }
  0xec   : > { %1432 = vmatprep.subr.bf16.mxu0 %v7726_v32  ;;  %1518 = vmatprep.subr.bf16.mxu1 %v7728_v33  ;;  %v741_v18 = vrot.slane %v739_v11, 1  ;;  %v725_v24 = vshrl.u32 %v586_v19, 16  ;;  %v727_v25 = vshll.u32 %v586_v19, 16  ;;  %v732_v26 = vshll.u32 %v590_v20, 16  ;;  %v388_v1 = vld [vmem:[%s9433_s28 + $0x18] sm:$0xff]  ;;  %s6558_s23 = sshll.u32 %s375_s22, 4  ;;  %s9565_s23 = int_to_ptr.vmem [resolvable:$true] %s6558_s23 }
  0xed   : > { %v746_v21 = vrot.slane %v744_v12, 1  ;;  %v9122_v33 = vmov 0.0   ;;  %v7824_v7 = vld [vmem:[#allocation6 + $0x704] ss:$16 sps:$4 sm:$0xff]   ;;  %v7827_v11 = vld [vmem:[#allocation6 + $0x70c] ss:$16 sps:$4 sm:$0xff]  }
  0xee   : > { %v742_v23 = vor.u32 %v741_v18, %v737_v10  ;;  %v729_v31 = vrot.slane %v727_v25, 1  ;;  %v734_v32 = vrot.slane %v732_v26, 1  ;;  %380 = vst.msk [vmem:[#allocation2] ss:$8 sm:$0xf] %vm378_vm2, %v9122_v33  ;;  %v391_v10 = vld [vmem:[%s9433_s28 + $0x30] sm:$0xff] }
  0xef   : > { %1433 = vmatpush1.bf16.msra.mxu0 %v7730_v34  ;;  %1519 = vmatpush1.bf16.msra.mxu1 %v7731_v35  ;;  %383 = vst.msk [vmem:[#allocation2 + $0x41] ss:$8 sm:$0xf] %vm378_vm2, %v9122_v33  ;;  %v7774_v35 = vld [vmem:[#allocation6 + $0x600] ss:$16 sps:$4 sm:$0xff]   ;;  %v410_v13 = vrot.slane %v391_v10, 7 }
  0xf0   : > { %1434 = vmatprep.subr.bf16.mxu0 %v7732_v36  ;;  %1520 = vmatprep.subr.bf16.mxu1 %v7734_v37  ;;  %v747_v28 = vsel %vm723_vm1, %v742_v23, %v746_v21  ;;  %v730_v34 = vor.u32 %v729_v31, %v725_v24  ;;  %v7777_v36 = vld [vmem:[#allocation6 + $0x608] ss:$16 sps:$4 sm:$0xff]   ;;  %v7822_v14 = vld [vmem:[#allocation6 + $0x700] ss:$16 sps:$4 sm:$0xff]   ;;  %v7830_v18 = vld [vmem:[#allocation6 + $0x724] ss:$16 sps:$4 sm:$0xff]  }
  0xf1   : > { %1448 = vmatprep.mubr.bf16.mxu0 %v747_v28  ;;  %1534 = vmatprep.mubr.bf16.mxu1 %v747_v28  ;;  %436 = vst [vmem:[#allocation2 + $0x50] sm:$0x1] %v410_v13  ;;  %v7833_v19 = vld [vmem:[#allocation6 + $0x72c] ss:$16 sps:$4 sm:$0xff]   ;;  %v7828_v21 = vld [vmem:[#allocation6 + $0x720] ss:$16 sps:$4 sm:$0xff]  }
  0xf2   : > { %v735_v37 = vsel %vm723_vm1, %v730_v34, %v734_v32  ;;  %v7836_v25 = vld [vmem:[#allocation6 + $0x744] ss:$16 sps:$4 sm:$0xff]   ;;  %v7834_v32 = vld [vmem:[#allocation6 + $0x740] ss:$16 sps:$4 sm:$0xff]   ;;  %v7837_v33 = vld [vmem:[#allocation6 + $0x748] ss:$16 sps:$4 sm:$0xff]  }
  0xf3   : > { %1435 = vmatpush1.bf16.msra.mxu0 %v7736_v38  ;;  %1521 = vmatpush1.bf16.msra.mxu1 %v7737_v39  ;;  %v7782_v38 = vld [vmem:[#allocation6 + $0x624] ss:$16 sps:$4 sm:$0xff]   ;;  %v7785_v39 = vld [vmem:[#allocation6 + $0x62c] ss:$16 sps:$4 sm:$0xff]   ;;  %s6545_s21 = scalar_lea.sflag [#allocation5], %s9427_s20  ;;  %s9031_s17 = scalar_lea.vmem %s9565_s23, 1024 }
  0xf4   : > { %1436 = vmatprep.subr.bf16.mxu0 %v7738_v40  ;;  %1522 = vmatprep.subr.bf16.mxu1 %v7740_v41  ;;  %v7780_v40 = vld [vmem:[#allocation6 + $0x620] ss:$16 sps:$4 sm:$0xff]   ;;  %v7783_v41 = vld [vmem:[#allocation6 + $0x628] ss:$16 sps:$4 sm:$0xff]   ;;  %p9032_p6 = scmp.ne.s32.totalorder %s9565_s23, %s9031_s17  ;;  %p9636_p9 = scmp.ne.s32.totalorder %s9626_s15, 0 }
  0xf5   : > { %s9123_s18 = smov [#allocation15]  }
  0xf6   : > { %p9033_p12 = pnand %p9032_p6, %p9636_p9  ;;  %s9035_s9 = sshll.u32 %s9123_s18, 4  ;;  %s9036_s9 = int_to_ptr.vmem [resolvable:$false] %s9035_s9 }
  0xf7   : > { %1437 = vmatpush1.bf16.msra.mxu0 %v7742_v42  ;;  %1523 = vmatpush1.bf16.msra.mxu1 %v7743_v43  ;;  %v7788_v42 = vld [vmem:[#allocation6 + $0x644] ss:$16 sps:$4 sm:$0xff]   ;;  %v7791_v43 = vld [vmem:[#allocation6 + $0x64c] ss:$16 sps:$4 sm:$0xff]   ;;  %s9037_s29 = scalar_lea.vmem %s9036_s9, 2048  ;;  %p9038_p1 = scmp.lt.s32.totalorder %s9565_s23, %s9036_s9 }
  0xf8   : > { %1438 = vmatprep.subr.bf16.mxu0 %v7744_v44  ;;  %1524 = vmatprep.subr.bf16.mxu1 %v7746_v45  ;;  %v7786_v44 = vld [vmem:[#allocation6 + $0x640] ss:$16 sps:$4 sm:$0xff]   ;;  %v7789_v45 = vld [vmem:[#allocation6 + $0x648] ss:$16 sps:$4 sm:$0xff]   ;;  %p9034_p13 = pneg %p9033_p12  ;;  %p9039_p3 = scmp.lt.s32.totalorder %s9037_s29, %s9031_s17 }
  0xfa   : > { %p9040_p2 = por %p9039_p3, %p9038_p1 }
  0xfb   : > { %1439 = vmatpush1.bf16.msra.mxu0 %v7748_v49  ;;  %1525 = vmatpush1.bf16.msra.mxu1 %v7749_v50  ;;  %v7795_v49 = vld [vmem:[#allocation6 + $0x668] ss:$16 sps:$4 sm:$0xff]   ;;  %v7800_v50 = vld [vmem:[#allocation6 + $0x684] ss:$16 sps:$4 sm:$0xff]  }
  0xfc   : > { %1440 = vmatprep.subr.bf16.mxu0 %v7750_v52  ;;  %1526 = vmatprep.subr.bf16.mxu1 %v7752_v53  ;;  %v7798_v52 = vld [vmem:[#allocation6 + $0x680] ss:$16 sps:$4 sm:$0xff]   ;;  %v7801_v53 = vld [vmem:[#allocation6 + $0x688] ss:$16 sps:$4 sm:$0xff]   ;;  %p9041_p8 = pnand %p9040_p2, %p9034_p13 }
  0xff   : > { %1441 = vmatpush1.bf16.msra.mxu0 %v7754_v56  ;;  %1527 = vmatpush1.bf16.msra.mxu1 %v7755_v59  ;;  %v7804_v56 = vld [vmem:[#allocation6 + $0x6a0] ss:$16 sps:$4 sm:$0xff]   ;;  %v7815_v59 = vld [vmem:[#allocation6 + $0x6cc] ss:$16 sps:$4 sm:$0xff]  }
 0x100   : > { %1442 = vmatprep.subr.bf16.mxu0 %v7756_v60  ;;  %1528 = vmatprep.subr.bf16.mxu1 %v7758_v61  ;;  %v7810_v60 = vld [vmem:[#allocation6 + $0x6c0] ss:$16 sps:$4 sm:$0xff]   ;;  %v7813_v61 = vld [vmem:[#allocation6 + $0x6c8] ss:$16 sps:$4 sm:$0xff]  }
 0x103   : > { %1443 = vmatpush1.bf16.msra.mxu0 %v7760_v63  ;;  %1529 = vmatpush1.bf16.msra.mxu1 %v7761_v0  ;;  %v7818_v63 = vld [vmem:[#allocation6 + $0x6e4] ss:$16 sps:$4 sm:$0xff]   ;;  %v7821_v0 = vld [vmem:[#allocation6 + $0x6ec] ss:$16 sps:$4 sm:$0xff]  }
 0x104   : > { %1444 = vmatprep.subr.bf16.mxu0 %v7762_v2  ;;  %1530 = vmatprep.subr.bf16.mxu1 %v7764_v3  ;;  %v392_v2 = vld [vmem:[%s9433_s28 + $0x38] sm:$0xff]  ;;  %v405_v3 = vrot.slane %v388_v1, 7  ;;  %v7864_v1 = vld [vmem:[#allocation6 + $0x7e0] ss:$16 sps:$4 sm:$0xff]  }
 0x105   : > { %v412_v5 = vrot.slane %v392_v2, 7  ;;  %v7867_v2 = vld [vmem:[#allocation6 + $0x7e8] ss:$16 sps:$4 sm:$0xff]  }
 0x106   : > { %429 = vst [vmem:[#allocation2 + $0x18] sm:$0xfe] %v405_v3 }
 0x107   : > { %1445 = vmatpush1.bf16.msra.mxu0 %v7766_v6  ;;  %1531 = vmatpush1.bf16.msra.mxu1 %v7767_v9  ;;  %v7819_v6 = vld [vmem:[#allocation6 + $0x6e8] ss:$16 sps:$4 sm:$0xff]   ;;  %437 = vst [vmem:[#allocation2 + $0x58] sm:$0x1] %v412_v5  ;;  %v387_v9 = vld [vmem:[%s9433_s28 + $0x10] sm:$0xff] }
 0x108   : > { %1446 = vmatprep.subr.bf16.mxu0 %v7768_v16  ;;  %1532 = vmatprep.subr.bf16.mxu1 %v7770_v17  ;;  %v404_v12 = vrot.slane %v387_v9, 7  ;;  %v7825_v16 = vld [vmem:[#allocation6 + $0x708] ss:$16 sps:$4 sm:$0xff]   ;;  %v9471_v17 = vsel %vm401_vm0, %v405_v3, %v412_v5  ;;  %v7872_v3 = vld [vmem:[#allocation6 + $0x4] ss:$16 sps:$4 sm:$0xff]  }
 0x109   : > { %v7873_v9 = vld [vmem:[#allocation6 + $0x8] ss:$16 sps:$4 sm:$0xff]  }
 0x10a   : > { %428 = vst [vmem:[#allocation2 + $0x10] sm:$0xfe] %v404_v12 }
 0x10b   : > { %1447 = vmatpush1.bf16.msra.mxu0 %v7772_v22  ;;  %1533 = vmatpush1.bf16.msra.mxu1 %v7773_v27  ;;  %v7831_v22 = vld [vmem:[#allocation6 + $0x728] ss:$16 sps:$4 sm:$0xff]   ;;  %v7839_v27 = vld [vmem:[#allocation6 + $0x74c] ss:$16 sps:$4 sm:$0xff]  }
 0x10c   : > { %1459 = vmatprep.subr.bf16.mxu0 %v7776_v29  ;;  %1545 = vmatprep.subr.bf16.mxu1 %v7779_v30 }
 0x10d   : > { %v581_v20 = vld [vmem:[#allocation2 + $0x18] sm:$0xfe] }
 0x10e   : > { %1449 = vmatmul.mubr.bf16.vlgmr.msra.gmra.mrb[0].mxu0 %v735_v37  ;;  %1535 = vmatmul.mubr.bf16.vlgmr.msra.gmra.mrb[0].mxu1 %v735_v37  ;;  %v585_v23 = vld [vmem:[#allocation2 + $0x58] sm:$0x1]  ;;  %v589_v24 = vpack.c.bf16 %v9471_v17, %v581_v20  ;;  %v7882_v20 = vld [vmem:[#allocation6 + $0x40] ss:$16 sps:$4 sm:$0xff]  }
 0x10f   : > { %1460 = vmatpush1.bf16.msra.mxu0 %v7774_v35  ;;  %1546 = vmatpush1.bf16.msra.mxu1 %v7777_v36  ;;  %v593_v26 = vpack.c.bf16 %v585_v23, %v585_v23  ;;  %v7842_v35 = vld [vmem:[#allocation6 + $0x764] ss:$16 sps:$4 sm:$0xff]   ;;  %v7845_v36 = vld [vmem:[#allocation6 + $0x76c] ss:$16 sps:$4 sm:$0xff]  }
 0x110   : > { %1461 = vmatprep.subr.bf16.mxu0 %v7782_v38  ;;  %1547 = vmatprep.subr.bf16.mxu1 %v7785_v39  ;;  %v761_v28 = vshrl.u32 %v589_v24, 16  ;;  %v763_v29 = vshll.u32 %v589_v24, 16  ;;  %v7840_v38 = vld [vmem:[#allocation6 + $0x760] ss:$16 sps:$4 sm:$0xff]   ;;  %v7843_v39 = vld [vmem:[#allocation6 + $0x768] ss:$16 sps:$4 sm:$0xff]  }
 0x111   : > { %v768_v30 = vshll.u32 %v593_v26, 16  ;;  %v7890_v23 = vld [vmem:[#allocation6 + $0x64] ss:$16 sps:$4 sm:$0xff]   ;;  %v7893_v24 = vld [vmem:[#allocation6 + $0x6c] ss:$16 sps:$4 sm:$0xff]  }
 0x112   : > { %v765_v31 = vrot.slane %v763_v29, 1  ;;  %v7891_v26 = vld [vmem:[#allocation6 + $0x68] ss:$16 sps:$4 sm:$0xff]   ;;  %v7894_v29 = vld [vmem:[#allocation6 + $0x80] ss:$16 sps:$4 sm:$0xff]  }
 0x113   : > { %1462 = vmatpush1.bf16.msra.mxu0 %v7780_v40  ;;  %1548 = vmatpush1.bf16.msra.mxu1 %v7783_v41  ;;  %v770_v34 = vrot.slane %v768_v30, 1  ;;  %v7848_v40 = vld [vmem:[#allocation6 + $0x784] ss:$16 sps:$4 sm:$0xff]   ;;  %v7897_v30 = vld [vmem:[#allocation6 + $0x88] ss:$16 sps:$4 sm:$0xff]  }
 0x114   : > { %1463 = vmatprep.subr.bf16.mxu0 %v7788_v42  ;;  %1549 = vmatprep.subr.bf16.mxu1 %v7791_v43  ;;  %v766_v37 = vor.u32 %v765_v31, %v761_v28  ;;  %v7851_v42 = vld [vmem:[#allocation6 + $0x78c] ss:$16 sps:$4 sm:$0xff]   ;;  %v9476_v43 = vsel %vm401_vm0, %v404_v12, %v410_v13  ;;  %v7876_v13 = vld [vmem:[#allocation6 + $0x20] ss:$16 sps:$4 sm:$0xff]   ;;  %v7902_v31 = vld [vmem:[#allocation6 + $0xa4] ss:$16 sps:$4 sm:$0xff]  }
 0x115   : > { %v7881_v12 = vld [vmem:[#allocation6 + $0x2c] ss:$16 sps:$4 sm:$0xff]  }
 0x116   : > { %v771_v41 = vsel %vm723_vm1, %v766_v37, %v770_v34  ;;  %v7899_v28 = vld [vmem:[#allocation6 + $0x8c] ss:$16 sps:$4 sm:$0xff]   ;;  %v7903_v34 = vld [vmem:[#allocation6 + $0xa8] ss:$16 sps:$4 sm:$0xff]   ;;  %v7906_v37 = vld [vmem:[#allocation6 + $0xc0] ss:$16 sps:$4 sm:$0xff]  }
 0x117   : > { %1464 = vmatpush1.bf16.msra.mxu0 %v7786_v44  ;;  %1550 = vmatpush1.bf16.msra.mxu1 %v7789_v45  ;;  %v580_v44 = vld [vmem:[#allocation2 + $0x10] sm:$0xfe] }
 0x118   : > { %1465 = vmatprep.subr.bf16.mxu0 %v7794_v46  ;;  %1551 = vmatprep.subr.bf16.mxu1 %v7797_v47  ;;  %v7846_v45 = vld [vmem:[#allocation6 + $0x780] ss:$16 sps:$4 sm:$0xff]   ;;  %v7849_v46 = vld [vmem:[#allocation6 + $0x788] ss:$16 sps:$4 sm:$0xff]   ;;  %v7854_v47 = vld [vmem:[#allocation6 + $0x7a4] ss:$16 sps:$4 sm:$0xff]  }
 0x119   : > { %1491 = vmatprep.mubr.bf16.mxu0 %v771_v41  ;;  %1577 = vmatprep.mubr.bf16.mxu1 %v771_v41  ;;  %v7912_v41 = vld [vmem:[#allocation6 + $0xe0] ss:$16 sps:$4 sm:$0xff]  }
 0x11b   : > { %1466 = vmatpush1.bf16.msra.mxu0 %v7792_v48  ;;  %1552 = vmatpush1.bf16.msra.mxu1 %v7795_v49  ;;  %v7857_v48 = vld [vmem:[#allocation6 + $0x7ac] ss:$16 sps:$4 sm:$0xff]   ;;  %v588_v49 = vpack.c.bf16 %v9476_v43, %v580_v44  ;;  %v7920_v44 = vld [vmem:[#allocation6 + $0x104] ss:$16 sps:$4 sm:$0xff]  }
 0x11c   : > { %1467 = vmatprep.subr.bf16.mxu0 %v7800_v50  ;;  %1553 = vmatprep.subr.bf16.mxu1 %v7803_v51  ;;  %v584_v50 = vld [vmem:[#allocation2 + $0x50] sm:$0x1] }
 0x11d   : > { %v7852_v51 = vld [vmem:[#allocation6 + $0x7a0] ss:$16 sps:$4 sm:$0xff]  }
 0x11f   : > { %1468 = vmatpush1.bf16.msra.mxu0 %v7798_v52  ;;  %1554 = vmatpush1.bf16.msra.mxu1 %v7801_v53  ;;  %v7855_v52 = vld [vmem:[#allocation6 + $0x7a8] ss:$16 sps:$4 sm:$0xff]   ;;  %v7860_v53 = vld [vmem:[#allocation6 + $0x7c4] ss:$16 sps:$4 sm:$0xff]  }
 0x120   : > { %1469 = vmatprep.subr.bf16.mxu0 %v7806_v54  ;;  %1555 = vmatprep.subr.bf16.mxu1 %v7809_v55  ;;  %v592_v54 = vpack.c.bf16 %v584_v50, %v584_v50  ;;  %v751_v55 = vshll.u32 %v588_v49, 16  ;;  %v7924_v50 = vld [vmem:[#allocation6 + $0x120] ss:$16 sps:$4 sm:$0xff]  }
 0x123   : > { %1470 = vmatpush1.bf16.msra.mxu0 %v7804_v56  ;;  %1556 = vmatpush1.bf16.msra.mxu1 %v7807_v57  ;;  %v7863_v56 = vld [vmem:[#allocation6 + $0x7cc] ss:$16 sps:$4 sm:$0xff]   ;;  %v7858_v57 = vld [vmem:[#allocation6 + $0x7c0] ss:$16 sps:$4 sm:$0xff]  }
 0x124   : > { %1471 = vmatprep.subr.bf16.mxu0 %v7812_v58  ;;  %1557 = vmatprep.subr.bf16.mxu1 %v7815_v59  ;;  %v7861_v58 = vld [vmem:[#allocation6 + $0x7c8] ss:$16 sps:$4 sm:$0xff]   ;;  %v7866_v59 = vld [vmem:[#allocation6 + $0x7e4] ss:$16 sps:$4 sm:$0xff]  }
 0x127   : > { %1472 = vmatpush1.bf16.msra.mxu0 %v7810_v60  ;;  %1558 = vmatpush1.bf16.msra.mxu1 %v7813_v61  ;;  %v749_v60 = vshrl.u32 %v588_v49, 16  ;;  %v753_v61 = vrot.slane %v751_v55, 1  ;;  %v7929_v49 = vld [vmem:[#allocation6 + $0x12c] ss:$16 sps:$4 sm:$0xff]   ;;  %v7933_v55 = vld [vmem:[#allocation6 + $0x148] ss:$16 sps:$4 sm:$0xff]  }
 0x128   : > { %1473 = vmatprep.subr.bf16.mxu0 %v7818_v63  ;;  %1559 = vmatprep.subr.bf16.mxu1 %v7821_v0  ;;  %v756_v63 = vshll.u32 %v592_v54, 16  ;;  %v7869_v0 = vld [vmem:[#allocation6 + $0x7ec] ss:$16 sps:$4 sm:$0xff]   ;;  %v7930_v54 = vld [vmem:[#allocation6 + $0x140] ss:$16 sps:$4 sm:$0xff]  }
 0x12a   : > { %v758_v5 = vrot.slane %v756_v63, 1  ;;  %v7942_v63 = vld [vmem:[#allocation6 + $0x180] ss:$16 sps:$4 sm:$0xff]  }
 0x12b   : > { %1474 = vmatpush1.bf16.msra.mxu0 %v7816_v4  ;;  %1560 = vmatpush1.bf16.msra.mxu1 %v7819_v6  ;;  %v754_v4 = vor.u32 %v753_v61, %v749_v60  ;;  %v7875_v6 = vld [vmem:[#allocation6 + $0xc] ss:$16 sps:$4 sm:$0xff]   ;;  %v7944_v60 = vld [vmem:[#allocation6 + $0x184] ss:$16 sps:$4 sm:$0xff]  }
 0x12c   : > { %1475 = vmatprep.subr.bf16.mxu0 %v7824_v7  ;;  %1561 = vmatprep.subr.bf16.mxu1 %v7827_v11  ;;  %v7870_v7 = vld [vmem:[#allocation6] ss:$16 sps:$4 sm:$0xff]   ;;  %v7878_v11 = vld [vmem:[#allocation6 + $0x24] ss:$16 sps:$4 sm:$0xff]   ;;  %v7947_v61 = vld [vmem:[#allocation6 + $0x18c] ss:$16 sps:$4 sm:$0xff]  }
 0x12d   : > { %v759_v10 = vsel %vm723_vm1, %v754_v4, %v758_v5  ;;  %v7951_v4 = vld [vmem:[#allocation6 + $0x1a8] ss:$16 sps:$4 sm:$0xff]   ;;  %v7956_v5 = vld [vmem:[#allocation6 + $0x1c4] ss:$16 sps:$4 sm:$0xff]  }
 0x12f   : > { %1476 = vmatpush1.bf16.msra.mxu0 %v7822_v14  ;;  %1562 = vmatpush1.bf16.msra.mxu1 %v7825_v16  ;;  %v7879_v14 = vld [vmem:[#allocation6 + $0x28] ss:$16 sps:$4 sm:$0xff]   ;;  %v7884_v16 = vld [vmem:[#allocation6 + $0x44] ss:$16 sps:$4 sm:$0xff]  }
 0x130   : > { %1477 = vmatprep.subr.bf16.mxu0 %v7830_v18  ;;  %1563 = vmatprep.subr.bf16.mxu1 %v7833_v19  ;;  %v7887_v18 = vld [vmem:[#allocation6 + $0x4c] ss:$16 sps:$4 sm:$0xff]  }
 0x131   : > { %v439_v19 = vld [vmem:[#allocation2 + $0x8] sm:$0xff] }
 0x133   : > { %1478 = vmatpush1.bf16.msra.mxu0 %v7828_v21  ;;  %1564 = vmatpush1.bf16.msra.mxu1 %v7831_v22  ;;  %v447_v21 = vpack.c.bf16 %v9456_v62, %v439_v19  ;;  %v7885_v22 = vld [vmem:[#allocation6 + $0x48] ss:$16 sps:$4 sm:$0xff]   ;;  %v7966_v19 = vld [vmem:[#allocation6 + $0x200] ss:$16 sps:$4 sm:$0xff]  }
 0x134   : > { %1479 = vmatprep.subr.bf16.mxu0 %v7836_v25  ;;  %1565 = vmatprep.subr.bf16.mxu1 %v7839_v27  ;;  %v7888_v25 = vld [vmem:[#allocation6 + $0x60] ss:$16 sps:$4 sm:$0xff]   ;;  %v7896_v27 = vld [vmem:[#allocation6 + $0x84] ss:$16 sps:$4 sm:$0xff]  }
 0x137   : > { %1480 = vmatpush1.bf16.msra.mxu0 %v7834_v32  ;;  %1566 = vmatpush1.bf16.msra.mxu1 %v7837_v33  ;;  %v7905_v32 = vld [vmem:[#allocation6 + $0xac] ss:$16 sps:$4 sm:$0xff]   ;;  %v7900_v33 = vld [vmem:[#allocation6 + $0xa0] ss:$16 sps:$4 sm:$0xff]  }
 0x138   : > { %1481 = vmatprep.subr.bf16.mxu0 %v7842_v35  ;;  %1567 = vmatprep.subr.bf16.mxu1 %v7845_v36  ;;  %v7908_v35 = vld [vmem:[#allocation6 + $0xc4] ss:$16 sps:$4 sm:$0xff]   ;;  %v7911_v36 = vld [vmem:[#allocation6 + $0xcc] ss:$16 sps:$4 sm:$0xff]  }
 0x13b   : > { %1482 = vmatpush1.bf16.msra.mxu0 %v7840_v38  ;;  %1568 = vmatpush1.bf16.msra.mxu1 %v7843_v39  ;;  %v7909_v38 = vld [vmem:[#allocation6 + $0xc8] ss:$16 sps:$4 sm:$0xff]   ;;  %v7914_v39 = vld [vmem:[#allocation6 + $0xe4] ss:$16 sps:$4 sm:$0xff]  }
 0x13c   : > { %1483 = vmatprep.subr.bf16.mxu0 %v7848_v40  ;;  %1569 = vmatprep.subr.bf16.mxu1 %v7851_v42  ;;  %v7917_v40 = vld [vmem:[#allocation6 + $0xec] ss:$16 sps:$4 sm:$0xff]   ;;  %v7915_v42 = vld [vmem:[#allocation6 + $0xe8] ss:$16 sps:$4 sm:$0xff]  }
 0x13f   : > { %1484 = vmatpush1.bf16.msra.mxu0 %v7846_v45  ;;  %1570 = vmatpush1.bf16.msra.mxu1 %v7849_v46  ;;  %v7923_v45 = vld [vmem:[#allocation6 + $0x10c] ss:$16 sps:$4 sm:$0xff]   ;;  %v7918_v46 = vld [vmem:[#allocation6 + $0x100] ss:$16 sps:$4 sm:$0xff]  }
 0x140   : > { %1485 = vmatprep.subr.bf16.mxu0 %v7854_v47  ;;  %1571 = vmatprep.subr.bf16.mxu1 %v7857_v48  ;;  %v7921_v47 = vld [vmem:[#allocation6 + $0x108] ss:$16 sps:$4 sm:$0xff]   ;;  %v7926_v48 = vld [vmem:[#allocation6 + $0x124] ss:$16 sps:$4 sm:$0xff]  }
 0x143   : > { %1486 = vmatpush1.bf16.msra.mxu0 %v7852_v51  ;;  %1572 = vmatpush1.bf16.msra.mxu1 %v7855_v52  ;;  %v7927_v51 = vld [vmem:[#allocation6 + $0x128] ss:$16 sps:$4 sm:$0xff]   ;;  %v7932_v52 = vld [vmem:[#allocation6 + $0x144] ss:$16 sps:$4 sm:$0xff]  }
 0x144   : > { %1487 = vmatprep.subr.bf16.mxu0 %v7860_v53  ;;  %1573 = vmatprep.subr.bf16.mxu1 %v7863_v56  ;;  %v7935_v53 = vld [vmem:[#allocation6 + $0x14c] ss:$16 sps:$4 sm:$0xff]   ;;  %v7938_v56 = vld [vmem:[#allocation6 + $0x164] ss:$16 sps:$4 sm:$0xff]  }
 0x147   : > { %1488 = vmatpush1.bf16.msra.mxu0 %v7858_v57  ;;  %1574 = vmatpush1.bf16.msra.mxu1 %v7861_v58  ;;  %v7941_v57 = vld [vmem:[#allocation6 + $0x16c] ss:$16 sps:$4 sm:$0xff]   ;;  %v7936_v58 = vld [vmem:[#allocation6 + $0x160] ss:$16 sps:$4 sm:$0xff]  }
 0x148   : > { %1489 = vmatprep.subr.bf16.mxu0 %v7866_v59  ;;  %1575 = vmatprep.subr.bf16.mxu1 %v7869_v0  ;;  %v7939_v59 = vld [vmem:[#allocation6 + $0x168] ss:$16 sps:$4 sm:$0xff]  }
 0x149   : > { %v7945_v0 = vld [vmem:[#allocation6 + $0x188] ss:$16 sps:$4 sm:$0xff]  }
 0x14b   : > { %1490 = vmatpush1.bf16.msra.mxu0 %v7864_v1  ;;  %1576 = vmatpush1.bf16.msra.mxu1 %v7867_v2  ;;  %v7950_v1 = vld [vmem:[#allocation6 + $0x1a4] ss:$16 sps:$4 sm:$0xff]   ;;  %v7953_v2 = vld [vmem:[#allocation6 + $0x1ac] ss:$16 sps:$4 sm:$0xff]  }
 0x14c   : > { %2228 = vmatprep.subr.bf16.mxu0 %v7872_v3  ;;  %2314 = vmatprep.subr.bf16.mxu1 %v7875_v6  ;;  %v7948_v3 = vld [vmem:[#allocation6 + $0x1a0] ss:$16 sps:$4 sm:$0xff]   ;;  %v7959_v6 = vld [vmem:[#allocation6 + $0x1cc] ss:$16 sps:$4 sm:$0xff]  }
 0x14e   : > { %1492 = vmatmul.mubr.bf16.vlgmr.msra.gmra.mrb[0].mxu0 %v759_v10  ;;  %1578 = vmatmul.mubr.bf16.vlgmr.msra.gmra.mrb[0].mxu1 %v759_v10  ;;  %v7962_v10 = vld [vmem:[#allocation6 + $0x1e4] ss:$16 sps:$4 sm:$0xff]  }
 0x14f   : > { %2229 = vmatpush1.bf16.msra.mxu0 %v7870_v7  ;;  %2315 = vmatpush1.bf16.msra.mxu1 %v7873_v9  ;;  %v7954_v7 = vld [vmem:[#allocation6 + $0x1c0] ss:$16 sps:$4 sm:$0xff]   ;;  %v7957_v9 = vld [vmem:[#allocation6 + $0x1c8] ss:$16 sps:$4 sm:$0xff]  }
 0x150   : > { %2230 = vmatprep.subr.bf16.mxu0 %v7878_v11  ;;  %2316 = vmatprep.subr.bf16.mxu1 %v7881_v12  ;;  %v7965_v11 = vld [vmem:[#allocation6 + $0x1ec] ss:$16 sps:$4 sm:$0xff]   ;;  %v7960_v12 = vld [vmem:[#allocation6 + $0x1e0] ss:$16 sps:$4 sm:$0xff]  }
 0x151   : > { %2260 = vmatprep.mubr.bf16.mxu0 %v447_v21  ;;  %2346 = vmatprep.mubr.bf16.mxu1 %v447_v21 }
 0x153   : > { %2231 = vmatpush1.bf16.msra.mxu0 %v7876_v13  ;;  %2317 = vmatpush1.bf16.msra.mxu1 %v7879_v14  ;;  %v7963_v13 = vld [vmem:[#allocation6 + $0x1e8] ss:$16 sps:$4 sm:$0xff]   ;;  %v7968_v14 = vld [vmem:[#allocation6 + $0x204] ss:$16 sps:$4 sm:$0xff]  }
 0x154   : > { %2232 = vmatprep.subr.bf16.mxu0 %v7884_v16  ;;  %2318 = vmatprep.subr.bf16.mxu1 %v7887_v18  ;;  %v438_v16 = vld [vmem:[#allocation2] sm:$0xff]  ;;  %v7971_v18 = vld [vmem:[#allocation6 + $0x20c] ss:$16 sps:$4 sm:$0xff]  }
 0x155   : > { %v446_v21 = vpack.c.bf16 %v9460_v8, %v438_v16  ;;  %v8052_v16 = vld [vmem:[#allocation6 + $0x3c4] ss:$16 sps:$4 sm:$0xff]  }
 0x157   : > { %2233 = vmatpush1.bf16.msra.mxu0 %v7882_v20  ;;  %2319 = vmatpush1.bf16.msra.mxu1 %v7885_v22  ;;  %v7969_v20 = vld [vmem:[#allocation6 + $0x208] ss:$16 sps:$4 sm:$0xff]  }
 0x158   : > { %2234 = vmatprep.subr.bf16.mxu0 %v7890_v23  ;;  %2320 = vmatprep.subr.bf16.mxu1 %v7893_v24  ;;  %v441_v22 = vld [vmem:[#allocation2 + $0x18] sm:$0xff]  ;;  %v7974_v23 = vld [vmem:[#allocation6 + $0x224] ss:$16 sps:$4 sm:$0xff]  }
 0x159   : > { %v7977_v24 = vld [vmem:[#allocation6 + $0x22c] ss:$16 sps:$4 sm:$0xff]  }
 0x15b   : > { %2235 = vmatpush1.bf16.msra.mxu0 %v7888_v25  ;;  %2321 = vmatpush1.bf16.msra.mxu1 %v7891_v26  ;;  %v449_v25 = vpack.c.bf16 %v9471_v17, %v441_v22  ;;  %v7972_v26 = vld [vmem:[#allocation6 + $0x220] ss:$16 sps:$4 sm:$0xff]   ;;  %v2405_v22 = vld [vmem:[#allocation2 + $0x48] sm:$0x3] }
 0x15c   : > { %2236 = vmatprep.subr.bf16.mxu0 %v7896_v27  ;;  %2322 = vmatprep.subr.bf16.mxu1 %v7899_v28  ;;  %v7975_v27 = vld [vmem:[#allocation6 + $0x228] ss:$16 sps:$4 sm:$0xff]   ;;  %v7980_v28 = vld [vmem:[#allocation6 + $0x244] ss:$16 sps:$4 sm:$0xff]  }
 0x15f   : > { %2237 = vmatpush1.bf16.msra.mxu0 %v7894_v29  ;;  %2323 = vmatpush1.bf16.msra.mxu1 %v7897_v30  ;;  %v7983_v29 = vld [vmem:[#allocation6 + $0x24c] ss:$16 sps:$4 sm:$0xff]   ;;  %v7978_v30 = vld [vmem:[#allocation6 + $0x240] ss:$16 sps:$4 sm:$0xff]  }
 0x160   : > { %2238 = vmatprep.subr.bf16.mxu0 %v7902_v31  ;;  %2324 = vmatprep.subr.bf16.mxu1 %v7905_v32  ;;  %v7981_v31 = vld [vmem:[#allocation6 + $0x248] ss:$16 sps:$4 sm:$0xff]   ;;  %v7986_v32 = vld [vmem:[#allocation6 + $0x264] ss:$16 sps:$4 sm:$0xff]  }
 0x163   : > { %2239 = vmatpush1.bf16.msra.mxu0 %v7900_v33  ;;  %2325 = vmatpush1.bf16.msra.mxu1 %v7903_v34  ;;  %v7989_v33 = vld [vmem:[#allocation6 + $0x26c] ss:$16 sps:$4 sm:$0xff]   ;;  %v7984_v34 = vld [vmem:[#allocation6 + $0x260] ss:$16 sps:$4 sm:$0xff]  }
 0x164   : > { %2240 = vmatprep.subr.bf16.mxu0 %v7908_v35  ;;  %2326 = vmatprep.subr.bf16.mxu1 %v7911_v36  ;;  %v7987_v35 = vld [vmem:[#allocation6 + $0x268] ss:$16 sps:$4 sm:$0xff]   ;;  %v7992_v36 = vld [vmem:[#allocation6 + $0x284] ss:$16 sps:$4 sm:$0xff]  }
 0x167   : > { %2241 = vmatpush1.bf16.msra.mxu0 %v7906_v37  ;;  %2327 = vmatpush1.bf16.msra.mxu1 %v7909_v38  ;;  %v7995_v37 = vld [vmem:[#allocation6 + $0x28c] ss:$16 sps:$4 sm:$0xff]   ;;  %v7990_v38 = vld [vmem:[#allocation6 + $0x280] ss:$16 sps:$4 sm:$0xff]  }
 0x168   : > { %2242 = vmatprep.subr.bf16.mxu0 %v7914_v39  ;;  %2328 = vmatprep.subr.bf16.mxu1 %v7917_v40  ;;  %v7993_v39 = vld [vmem:[#allocation6 + $0x288] ss:$16 sps:$4 sm:$0xff]   ;;  %v7998_v40 = vld [vmem:[#allocation6 + $0x2a4] ss:$16 sps:$4 sm:$0xff]  }
 0x16b   : > { %2243 = vmatpush1.bf16.msra.mxu0 %v7912_v41  ;;  %2329 = vmatpush1.bf16.msra.mxu1 %v7915_v42  ;;  %v8001_v41 = vld [vmem:[#allocation6 + $0x2ac] ss:$16 sps:$4 sm:$0xff]   ;;  %v7996_v42 = vld [vmem:[#allocation6 + $0x2a0] ss:$16 sps:$4 sm:$0xff]  }
 0x16c   : > { %2244 = vmatprep.subr.bf16.mxu0 %v7920_v44  ;;  %2330 = vmatprep.subr.bf16.mxu1 %v7923_v45  ;;  %v7999_v44 = vld [vmem:[#allocation6 + $0x2a8] ss:$16 sps:$4 sm:$0xff]   ;;  %v8004_v45 = vld [vmem:[#allocation6 + $0x2c4] ss:$16 sps:$4 sm:$0xff]  }
 0x16f   : > { %2245 = vmatpush1.bf16.msra.mxu0 %v7918_v46  ;;  %2331 = vmatpush1.bf16.msra.mxu1 %v7921_v47  ;;  %v8007_v46 = vld [vmem:[#allocation6 + $0x2cc] ss:$16 sps:$4 sm:$0xff]   ;;  %v8002_v47 = vld [vmem:[#allocation6 + $0x2c0] ss:$16 sps:$4 sm:$0xff]  }
 0x170   : > { %2246 = vmatprep.subr.bf16.mxu0 %v7926_v48  ;;  %2332 = vmatprep.subr.bf16.mxu1 %v7929_v49  ;;  %v8005_v48 = vld [vmem:[#allocation6 + $0x2c8] ss:$16 sps:$4 sm:$0xff]   ;;  %v8010_v49 = vld [vmem:[#allocation6 + $0x2e4] ss:$16 sps:$4 sm:$0xff]  }
 0x173   : > { %2247 = vmatpush1.bf16.msra.mxu0 %v7924_v50  ;;  %2333 = vmatpush1.bf16.msra.mxu1 %v7927_v51  ;;  %v8013_v50 = vld [vmem:[#allocation6 + $0x2ec] ss:$16 sps:$4 sm:$0xff]   ;;  %v8008_v51 = vld [vmem:[#allocation6 + $0x2e0] ss:$16 sps:$4 sm:$0xff]  }
 0x174   : > { %2248 = vmatprep.subr.bf16.mxu0 %v7932_v52  ;;  %2334 = vmatprep.subr.bf16.mxu1 %v7935_v53  ;;  %v8011_v52 = vld [vmem:[#allocation6 + $0x2e8] ss:$16 sps:$4 sm:$0xff]   ;;  %v8016_v53 = vld [vmem:[#allocation6 + $0x304] ss:$16 sps:$4 sm:$0xff]  }
 0x177   : > { %2249 = vmatpush1.bf16.msra.mxu0 %v7930_v54  ;;  %2335 = vmatpush1.bf16.msra.mxu1 %v7933_v55  ;;  %v8019_v54 = vld [vmem:[#allocation6 + $0x30c] ss:$16 sps:$4 sm:$0xff]   ;;  %v8014_v55 = vld [vmem:[#allocation6 + $0x300] ss:$16 sps:$4 sm:$0xff]  }
 0x178   : > { %2250 = vmatprep.subr.bf16.mxu0 %v7938_v56  ;;  %2336 = vmatprep.subr.bf16.mxu1 %v7941_v57  ;;  %v8017_v56 = vld [vmem:[#allocation6 + $0x308] ss:$16 sps:$4 sm:$0xff]   ;;  %v8022_v57 = vld [vmem:[#allocation6 + $0x324] ss:$16 sps:$4 sm:$0xff]  }
 0x17b   : > { %2251 = vmatpush1.bf16.msra.mxu0 %v7936_v58  ;;  %2337 = vmatpush1.bf16.msra.mxu1 %v7939_v59  ;;  %v8025_v58 = vld [vmem:[#allocation6 + $0x32c] ss:$16 sps:$4 sm:$0xff]   ;;  %v8020_v59 = vld [vmem:[#allocation6 + $0x320] ss:$16 sps:$4 sm:$0xff]  }
 0x17c   : > { %2252 = vmatprep.subr.bf16.mxu0 %v7944_v60  ;;  %2338 = vmatprep.subr.bf16.mxu1 %v7947_v61  ;;  %v8023_v60 = vld [vmem:[#allocation6 + $0x328] ss:$16 sps:$4 sm:$0xff]   ;;  %v8028_v61 = vld [vmem:[#allocation6 + $0x344] ss:$16 sps:$4 sm:$0xff]  }
 0x17f   : > { %2253 = vmatpush1.bf16.msra.mxu0 %v7942_v63  ;;  %2339 = vmatpush1.bf16.msra.mxu1 %v7945_v0  ;;  %v8031_v63 = vld [vmem:[#allocation6 + $0x34c] ss:$16 sps:$4 sm:$0xff]   ;;  %v8026_v0 = vld [vmem:[#allocation6 + $0x340] ss:$16 sps:$4 sm:$0xff]  }
 0x180   : > { %2254 = vmatprep.subr.bf16.mxu0 %v7950_v1  ;;  %2340 = vmatprep.subr.bf16.mxu1 %v7953_v2  ;;  %v8029_v1 = vld [vmem:[#allocation6 + $0x348] ss:$16 sps:$4 sm:$0xff]   ;;  %v8034_v2 = vld [vmem:[#allocation6 + $0x364] ss:$16 sps:$4 sm:$0xff]  }
 0x183   : > { %2255 = vmatpush1.bf16.msra.mxu0 %v7948_v3  ;;  %2341 = vmatpush1.bf16.msra.mxu1 %v7951_v4  ;;  %v8037_v3 = vld [vmem:[#allocation6 + $0x36c] ss:$16 sps:$4 sm:$0xff]   ;;  %v8032_v4 = vld [vmem:[#allocation6 + $0x360] ss:$16 sps:$4 sm:$0xff]  }
 0x184   : > { %2256 = vmatprep.subr.bf16.mxu0 %v7956_v5  ;;  %2342 = vmatprep.subr.bf16.mxu1 %v7959_v6  ;;  %v8035_v5 = vld [vmem:[#allocation6 + $0x368] ss:$16 sps:$4 sm:$0xff]   ;;  %v8040_v6 = vld [vmem:[#allocation6 + $0x384] ss:$16 sps:$4 sm:$0xff]  }
 0x187   : > { %2257 = vmatpush1.bf16.msra.mxu0 %v7954_v7  ;;  %2343 = vmatpush1.bf16.msra.mxu1 %v7957_v9  ;;  %v8043_v7 = vld [vmem:[#allocation6 + $0x38c] ss:$16 sps:$4 sm:$0xff]   ;;  %v8038_v9 = vld [vmem:[#allocation6 + $0x380] ss:$16 sps:$4 sm:$0xff]  }
 0x188   : > { %2258 = vmatprep.subr.bf16.mxu0 %v7962_v10  ;;  %2344 = vmatprep.subr.bf16.mxu1 %v7965_v11  ;;  %v8041_v10 = vld [vmem:[#allocation6 + $0x388] ss:$16 sps:$4 sm:$0xff]   ;;  %v8046_v11 = vld [vmem:[#allocation6 + $0x3a4] ss:$16 sps:$4 sm:$0xff]  }
 0x18b   : > { %2259 = vmatpush1.bf16.msra.mxu0 %v7960_v12  ;;  %2345 = vmatpush1.bf16.msra.mxu1 %v7963_v13  ;;  %v8049_v12 = vld [vmem:[#allocation6 + $0x3ac] ss:$16 sps:$4 sm:$0xff]   ;;  %v8044_v13 = vld [vmem:[#allocation6 + $0x3a0] ss:$16 sps:$4 sm:$0xff]  }
 0x18c   : > { %2271 = vmatprep.subr.bf16.mxu0 %v7968_v14  ;;  %2357 = vmatprep.subr.bf16.mxu1 %v7971_v18  ;;  %v8047_v14 = vld [vmem:[#allocation6 + $0x3a8] ss:$16 sps:$4 sm:$0xff]   ;;  %v8055_v18 = vld [vmem:[#allocation6 + $0x3cc] ss:$16 sps:$4 sm:$0xff]  }
 0x18e   : > { %2261 = vmatmul.mubr.bf16.vlgmr.msra.gmra.mrb[0].mxu0 %v446_v21  ;;  %2347 = vmatmul.mubr.bf16.vlgmr.msra.gmra.mrb[0].mxu1 %v446_v21  ;;  %v2401_v21 = vld [vmem:[#allocation2 + $0x8] sm:$0xfc] }
 0x18f   : > { %2272 = vmatpush1.bf16.msra.mxu0 %v7966_v19  ;;  %2358 = vmatpush1.bf16.msra.mxu1 %v7969_v20  ;;  %v8050_v19 = vld [vmem:[#allocation6 + $0x3c0] ss:$16 sps:$4 sm:$0xff]   ;;  %v8053_v20 = vld [vmem:[#allocation6 + $0x3c8] ss:$16 sps:$4 sm:$0xff]  }
 0x190   : > { %2273 = vmatprep.subr.bf16.mxu0 %v7974_v23  ;;  %2359 = vmatprep.subr.bf16.mxu1 %v7977_v24  ;;  %v8058_v23 = vld [vmem:[#allocation6 + $0x3e4] ss:$16 sps:$4 sm:$0xff]   ;;  %v8061_v24 = vld [vmem:[#allocation6 + $0x3ec] ss:$16 sps:$4 sm:$0xff]  }
 0x191   : > { %2303 = vmatprep.mubr.bf16.mxu0 %v449_v25  ;;  %2389 = vmatprep.mubr.bf16.mxu1 %v449_v25  ;;  %v8056_v25 = vld [vmem:[#allocation6 + $0x3e0] ss:$16 sps:$4 sm:$0xff]  }
 0x193   : > { %2274 = vmatpush1.bf16.msra.mxu0 %v7972_v26  ;;  %2360 = vmatpush1.bf16.msra.mxu1 %v7975_v27  ;;  %v8059_v26 = vld [vmem:[#allocation6 + $0x3e8] ss:$16 sps:$4 sm:$0xff]   ;;  %v2409_v27 = vpack.c.bf16 %v9456_v62, %v2401_v21  ;;  %v8070_v62 = vld [vmem:[#allocation6 + $0x824] ss:$16 sps:$4 sm:$0xff]  }
 0x194   : > { %2275 = vmatprep.subr.bf16.mxu0 %v7980_v28  ;;  %2361 = vmatprep.subr.bf16.mxu1 %v7983_v29  ;;  %v2413_v28 = vpack.c.bf16 %v2405_v22, %v2405_v22  ;;  %v440_v29 = vld [vmem:[#allocation2 + $0x10] sm:$0xff]  ;;  %v8131_v21 = vld [vmem:[#allocation6 + $0x968] ss:$16 sps:$4 sm:$0xff]  }
 0x195   : > { %v8136_v22 = vld [vmem:[#allocation6 + $0x984] ss:$16 sps:$4 sm:$0xff]  }
 0x197   : > { %2276 = vmatpush1.bf16.msra.mxu0 %v7978_v30  ;;  %2362 = vmatpush1.bf16.msra.mxu1 %v7981_v31  ;;  %v8064_v30 = vld [vmem:[#allocation6 + $0x804] ss:$16 sps:$4 sm:$0xff]   ;;  %v8067_v31 = vld [vmem:[#allocation6 + $0x80c] ss:$16 sps:$4 sm:$0xff]  }
 0x198   : > { %2277 = vmatprep.subr.bf16.mxu0 %v7986_v32  ;;  %2363 = vmatprep.subr.bf16.mxu1 %v7989_v33  ;;  %v8062_v32 = vld [vmem:[#allocation6 + $0x800] ss:$16 sps:$4 sm:$0xff]   ;;  %v448_v33 = vpack.c.bf16 %v9476_v43, %v440_v29  ;;  %v8143_v29 = vld [vmem:[#allocation6 + $0x9a8] ss:$16 sps:$4 sm:$0xff]  }
 0x19b   : > { %2278 = vmatpush1.bf16.msra.mxu0 %v7984_v34  ;;  %2364 = vmatpush1.bf16.msra.mxu1 %v7987_v35  ;;  %v2557_v34 = vrot.slane %v2409_v27, 1  ;;  %v2558_v35 = vrot.slane %v2413_v28, 1  ;;  %v8145_v27 = vld [vmem:[#allocation6 + $0x9ac] ss:$16 sps:$4 sm:$0xff]   ;;  %v8140_v28 = vld [vmem:[#allocation6 + $0x9a0] ss:$16 sps:$4 sm:$0xff]  }
 0x19c   : > { %2279 = vmatprep.subr.bf16.mxu0 %v7992_v36  ;;  %2365 = vmatprep.subr.bf16.mxu1 %v7995_v37  ;;  %v8065_v36 = vld [vmem:[#allocation6 + $0x808] ss:$16 sps:$4 sm:$0xff]   ;;  %v8073_v37 = vld [vmem:[#allocation6 + $0x82c] ss:$16 sps:$4 sm:$0xff]  }
 0x19f   : > { %2280 = vmatpush1.bf16.msra.mxu0 %v7990_v38  ;;  %2366 = vmatpush1.bf16.msra.mxu1 %v7993_v39  ;;  %v8068_v38 = vld [vmem:[#allocation6 + $0x820] ss:$16 sps:$4 sm:$0xff]   ;;  %v2559_v39 = vsel %vm2553_vm3, %v2557_v34, %v2558_v35  ;;  %v8149_v35 = vld [vmem:[#allocation6 + $0x9c8] ss:$16 sps:$4 sm:$0xff]  }
 0x1a0   : > { %2281 = vmatprep.subr.bf16.mxu0 %v7998_v40  ;;  %2367 = vmatprep.subr.bf16.mxu1 %v8001_v41  ;;  %v8071_v40 = vld [vmem:[#allocation6 + $0x828] ss:$16 sps:$4 sm:$0xff]   ;;  %v8076_v41 = vld [vmem:[#allocation6 + $0x844] ss:$16 sps:$4 sm:$0xff]   ;;  %v8146_v34 = vld [vmem:[#allocation6 + $0x9c0] ss:$16 sps:$4 sm:$0xff]  }
 0x1a3   : > { %2282 = vmatpush1.bf16.msra.mxu0 %v7996_v42  ;;  %2368 = vmatpush1.bf16.msra.mxu1 %v7999_v44  ;;  %v8079_v42 = vld [vmem:[#allocation6 + $0x84c] ss:$16 sps:$4 sm:$0xff]   ;;  %v8074_v44 = vld [vmem:[#allocation6 + $0x840] ss:$16 sps:$4 sm:$0xff]  }
 0x1a4   : > { %2283 = vmatprep.subr.bf16.mxu0 %v8004_v45  ;;  %2369 = vmatprep.subr.bf16.mxu1 %v8007_v46  ;;  %v8077_v45 = vld [vmem:[#allocation6 + $0x848] ss:$16 sps:$4 sm:$0xff]   ;;  %v8082_v46 = vld [vmem:[#allocation6 + $0x864] ss:$16 sps:$4 sm:$0xff]  }
 0x1a7   : > { %2284 = vmatpush1.bf16.msra.mxu0 %v8002_v47  ;;  %2370 = vmatpush1.bf16.msra.mxu1 %v8005_v48  ;;  %v8085_v47 = vld [vmem:[#allocation6 + $0x86c] ss:$16 sps:$4 sm:$0xff]   ;;  %v8080_v48 = vld [vmem:[#allocation6 + $0x860] ss:$16 sps:$4 sm:$0xff]  }
 0x1a8   : > { %2285 = vmatprep.subr.bf16.mxu0 %v8010_v49  ;;  %2371 = vmatprep.subr.bf16.mxu1 %v8013_v50  ;;  %v8083_v49 = vld [vmem:[#allocation6 + $0x868] ss:$16 sps:$4 sm:$0xff]   ;;  %v8088_v50 = vld [vmem:[#allocation6 + $0x884] ss:$16 sps:$4 sm:$0xff]  }
 0x1ab   : > { %2286 = vmatpush1.bf16.msra.mxu0 %v8008_v51  ;;  %2372 = vmatpush1.bf16.msra.mxu1 %v8011_v52  ;;  %v8091_v51 = vld [vmem:[#allocation6 + $0x88c] ss:$16 sps:$4 sm:$0xff]   ;;  %v8086_v52 = vld [vmem:[#allocation6 + $0x880] ss:$16 sps:$4 sm:$0xff]  }
 0x1ac   : > { %2287 = vmatprep.subr.bf16.mxu0 %v8016_v53  ;;  %2373 = vmatprep.subr.bf16.mxu1 %v8019_v54  ;;  %v8089_v53 = vld [vmem:[#allocation6 + $0x888] ss:$16 sps:$4 sm:$0xff]   ;;  %v8094_v54 = vld [vmem:[#allocation6 + $0x8a4] ss:$16 sps:$4 sm:$0xff]  }
 0x1af   : > { %2288 = vmatpush1.bf16.msra.mxu0 %v8014_v55  ;;  %2374 = vmatpush1.bf16.msra.mxu1 %v8017_v56  ;;  %v8097_v55 = vld [vmem:[#allocation6 + $0x8ac] ss:$16 sps:$4 sm:$0xff]   ;;  %v8092_v56 = vld [vmem:[#allocation6 + $0x8a0] ss:$16 sps:$4 sm:$0xff]  }
 0x1b0   : > { %2289 = vmatprep.subr.bf16.mxu0 %v8022_v57  ;;  %2375 = vmatprep.subr.bf16.mxu1 %v8025_v58  ;;  %v8095_v57 = vld [vmem:[#allocation6 + $0x8a8] ss:$16 sps:$4 sm:$0xff]   ;;  %v8100_v58 = vld [vmem:[#allocation6 + $0x8c4] ss:$16 sps:$4 sm:$0xff]  }
 0x1b3   : > { %2290 = vmatpush1.bf16.msra.mxu0 %v8020_v59  ;;  %2376 = vmatpush1.bf16.msra.mxu1 %v8023_v60  ;;  %v8103_v59 = vld [vmem:[#allocation6 + $0x8cc] ss:$16 sps:$4 sm:$0xff]   ;;  %v8098_v60 = vld [vmem:[#allocation6 + $0x8c0] ss:$16 sps:$4 sm:$0xff]  }
 0x1b4   : > { %2291 = vmatprep.subr.bf16.mxu0 %v8028_v61  ;;  %2377 = vmatprep.subr.bf16.mxu1 %v8031_v63  ;;  %v8101_v61 = vld [vmem:[#allocation6 + $0x8c8] ss:$16 sps:$4 sm:$0xff]   ;;  %v8106_v63 = vld [vmem:[#allocation6 + $0x8e4] ss:$16 sps:$4 sm:$0xff]  }
 0x1b7   : > { %2292 = vmatpush1.bf16.msra.mxu0 %v8026_v0  ;;  %2378 = vmatpush1.bf16.msra.mxu1 %v8029_v1  ;;  %v8109_v0 = vld [vmem:[#allocation6 + $0x8ec] ss:$16 sps:$4 sm:$0xff]   ;;  %v8104_v1 = vld [vmem:[#allocation6 + $0x8e0] ss:$16 sps:$4 sm:$0xff]  }
 0x1b8   : > { %2293 = vmatprep.subr.bf16.mxu0 %v8034_v2  ;;  %2379 = vmatprep.subr.bf16.mxu1 %v8037_v3  ;;  %v8107_v2 = vld [vmem:[#allocation6 + $0x8e8] ss:$16 sps:$4 sm:$0xff]   ;;  %v8112_v3 = vld [vmem:[#allocation6 + $0x904] ss:$16 sps:$4 sm:$0xff]  }
 0x1bb   : > { %2294 = vmatpush1.bf16.msra.mxu0 %v8032_v4  ;;  %2380 = vmatpush1.bf16.msra.mxu1 %v8035_v5  ;;  %v8115_v4 = vld [vmem:[#allocation6 + $0x90c] ss:$16 sps:$4 sm:$0xff]   ;;  %v8110_v5 = vld [vmem:[#allocation6 + $0x900] ss:$16 sps:$4 sm:$0xff]  }
 0x1bc   : > { %2295 = vmatprep.subr.bf16.mxu0 %v8040_v6  ;;  %2381 = vmatprep.subr.bf16.mxu1 %v8043_v7  ;;  %v8113_v6 = vld [vmem:[#allocation6 + $0x908] ss:$16 sps:$4 sm:$0xff]   ;;  %v8118_v7 = vld [vmem:[#allocation6 + $0x924] ss:$16 sps:$4 sm:$0xff]  }
 0x1bf   : > { %2296 = vmatpush1.bf16.msra.mxu0 %v8038_v9  ;;  %2382 = vmatpush1.bf16.msra.mxu1 %v8041_v10  ;;  %v8121_v9 = vld [vmem:[#allocation6 + $0x92c] ss:$16 sps:$4 sm:$0xff]   ;;  %v8116_v10 = vld [vmem:[#allocation6 + $0x920] ss:$16 sps:$4 sm:$0xff]  }
 0x1c0   : > { %2297 = vmatprep.subr.bf16.mxu0 %v8046_v11  ;;  %2383 = vmatprep.subr.bf16.mxu1 %v8049_v12  ;;  %v8119_v11 = vld [vmem:[#allocation6 + $0x928] ss:$16 sps:$4 sm:$0xff]   ;;  %v8124_v12 = vld [vmem:[#allocation6 + $0x944] ss:$16 sps:$4 sm:$0xff]  }
 0x1c3   : > { %2298 = vmatpush1.bf16.msra.mxu0 %v8044_v13  ;;  %2384 = vmatpush1.bf16.msra.mxu1 %v8047_v14  ;;  %v8127_v13 = vld [vmem:[#allocation6 + $0x94c] ss:$16 sps:$4 sm:$0xff]   ;;  %v8122_v14 = vld [vmem:[#allocation6 + $0x940] ss:$16 sps:$4 sm:$0xff]  }
 0x1c4   : > { %2299 = vmatprep.subr.bf16.mxu0 %v8052_v16  ;;  %2385 = vmatprep.subr.bf16.mxu1 %v8055_v18  ;;  %v8125_v16 = vld [vmem:[#allocation6 + $0x948] ss:$16 sps:$4 sm:$0xff]   ;;  %v8130_v18 = vld [vmem:[#allocation6 + $0x964] ss:$16 sps:$4 sm:$0xff]  }
 0x1c7   : > { %2300 = vmatpush1.bf16.msra.mxu0 %v8050_v19  ;;  %2386 = vmatpush1.bf16.msra.mxu1 %v8053_v20  ;;  %v8133_v19 = vld [vmem:[#allocation6 + $0x96c] ss:$16 sps:$4 sm:$0xff]   ;;  %v8128_v20 = vld [vmem:[#allocation6 + $0x960] ss:$16 sps:$4 sm:$0xff]  }
 0x1c8   : > { %2301 = vmatprep.subr.bf16.mxu0 %v8058_v23  ;;  %2387 = vmatprep.subr.bf16.mxu1 %v8061_v24  ;;  %v8139_v23 = vld [vmem:[#allocation6 + $0x98c] ss:$16 sps:$4 sm:$0xff]   ;;  %v8134_v24 = vld [vmem:[#allocation6 + $0x980] ss:$16 sps:$4 sm:$0xff]  }
 0x1cb   : > { %2302 = vmatpush1.bf16.msra.mxu0 %v8056_v25  ;;  %2388 = vmatpush1.bf16.msra.mxu1 %v8059_v26  ;;  %v8137_v25 = vld [vmem:[#allocation6 + $0x988] ss:$16 sps:$4 sm:$0xff]   ;;  %v8142_v26 = vld [vmem:[#allocation6 + $0x9a4] ss:$16 sps:$4 sm:$0xff]  }
 0x1cc   : > { %3210 = vmatprep.subr.bf16.mxu0 %v8064_v30  ;;  %3296 = vmatprep.subr.bf16.mxu1 %v8067_v31  ;;  %v8148_v30 = vld [vmem:[#allocation6 + $0x9c4] ss:$16 sps:$4 sm:$0xff]   ;;  %v8151_v31 = vld [vmem:[#allocation6 + $0x9cc] ss:$16 sps:$4 sm:$0xff]  }
 0x1ce   : > { %2304 = vmatmul.mubr.bf16.vlgmr.msra.gmra.mrb[0].mxu0 %v448_v33  ;;  %2390 = vmatmul.mubr.bf16.vlgmr.msra.gmra.mrb[0].mxu1 %v448_v33  ;;  %v2404_v33 = vld [vmem:[#allocation2 + $0x40] sm:$0x3] }
 0x1cf   : > { %3211 = vmatpush1.bf16.msra.mxu0 %v8062_v32  ;;  %3297 = vmatpush1.bf16.msra.mxu1 %v8065_v36  ;;  %v2400_v32 = vld [vmem:[#allocation2] sm:$0xfc]  ;;  %v2403_v36 = vld [vmem:[#allocation2 + $0x18] sm:$0xfc] }
 0x1d0   : > { %3212 = vmatprep.subr.bf16.mxu0 %v8070_v62  ;;  %3298 = vmatprep.subr.bf16.mxu1 %v8073_v37  ;;  %v2407_v62 = vld [vmem:[#allocation2 + $0x58] sm:$0x3]  ;;  %v8154_v37 = vld [vmem:[#allocation6 + $0x9e4] ss:$16 sps:$4 sm:$0xff]  }
 0x1d1   : > { %3242 = vmatprep.mubr.bf16.mxu0 %v2559_v39  ;;  %3328 = vmatprep.mubr.bf16.mxu1 %v2559_v39  ;;  %v2408_v39 = vpack.c.bf16 %v9460_v8, %v2400_v32  ;;  %v8169_v8 = vld [vmem:[#allocation6 + $0xa2c] ss:$16 sps:$4 sm:$0xff]   ;;  %v8218_v32 = vld [vmem:[#allocation6 + $0xb40] ss:$16 sps:$4 sm:$0xff]  }
 0x1d3   : > { %3213 = vmatpush1.bf16.msra.mxu0 %v8068_v38  ;;  %3299 = vmatpush1.bf16.msra.mxu1 %v8071_v40  ;;  %v8157_v38 = vld [vmem:[#allocation6 + $0x9ec] ss:$16 sps:$4 sm:$0xff]   ;;  %v2412_v40 = vpack.c.bf16 %v2404_v33, %v2404_v33  ;;  %v8221_v33 = vld [vmem:[#allocation6 + $0xb48] ss:$16 sps:$4 sm:$0xff]  }
 0x1d4   : > { %3214 = vmatprep.subr.bf16.mxu0 %v8076_v41  ;;  %3300 = vmatprep.subr.bf16.mxu1 %v8079_v42  ;;  %v8152_v41 = vld [vmem:[#allocation6 + $0x9e0] ss:$16 sps:$4 sm:$0xff]   ;;  %v8155_v42 = vld [vmem:[#allocation6 + $0x9e8] ss:$16 sps:$4 sm:$0xff]  }
 0x1d7   : > { %3215 = vmatpush1.bf16.msra.mxu0 %v8074_v44  ;;  %3301 = vmatpush1.bf16.msra.mxu1 %v8077_v45  ;;  %v8160_v44 = vld [vmem:[#allocation6 + $0xa04] ss:$16 sps:$4 sm:$0xff]   ;;  %v8163_v45 = vld [vmem:[#allocation6 + $0xa0c] ss:$16 sps:$4 sm:$0xff]  }
 0x1d8   : > { %3216 = vmatprep.subr.bf16.mxu0 %v8082_v46  ;;  %3302 = vmatprep.subr.bf16.mxu1 %v8085_v47  ;;  %v2411_v46 = vpack.c.bf16 %v9471_v17, %v2403_v36  ;;  %v2415_v47 = vpack.c.bf16 %v2407_v62, %v2407_v62  ;;  %v8164_v17 = vld [vmem:[#allocation6 + $0xa20] ss:$16 sps:$4 sm:$0xff]   ;;  %v8227_v62 = vld [vmem:[#allocation6 + $0xb68] ss:$16 sps:$4 sm:$0xff]  }
 0x1d9   : > { %v8224_v36 = vld [vmem:[#allocation6 + $0xb60] ss:$16 sps:$4 sm:$0xff]  }
 0x1db   : > { %3217 = vmatpush1.bf16.msra.mxu0 %v8080_v48  ;;  %3303 = vmatpush1.bf16.msra.mxu1 %v8083_v49  ;;  %v2554_v48 = vrot.slane %v2408_v39, 1  ;;  %v2555_v49 = vrot.slane %v2412_v40, 1  ;;  %v8230_v39 = vld [vmem:[#allocation6 + $0xb80] ss:$16 sps:$4 sm:$0xff]   ;;  %v8233_v40 = vld [vmem:[#allocation6 + $0xb88] ss:$16 sps:$4 sm:$0xff]  }
 0x1dc   : > { %3218 = vmatprep.subr.bf16.mxu0 %v8088_v50  ;;  %3304 = vmatprep.subr.bf16.mxu1 %v8091_v51  ;;  %v8158_v50 = vld [vmem:[#allocation6 + $0xa00] ss:$16 sps:$4 sm:$0xff]   ;;  %v8161_v51 = vld [vmem:[#allocation6 + $0xa08] ss:$16 sps:$4 sm:$0xff]  }
 0x1df   : > { %3219 = vmatpush1.bf16.msra.mxu0 %v8086_v52  ;;  %3305 = vmatpush1.bf16.msra.mxu1 %v8089_v53  ;;  %v8166_v52 = vld [vmem:[#allocation6 + $0xa24] ss:$16 sps:$4 sm:$0xff]   ;;  %v2563_v53 = vrot.slane %v2411_v46, 1 }
 0x1e0   : > { %3220 = vmatprep.subr.bf16.mxu0 %v8094_v54  ;;  %3306 = vmatprep.subr.bf16.mxu1 %v8097_v55  ;;  %v2564_v54 = vrot.slane %v2415_v47, 1  ;;  %v2556_v55 = vsel %vm2553_vm3, %v2554_v48, %v2555_v49  ;;  %v8244_v46 = vld [vmem:[#allocation6 + $0xbc4] ss:$16 sps:$4 sm:$0xff]   ;;  %v8247_v47 = vld [vmem:[#allocation6 + $0xbcc] ss:$16 sps:$4 sm:$0xff]  }
 0x1e1   : > { %v2402_v48 = vld [vmem:[#allocation2 + $0x10] sm:$0xfc]  ;;  %v2406_v49 = vld [vmem:[#allocation2 + $0x50] sm:$0x3] }
 0x1e3   : > { %3221 = vmatpush1.bf16.msra.mxu0 %v8092_v56  ;;  %3307 = vmatpush1.bf16.msra.mxu1 %v8095_v57  ;;  %v8167_v56 = vld [vmem:[#allocation6 + $0xa28] ss:$16 sps:$4 sm:$0xff]   ;;  %v8172_v57 = vld [vmem:[#allocation6 + $0xa44] ss:$16 sps:$4 sm:$0xff]  }
 0x1e4   : > { %3222 = vmatprep.subr.bf16.mxu0 %v8100_v58  ;;  %3308 = vmatprep.subr.bf16.mxu1 %v8103_v59  ;;  %v8175_v58 = vld [vmem:[#allocation6 + $0xa4c] ss:$16 sps:$4 sm:$0xff]   ;;  %v2565_v59 = vsel %vm2553_vm3, %v2563_v53, %v2564_v54  ;;  %v2410_v53 = vpack.c.bf16 %v9476_v43, %v2402_v48  ;;  %v2414_v54 = vpack.c.bf16 %v2406_v49, %v2406_v49  ;;  %v8326_v48 = vld [vmem:[#allocation11 + $0x580] ss:$16 sps:$4 sm:$0xff]   ;;  %v8329_v49 = vld [vmem:[#allocation11 + $0x588] ss:$16 sps:$4 sm:$0xff]  }
 0x1e7   : > { %3223 = vmatpush1.bf16.msra.mxu0 %v8098_v60  ;;  %3309 = vmatpush1.bf16.msra.mxu1 %v8101_v61  ;;  %v8170_v60 = vld [vmem:[#allocation6 + $0xa40] ss:$16 sps:$4 sm:$0xff]   ;;  %v8173_v61 = vld [vmem:[#allocation6 + $0xa48] ss:$16 sps:$4 sm:$0xff]  }
 0x1e8   : > { %3224 = vmatprep.subr.bf16.mxu0 %v8106_v63  ;;  %3310 = vmatprep.subr.bf16.mxu1 %v8109_v0  ;;  %v8178_v63 = vld [vmem:[#allocation6 + $0xa64] ss:$16 sps:$4 sm:$0xff]   ;;  %v8181_v0 = vld [vmem:[#allocation6 + $0xa6c] ss:$16 sps:$4 sm:$0xff]  }
 0x1eb   : > { %3225 = vmatpush1.bf16.msra.mxu0 %v8104_v1  ;;  %3311 = vmatpush1.bf16.msra.mxu1 %v8107_v2  ;;  %v8176_v1 = vld [vmem:[#allocation6 + $0xa60] ss:$16 sps:$4 sm:$0xff]   ;;  %v8179_v2 = vld [vmem:[#allocation6 + $0xa68] ss:$16 sps:$4 sm:$0xff]  }
 0x1ec   : > { %3226 = vmatprep.subr.bf16.mxu0 %v8112_v3  ;;  %3312 = vmatprep.subr.bf16.mxu1 %v8115_v4  ;;  %v8184_v3 = vld [vmem:[#allocation6 + $0xa84] ss:$16 sps:$4 sm:$0xff]   ;;  %v8187_v4 = vld [vmem:[#allocation6 + $0xa8c] ss:$16 sps:$4 sm:$0xff]  }
 0x1ef   : > { %3227 = vmatpush1.bf16.msra.mxu0 %v8110_v5  ;;  %3313 = vmatpush1.bf16.msra.mxu1 %v8113_v6  ;;  %v8182_v5 = vld [vmem:[#allocation6 + $0xa80] ss:$16 sps:$4 sm:$0xff]   ;;  %v8185_v6 = vld [vmem:[#allocation6 + $0xa88] ss:$16 sps:$4 sm:$0xff]  }
 0x1f0   : > { %3228 = vmatprep.subr.bf16.mxu0 %v8118_v7  ;;  %3314 = vmatprep.subr.bf16.mxu1 %v8121_v9  ;;  %v8190_v7 = vld [vmem:[#allocation6 + $0xaa4] ss:$16 sps:$4 sm:$0xff]   ;;  %v8193_v9 = vld [vmem:[#allocation6 + $0xaac] ss:$16 sps:$4 sm:$0xff]  }
 0x1f3   : > { %3229 = vmatpush1.bf16.msra.mxu0 %v8116_v10  ;;  %3315 = vmatpush1.bf16.msra.mxu1 %v8119_v11  ;;  %v8188_v10 = vld [vmem:[#allocation6 + $0xaa0] ss:$16 sps:$4 sm:$0xff]   ;;  %v8191_v11 = vld [vmem:[#allocation6 + $0xaa8] ss:$16 sps:$4 sm:$0xff]  }
 0x1f4   : > { %3230 = vmatprep.subr.bf16.mxu0 %v8124_v12  ;;  %3316 = vmatprep.subr.bf16.mxu1 %v8127_v13  ;;  %v8196_v12 = vld [vmem:[#allocation6 + $0xac4] ss:$16 sps:$4 sm:$0xff]   ;;  %v8199_v13 = vld [vmem:[#allocation6 + $0xacc] ss:$16 sps:$4 sm:$0xff]  }
 0x1f7   : > { %3231 = vmatpush1.bf16.msra.mxu0 %v8122_v14  ;;  %3317 = vmatpush1.bf16.msra.mxu1 %v8125_v16  ;;  %v8194_v14 = vld [vmem:[#allocation6 + $0xac0] ss:$16 sps:$4 sm:$0xff]   ;;  %v8197_v16 = vld [vmem:[#allocation6 + $0xac8] ss:$16 sps:$4 sm:$0xff]  }
 0x1f8   : > { %3232 = vmatprep.subr.bf16.mxu0 %v8130_v18  ;;  %3318 = vmatprep.subr.bf16.mxu1 %v8133_v19  ;;  %v8202_v18 = vld [vmem:[#allocation6 + $0xae4] ss:$16 sps:$4 sm:$0xff]   ;;  %v8205_v19 = vld [vmem:[#allocation6 + $0xaec] ss:$16 sps:$4 sm:$0xff]  }
 0x1fb   : > { %3233 = vmatpush1.bf16.msra.mxu0 %v8128_v20  ;;  %3319 = vmatpush1.bf16.msra.mxu1 %v8131_v21  ;;  %v8200_v20 = vld [vmem:[#allocation6 + $0xae0] ss:$16 sps:$4 sm:$0xff]   ;;  %v8203_v21 = vld [vmem:[#allocation6 + $0xae8] ss:$16 sps:$4 sm:$0xff]  }
 0x1fc   : > { %3234 = vmatprep.subr.bf16.mxu0 %v8136_v22  ;;  %3320 = vmatprep.subr.bf16.mxu1 %v8139_v23  ;;  %v8208_v22 = vld [vmem:[#allocation6 + $0xb04] ss:$16 sps:$4 sm:$0xff]   ;;  %v8211_v23 = vld [vmem:[#allocation6 + $0xb0c] ss:$16 sps:$4 sm:$0xff]  }
 0x1ff   : > { %3235 = vmatpush1.bf16.msra.mxu0 %v8134_v24  ;;  %3321 = vmatpush1.bf16.msra.mxu1 %v8137_v25  ;;  %v8206_v24 = vld [vmem:[#allocation6 + $0xb00] ss:$16 sps:$4 sm:$0xff]   ;;  %v8209_v25 = vld [vmem:[#allocation6 + $0xb08] ss:$16 sps:$4 sm:$0xff]  }
 0x200   : > { %3236 = vmatprep.subr.bf16.mxu0 %v8142_v26  ;;  %3322 = vmatprep.subr.bf16.mxu1 %v8145_v27  ;;  %v8214_v26 = vld [vmem:[#allocation6 + $0xb24] ss:$16 sps:$4 sm:$0xff]   ;;  %v8217_v27 = vld [vmem:[#allocation6 + $0xb2c] ss:$16 sps:$4 sm:$0xff]  }
 0x203   : > { %3237 = vmatpush1.bf16.msra.mxu0 %v8140_v28  ;;  %3323 = vmatpush1.bf16.msra.mxu1 %v8143_v29  ;;  %v8212_v28 = vld [vmem:[#allocation6 + $0xb20] ss:$16 sps:$4 sm:$0xff]   ;;  %v8215_v29 = vld [vmem:[#allocation6 + $0xb28] ss:$16 sps:$4 sm:$0xff]  }
 0x204   : > { %3238 = vmatprep.subr.bf16.mxu0 %v8148_v30  ;;  %3324 = vmatprep.subr.bf16.mxu1 %v8151_v31  ;;  %v8220_v30 = vld [vmem:[#allocation6 + $0xb44] ss:$16 sps:$4 sm:$0xff]   ;;  %v8223_v31 = vld [vmem:[#allocation6 + $0xb4c] ss:$16 sps:$4 sm:$0xff]  }
 0x207   : > { %3239 = vmatpush1.bf16.msra.mxu0 %v8146_v34  ;;  %3325 = vmatpush1.bf16.msra.mxu1 %v8149_v35  ;;  %v8226_v34 = vld [vmem:[#allocation6 + $0xb64] ss:$16 sps:$4 sm:$0xff]   ;;  %v8229_v35 = vld [vmem:[#allocation6 + $0xb6c] ss:$16 sps:$4 sm:$0xff]  }
 0x208   : > { %3240 = vmatprep.subr.bf16.mxu0 %v8154_v37  ;;  %3326 = vmatprep.subr.bf16.mxu1 %v8157_v38  ;;  %v8232_v37 = vld [vmem:[#allocation6 + $0xb84] ss:$16 sps:$4 sm:$0xff]   ;;  %v8235_v38 = vld [vmem:[#allocation6 + $0xb8c] ss:$16 sps:$4 sm:$0xff]  }
 0x20b   : > { %3241 = vmatpush1.bf16.msra.mxu0 %v8152_v41  ;;  %3327 = vmatpush1.bf16.msra.mxu1 %v8155_v42  ;;  %v8238_v41 = vld [vmem:[#allocation6 + $0xba4] ss:$16 sps:$4 sm:$0xff]   ;;  %v8241_v42 = vld [vmem:[#allocation6 + $0xbac] ss:$16 sps:$4 sm:$0xff]  }
 0x20c   : > { %3253 = vmatprep.subr.bf16.mxu0 %v8160_v44  ;;  %3339 = vmatprep.subr.bf16.mxu1 %v8163_v45  ;;  %v8236_v44 = vld [vmem:[#allocation6 + $0xba0] ss:$16 sps:$4 sm:$0xff]   ;;  %v8239_v45 = vld [vmem:[#allocation6 + $0xba8] ss:$16 sps:$4 sm:$0xff]  }
 0x20e   : > { %3243 = vmatmul.mubr.bf16.vlgmr.msra.gmra.mrb[0].mxu0 %v2556_v55  ;;  %3329 = vmatmul.mubr.bf16.vlgmr.msra.gmra.mrb[0].mxu1 %v2556_v55  ;;  %v8248_v55 = vld [vmem:[#allocation6 + $0xbe0] ss:$16 sps:$4 sm:$0xff]  }
 0x20f   : > { %3254 = vmatpush1.bf16.msra.mxu0 %v8158_v50  ;;  %3340 = vmatpush1.bf16.msra.mxu1 %v8161_v51  ;;  %v8242_v50 = vld [vmem:[#allocation6 + $0xbc0] ss:$16 sps:$4 sm:$0xff]   ;;  %v8245_v51 = vld [vmem:[#allocation6 + $0xbc8] ss:$16 sps:$4 sm:$0xff]  }
 0x210   : > { %3255 = vmatprep.subr.bf16.mxu0 %v8166_v52  ;;  %3341 = vmatprep.subr.bf16.mxu1 %v8169_v8  ;;  %v8250_v52 = vld [vmem:[#allocation6 + $0xbe4] ss:$16 sps:$4 sm:$0xff]   ;;  %v8253_v8 = vld [vmem:[#allocation6 + $0xbec] ss:$16 sps:$4 sm:$0xff]  }
 0x211   : > { %3285 = vmatprep.mubr.bf16.mxu0 %v2565_v59  ;;  %3371 = vmatprep.mubr.bf16.mxu1 %v2565_v59  ;;  %v2561_v59 = vrot.slane %v2414_v54, 1  ;;  %v8343_v54 = vld [vmem:[#allocation11 + $0x5cc] ss:$16 sps:$4 sm:$0xff]  }
 0x213   : > { %3256 = vmatpush1.bf16.msra.mxu0 %v8164_v17  ;;  %3342 = vmatpush1.bf16.msra.mxu1 %v8167_v56  ;;  %v8251_v17 = vld [vmem:[#allocation6 + $0xbe8] ss:$16 sps:$4 sm:$0xff]   ;;  %v8256_v56 = vld [vmem:[#allocation11 + $0x404] ss:$16 sps:$4 sm:$0xff]  }
 0x214   : > { %3257 = vmatprep.subr.bf16.mxu0 %v8172_v57  ;;  %3343 = vmatprep.subr.bf16.mxu1 %v8175_v58  ;;  %v8259_v57 = vld [vmem:[#allocation11 + $0x40c] ss:$16 sps:$4 sm:$0xff]   ;;  %v2560_v58 = vrot.slane %v2410_v53, 1  ;;  %v8340_v53 = vld [vmem:[#allocation11 + $0x5c4] ss:$16 sps:$4 sm:$0xff]  }
 0x216   : > { %v2562_v43 = vsel %vm2553_vm3, %v2560_v58, %v2561_v59  ;;  %v8344_v58 = vld [vmem:[#allocation11 + $0x5e0] ss:$16 sps:$4 sm:$0xff]   ;;  %v8347_v59 = vld [vmem:[#allocation11 + $0x5e8] ss:$16 sps:$4 sm:$0xff]  }
 0x217   : > { %3258 = vmatpush1.bf16.msra.mxu0 %v8170_v60  ;;  %3344 = vmatpush1.bf16.msra.mxu1 %v8173_v61  ;;  %v8254_v60 = vld [vmem:[#allocation11 + $0x400] ss:$16 sps:$4 sm:$0xff]   ;;  %v8257_v61 = vld [vmem:[#allocation11 + $0x408] ss:$16 sps:$4 sm:$0xff]  }
 0x218   : > { %3259 = vmatprep.subr.bf16.mxu0 %v8178_v63  ;;  %3345 = vmatprep.subr.bf16.mxu1 %v8181_v0  ;;  %v8262_v63 = vld [vmem:[#allocation11 + $0x424] ss:$16 sps:$4 sm:$0xff]   ;;  %v8265_v0 = vld [vmem:[#allocation11 + $0x42c] ss:$16 sps:$4 sm:$0xff]  }
 0x21b   : > { %3260 = vmatpush1.bf16.msra.mxu0 %v8176_v1  ;;  %3346 = vmatpush1.bf16.msra.mxu1 %v8179_v2  ;;  %v8260_v1 = vld [vmem:[#allocation11 + $0x420] ss:$16 sps:$4 sm:$0xff]   ;;  %v8263_v2 = vld [vmem:[#allocation11 + $0x428] ss:$16 sps:$4 sm:$0xff]  }
 0x21c   : > { %3261 = vmatprep.subr.bf16.mxu0 %v8184_v3  ;;  %3347 = vmatprep.subr.bf16.mxu1 %v8187_v4  ;;  %v8268_v3 = vld [vmem:[#allocation11 + $0x444] ss:$16 sps:$4 sm:$0xff]   ;;  %v8271_v4 = vld [vmem:[#allocation11 + $0x44c] ss:$16 sps:$4 sm:$0xff]  }
 0x21f   : > { %3262 = vmatpush1.bf16.msra.mxu0 %v8182_v5  ;;  %3348 = vmatpush1.bf16.msra.mxu1 %v8185_v6  ;;  %v8266_v5 = vld [vmem:[#allocation11 + $0x440] ss:$16 sps:$4 sm:$0xff]   ;;  %v8269_v6 = vld [vmem:[#allocation11 + $0x448] ss:$16 sps:$4 sm:$0xff]  }
 0x220   : > { %3263 = vmatprep.subr.bf16.mxu0 %v8190_v7  ;;  %3349 = vmatprep.subr.bf16.mxu1 %v8193_v9  ;;  %v8274_v7 = vld [vmem:[#allocation11 + $0x464] ss:$16 sps:$4 sm:$0xff]   ;;  %v8277_v9 = vld [vmem:[#allocation11 + $0x46c] ss:$16 sps:$4 sm:$0xff]  }
 0x223   : > { %3264 = vmatpush1.bf16.msra.mxu0 %v8188_v10  ;;  %3350 = vmatpush1.bf16.msra.mxu1 %v8191_v11  ;;  %v8272_v10 = vld [vmem:[#allocation11 + $0x460] ss:$16 sps:$4 sm:$0xff]   ;;  %v8275_v11 = vld [vmem:[#allocation11 + $0x468] ss:$16 sps:$4 sm:$0xff]  }
 0x224   : > { %3265 = vmatprep.subr.bf16.mxu0 %v8196_v12  ;;  %3351 = vmatprep.subr.bf16.mxu1 %v8199_v13  ;;  %v8280_v12 = vld [vmem:[#allocation11 + $0x484] ss:$16 sps:$4 sm:$0xff]   ;;  %v8283_v13 = vld [vmem:[#allocation11 + $0x48c] ss:$16 sps:$4 sm:$0xff]  }
 0x227   : > { %3266 = vmatpush1.bf16.msra.mxu0 %v8194_v14  ;;  %3352 = vmatpush1.bf16.msra.mxu1 %v8197_v16  ;;  %v8278_v14 = vld [vmem:[#allocation11 + $0x480] ss:$16 sps:$4 sm:$0xff]   ;;  %v8281_v16 = vld [vmem:[#allocation11 + $0x488] ss:$16 sps:$4 sm:$0xff]  }
 0x228   : > { %3267 = vmatprep.subr.bf16.mxu0 %v8202_v18  ;;  %3353 = vmatprep.subr.bf16.mxu1 %v8205_v19  ;;  %v8286_v18 = vld [vmem:[#allocation11 + $0x4a4] ss:$16 sps:$4 sm:$0xff]   ;;  %v8289_v19 = vld [vmem:[#allocation11 + $0x4ac] ss:$16 sps:$4 sm:$0xff]  }
 0x22b   : > { %3268 = vmatpush1.bf16.msra.mxu0 %v8200_v20  ;;  %3354 = vmatpush1.bf16.msra.mxu1 %v8203_v21  ;;  %v8284_v20 = vld [vmem:[#allocation11 + $0x4a0] ss:$16 sps:$4 sm:$0xff]   ;;  %v8287_v21 = vld [vmem:[#allocation11 + $0x4a8] ss:$16 sps:$4 sm:$0xff]  }
 0x22c   : > { %3269 = vmatprep.subr.bf16.mxu0 %v8208_v22  ;;  %3355 = vmatprep.subr.bf16.mxu1 %v8211_v23  ;;  %v8292_v22 = vld [vmem:[#allocation11 + $0x4c4] ss:$16 sps:$4 sm:$0xff]   ;;  %v8295_v23 = vld [vmem:[#allocation11 + $0x4cc] ss:$16 sps:$4 sm:$0xff]  }
 0x22f   : > { %3270 = vmatpush1.bf16.msra.mxu0 %v8206_v24  ;;  %3356 = vmatpush1.bf16.msra.mxu1 %v8209_v25  ;;  %v8290_v24 = vld [vmem:[#allocation11 + $0x4c0] ss:$16 sps:$4 sm:$0xff]   ;;  %v8293_v25 = vld [vmem:[#allocation11 + $0x4c8] ss:$16 sps:$4 sm:$0xff]  }
 0x230   : > { %3271 = vmatprep.subr.bf16.mxu0 %v8214_v26  ;;  %3357 = vmatprep.subr.bf16.mxu1 %v8217_v27  ;;  %v8298_v26 = vld [vmem:[#allocation11 + $0x4e4] ss:$16 sps:$4 sm:$0xff]   ;;  %v8301_v27 = vld [vmem:[#allocation11 + $0x4ec] ss:$16 sps:$4 sm:$0xff]  }
 0x233   : > { %3272 = vmatpush1.bf16.msra.mxu0 %v8212_v28  ;;  %3358 = vmatpush1.bf16.msra.mxu1 %v8215_v29  ;;  %v8296_v28 = vld [vmem:[#allocation11 + $0x4e0] ss:$16 sps:$4 sm:$0xff]   ;;  %v8299_v29 = vld [vmem:[#allocation11 + $0x4e8] ss:$16 sps:$4 sm:$0xff]  }
 0x234   : > { %3273 = vmatprep.subr.bf16.mxu0 %v8220_v30  ;;  %3359 = vmatprep.subr.bf16.mxu1 %v8223_v31  ;;  %v8304_v30 = vld [vmem:[#allocation11 + $0x504] ss:$16 sps:$4 sm:$0xff]   ;;  %v8307_v31 = vld [vmem:[#allocation11 + $0x50c] ss:$16 sps:$4 sm:$0xff]  }
 0x237   : > { %3274 = vmatpush1.bf16.msra.mxu0 %v8218_v32  ;;  %3360 = vmatpush1.bf16.msra.mxu1 %v8221_v33  ;;  %v8302_v32 = vld [vmem:[#allocation11 + $0x500] ss:$16 sps:$4 sm:$0xff]   ;;  %v8305_v33 = vld [vmem:[#allocation11 + $0x508] ss:$16 sps:$4 sm:$0xff]  }
 0x238   : > { %3275 = vmatprep.subr.bf16.mxu0 %v8226_v34  ;;  %3361 = vmatprep.subr.bf16.mxu1 %v8229_v35  ;;  %v8310_v34 = vld [vmem:[#allocation11 + $0x524] ss:$16 sps:$4 sm:$0xff]   ;;  %v8313_v35 = vld [vmem:[#allocation11 + $0x52c] ss:$16 sps:$4 sm:$0xff]  }
 0x23b   : > { %3276 = vmatpush1.bf16.msra.mxu0 %v8224_v36  ;;  %3362 = vmatpush1.bf16.msra.mxu1 %v8227_v62  ;;  %v8308_v36 = vld [vmem:[#allocation11 + $0x520] ss:$16 sps:$4 sm:$0xff]   ;;  %v8311_v62 = vld [vmem:[#allocation11 + $0x528] ss:$16 sps:$4 sm:$0xff]  }
 0x23c   : > { %3277 = vmatprep.subr.bf16.mxu0 %v8232_v37  ;;  %3363 = vmatprep.subr.bf16.mxu1 %v8235_v38  ;;  %v8316_v37 = vld [vmem:[#allocation11 + $0x544] ss:$16 sps:$4 sm:$0xff]   ;;  %v8319_v38 = vld [vmem:[#allocation11 + $0x54c] ss:$16 sps:$4 sm:$0xff]  }
 0x23f   : > { %3278 = vmatpush1.bf16.msra.mxu0 %v8230_v39  ;;  %3364 = vmatpush1.bf16.msra.mxu1 %v8233_v40  ;;  %v8314_v39 = vld [vmem:[#allocation11 + $0x540] ss:$16 sps:$4 sm:$0xff]   ;;  %v8317_v40 = vld [vmem:[#allocation11 + $0x548] ss:$16 sps:$4 sm:$0xff]  }
 0x240   : > { %3279 = vmatprep.subr.bf16.mxu0 %v8238_v41  ;;  %3365 = vmatprep.subr.bf16.mxu1 %v8241_v42  ;;  %v8322_v41 = vld [vmem:[#allocation11 + $0x564] ss:$16 sps:$4 sm:$0xff]   ;;  %v8325_v42 = vld [vmem:[#allocation11 + $0x56c] ss:$16 sps:$4 sm:$0xff]  }
 0x243   : > { %3280 = vmatpush1.bf16.msra.mxu0 %v8236_v44  ;;  %3366 = vmatpush1.bf16.msra.mxu1 %v8239_v45  ;;  %v8320_v44 = vld [vmem:[#allocation11 + $0x560] ss:$16 sps:$4 sm:$0xff]   ;;  %v8323_v45 = vld [vmem:[#allocation11 + $0x568] ss:$16 sps:$4 sm:$0xff]  }
 0x244   : > { %3281 = vmatprep.subr.bf16.mxu0 %v8244_v46  ;;  %3367 = vmatprep.subr.bf16.mxu1 %v8247_v47  ;;  %v8328_v46 = vld [vmem:[#allocation11 + $0x584] ss:$16 sps:$4 sm:$0xff]   ;;  %v8331_v47 = vld [vmem:[#allocation11 + $0x58c] ss:$16 sps:$4 sm:$0xff]  }
 0x247   : > { %3282 = vmatpush1.bf16.msra.mxu0 %v8242_v50  ;;  %3368 = vmatpush1.bf16.msra.mxu1 %v8245_v51  ;;  %v8332_v50 = vld [vmem:[#allocation11 + $0x5a0] ss:$16 sps:$4 sm:$0xff]   ;;  %v8334_v51 = vld [vmem:[#allocation11 + $0x5a4] ss:$16 sps:$4 sm:$0xff]  }
 0x248   : > { %3283 = vmatprep.subr.bf16.mxu0 %v8250_v52  ;;  %3369 = vmatprep.subr.bf16.mxu1 %v8253_v8  ;;  %v8335_v52 = vld [vmem:[#allocation11 + $0x5a8] ss:$16 sps:$4 sm:$0xff]   ;;  %v8337_v8 = vld [vmem:[#allocation11 + $0x5ac] ss:$16 sps:$4 sm:$0xff]  }
 0x24b   : > { %3284 = vmatpush1.bf16.msra.mxu0 %v8248_v55  ;;  %3370 = vmatpush1.bf16.msra.mxu1 %v8251_v17  ;;  %v8338_v55 = vld [vmem:[#allocation11 + $0x5c0] ss:$16 sps:$4 sm:$0xff]   ;;  %v8341_v17 = vld [vmem:[#allocation11 + $0x5c8] ss:$16 sps:$4 sm:$0xff]  }
 0x24c   : > { %4479 = vmatprep.subr.bf16.mxu0 %v8256_v56  ;;  %4565 = vmatprep.subr.bf16.mxu1 %v8259_v57  ;;  %v8346_v56 = vld [vmem:[#allocation11 + $0x5e4] ss:$16 sps:$4 sm:$0xff]   ;;  %v8349_v57 = vld [vmem:[#allocation11 + $0x5ec] ss:$16 sps:$4 sm:$0xff]  }
 0x24e   : > { %3286 = vmatmul.mubr.bf16.vlgmr.msra.gmra.mrb[0].mxu0 %v2562_v43  ;;  %3372 = vmatmul.mubr.bf16.vlgmr.msra.gmra.mrb[0].mxu1 %v2562_v43 }
 0x24f   : > { %4480 = vmatpush1.bf16.msra.mxu0 %v8254_v60  ;;  %4566 = vmatpush1.bf16.msra.mxu1 %v8257_v61  ;;  %v8352_v60 = vld [vmem:[#allocation11 + $0x604] ss:$16 sps:$4 sm:$0xff]   ;;  %v8355_v61 = vld [vmem:[#allocation11 + $0x60c] ss:$16 sps:$4 sm:$0xff]  }
 0x250   : > { %4481 = vmatprep.subr.bf16.mxu0 %v8262_v63  ;;  %4567 = vmatprep.subr.bf16.mxu1 %v8265_v0  ;;  %v3393_v63 = vshrl.u32 %v376_v15, 7 }
 0x252   : > { %v9493_v0 = vsub.s32 0, %v3393_v63  ;;  %v9495_v43 = vsub.s32 2, %v3393_v63 }
 0x253   : > { %4482 = vmatpush1.bf16.msra.mxu0 %v8260_v1  ;;  %4568 = vmatpush1.bf16.msra.mxu1 %v8263_v2  ;;  %v3390_v1 = vld [vmem:[#allocation8] sm:$0xf]  ;;  %v9497_v2 = vsub.s32 1, %v3393_v63 }
 0x254   : > { %4483 = vmatprep.subr.bf16.mxu0 %v8268_v3  ;;  %4569 = vmatprep.subr.bf16.mxu1 %v8271_v4  ;;  %v9499_v3 = vsub.s32 3, %v3393_v63  ;;  %v3420_v4 = vld [vmem:[#allocation9] sm:$0xf] }
 0x255   : > { %v3425_v15 = vrot.slane %v3420_v4, %v9493_v0 }
 0x257   : > { %4484 = vmatpush1.bf16.msra.mxu0 %v8266_v5  ;;  %4570 = vmatpush1.bf16.msra.mxu1 %v8269_v6  ;;  %v3395_v5 = vrot.slane %v3390_v1, %v9493_v0  ;;  %v3403_v6 = vrot.slane %v3390_v1, %v9495_v43 }
 0x258   : > { %4485 = vmatprep.subr.bf16.mxu0 %v8274_v7  ;;  %4571 = vmatprep.subr.bf16.mxu1 %v8277_v9  ;;  %v3399_v7 = vrot.slane %v3390_v1, %v9497_v2  ;;  %v3407_v9 = vrot.slane %v3390_v1, %v9499_v3 }
 0x25b   : > { %4486 = vmatpush1.bf16.msra.mxu0 %v8272_v10  ;;  %4572 = vmatpush1.bf16.msra.mxu1 %v8275_v11  ;;  %v3433_v10 = vrot.slane %v3420_v4, %v9495_v43 }
 0x25c   : > { %4487 = vmatprep.subr.bf16.mxu0 %v8280_v12  ;;  %4573 = vmatprep.subr.bf16.mxu1 %v8283_v13  ;;  %v3429_v13 = vrot.slane %v3420_v4, %v9497_v2 }
 0x25f   : > { %4488 = vmatpush1.bf16.msra.mxu0 %v8278_v14  ;;  %4574 = vmatpush1.bf16.msra.mxu1 %v8281_v16  ;;  %v3437_v14 = vrot.slane %v3420_v4, %v9499_v3 }
 0x260   : > { %4489 = vmatprep.subr.bf16.mxu0 %v8286_v18  ;;  %4575 = vmatprep.subr.bf16.mxu1 %v8289_v19 }
 0x263   : > { %4490 = vmatpush1.bf16.msra.mxu0 %v8284_v20  ;;  %4576 = vmatpush1.bf16.msra.mxu1 %v8287_v21 }
 0x264   : > { %4491 = vmatprep.subr.bf16.mxu0 %v8292_v22  ;;  %4577 = vmatprep.subr.bf16.mxu1 %v8295_v23 }
 0x267   : > { %4492 = vmatpush1.bf16.msra.mxu0 %v8290_v24  ;;  %4578 = vmatpush1.bf16.msra.mxu1 %v8293_v25 }
 0x268   : > { %4493 = vmatprep.subr.bf16.mxu0 %v8298_v26  ;;  %4579 = vmatprep.subr.bf16.mxu1 %v8301_v27 }
 0x26b   : > { %4494 = vmatpush1.bf16.msra.mxu0 %v8296_v28  ;;  %4580 = vmatpush1.bf16.msra.mxu1 %v8299_v29 }
 0x26c   : > { %4495 = vmatprep.subr.bf16.mxu0 %v8304_v30  ;;  %4581 = vmatprep.subr.bf16.mxu1 %v8307_v31 }
 0x26f   : > { %4496 = vmatpush1.bf16.msra.mxu0 %v8302_v32  ;;  %4582 = vmatpush1.bf16.msra.mxu1 %v8305_v33 }
 0x270   : > { %4497 = vmatprep.subr.bf16.mxu0 %v8310_v34  ;;  %4583 = vmatprep.subr.bf16.mxu1 %v8313_v35 }
 0x273   : > { %4498 = vmatpush1.bf16.msra.mxu0 %v8308_v36  ;;  %4584 = vmatpush1.bf16.msra.mxu1 %v8311_v62 }
 0x274   : > { %4499 = vmatprep.subr.bf16.mxu0 %v8316_v37  ;;  %4585 = vmatprep.subr.bf16.mxu1 %v8319_v38 }
 0x277   : > { %4500 = vmatpush1.bf16.msra.mxu0 %v8314_v39  ;;  %4586 = vmatpush1.bf16.msra.mxu1 %v8317_v40 }
 0x278   : > { %4501 = vmatprep.subr.bf16.mxu0 %v8322_v41  ;;  %4587 = vmatprep.subr.bf16.mxu1 %v8325_v42 }
 0x27b   : > { %4502 = vmatpush1.bf16.msra.mxu0 %v8320_v44  ;;  %4588 = vmatpush1.bf16.msra.mxu1 %v8323_v45 }
 0x27c   : > { %4503 = vmatprep.subr.bf16.mxu0 %v8328_v46  ;;  %4589 = vmatprep.subr.bf16.mxu1 %v8331_v47 }
 0x27f   : > { %4504 = vmatpush1.bf16.msra.mxu0 %v8326_v48  ;;  %4590 = vmatpush1.bf16.msra.mxu1 %v8329_v49 }
 0x280   : > { %4505 = vmatprep.subr.bf16.mxu0 %v8334_v51  ;;  %4591 = vmatprep.subr.bf16.mxu1 %v8337_v8 }
 0x283   : > { %4506 = vmatpush1.bf16.msra.mxu0 %v8332_v50  ;;  %4592 = vmatpush1.bf16.msra.mxu1 %v8335_v52 }
 0x284   : > { %4507 = vmatprep.subr.bf16.mxu0 %v8340_v53  ;;  %4593 = vmatprep.subr.bf16.mxu1 %v8343_v54 }
 0x287   : > { %4508 = vmatpush1.bf16.msra.mxu0 %v8338_v55  ;;  %4594 = vmatpush1.bf16.msra.mxu1 %v8341_v17 }
 0x288   : > { %4509 = vmatprep.subr.bf16.mxu0 %v8346_v56  ;;  %4595 = vmatprep.subr.bf16.mxu1 %v8349_v57 }
 0x28b   : > { %4510 = vmatpush1.bf16.msra.mxu0 %v8344_v58  ;;  %4596 = vmatpush1.bf16.msra.mxu1 %v8347_v59 }
 0x28c   : > { %4522 = vmatprep.subr.bf16.mxu0 %v8352_v60  ;;  %4608 = vmatprep.subr.bf16.mxu1 %v8355_v61 }
 0x321   : > { %v3287_v11 = vpop.f32.mrb[0].mxu0  ;;  %v3373_v12 = vpop.f32.mrb[0].mxu1 }
 0x322   : > { %v3412_v16 = vmul.f32 %v3395_v5, %v3287_v11  ;;  %v3414_v18 = vmul.f32 %v3403_v6, %v3373_v12  ;;  %v3289_v19 = vpop.f32.mrb[1].mxu0  ;;  %v3375_v20 = vpop.f32.mrb[1].mxu1 }
 0x323   : > { %v3413_v21 = vmul.f32 %v3399_v7, %v3289_v19  ;;  %v3415_v22 = vmul.f32 %v3407_v9, %v3375_v20  ;;  %v3291_v23 = vpop.f32.mrb[2].mxu0  ;;  %v3377_v24 = vpop.f32.mrb[2].mxu1 }
 0x324   : > { %v3442_v25 = vadd.f32 %v3425_v15, %v3412_v16  ;;  %v3444_v26 = vadd.f32 %v3433_v10, %v3414_v18  ;;  %v3416_v27 = vmul.f32 %v3395_v5, %v3291_v23  ;;  %v3418_v28 = vmul.f32 %v3403_v6, %v3377_v24  ;;  %v3293_v29 = vpop.f32.mrb[3].mxu0  ;;  %v3379_v30 = vpop.f32.mrb[3].mxu1 }
 0x325   : > { %v3443_v31 = vadd.f32 %v3429_v13, %v3413_v21  ;;  %v3445_v32 = vadd.f32 %v3437_v14, %v3415_v22  ;;  %v3417_v33 = vmul.f32 %v3399_v7, %v3293_v29  ;;  %v3419_v34 = vmul.f32 %v3407_v9, %v3379_v30 }
 0x326   : > { %v3450_v35 = vmax.f32 %v3442_v25, 0.0  ;;  %v3452_v36 = vmax.f32 %v3444_v26, 0.0  ;;  %v3446_v62 = vadd.f32 %v3425_v15, %v3416_v27  ;;  %v3448_v37 = vadd.f32 %v3433_v10, %v3418_v28  ;;  %v8350_v27 = vld [vmem:[#allocation11 + $0x600] ss:$16 sps:$4 sm:$0xff]   ;;  %v8353_v28 = vld [vmem:[#allocation11 + $0x608] ss:$16 sps:$4 sm:$0xff]  }
 0x327   : > { %v3451_v38 = vmax.f32 %v3443_v31, 0.0  ;;  %v3453_v39 = vmax.f32 %v3445_v32, 0.0  ;;  %v3447_v40 = vadd.f32 %v3429_v13, %v3417_v33  ;;  %v3449_v41 = vadd.f32 %v3437_v14, %v3419_v34  ;;  %v8358_v33 = vld [vmem:[#allocation11 + $0x624] ss:$16 sps:$4 sm:$0xff]   ;;  %v8361_v34 = vld [vmem:[#allocation11 + $0x62c] ss:$16 sps:$4 sm:$0xff]  }
 0x328   : > { %v3466_v42 = vrot.slane %v3450_v35, 7  ;;  %v3468_v44 = vrot.slane %v3452_v36, 7  ;;  %v3454_v45 = vmax.f32 %v3446_v62, 0.0  ;;  %v3456_v46 = vmax.f32 %v3448_v37, 0.0  ;;  %v8356_v36 = vld [vmem:[#allocation11 + $0x620] ss:$16 sps:$4 sm:$0xff]  }
 0x329   : > { %v3467_v47 = vrot.slane %v3451_v38, 7  ;;  %v3469_v48 = vrot.slane %v3453_v39, 7  ;;  %v3455_v49 = vmax.f32 %v3447_v40, 0.0  ;;  %v3457_v50 = vmax.f32 %v3449_v41, 0.0  ;;  %v8359_v62 = vld [vmem:[#allocation11 + $0x628] ss:$16 sps:$4 sm:$0xff]  }
 0x32a   : > { %3490 = vst [vmem:[#allocation2] sm:$0xfe] %v3466_v42  ;;  %3492 = vst [vmem:[#allocation2 + $0x10] sm:$0xfe] %v3468_v44  ;;  %v3470_v51 = vrot.slane %v3454_v45, 7  ;;  %v3474_v52 = vrot.slane %v3456_v46, 7 }
 0x32b   : > { %3491 = vst [vmem:[#allocation2 + $0x8] sm:$0xfe] %v3467_v47  ;;  %3493 = vst [vmem:[#allocation2 + $0x18] sm:$0xfe] %v3469_v48  ;;  %v3472_v8 = vrot.slane %v3455_v49, 7  ;;  %v3476_v53 = vrot.slane %v3457_v50, 7 }
 0x32c   : > { %v9510_v54 = vsel %vm401_vm0, %v3466_v42, %v3470_v51  ;;  %3498 = vst [vmem:[#allocation2 + $0x40] sm:$0x1] %v3470_v51  ;;  %v9513_v55 = vsel %vm401_vm0, %v3468_v44, %v3474_v52  ;;  %3500 = vst [vmem:[#allocation2 + $0x50] sm:$0x1] %v3474_v52  ;;  %v8364_v37 = vld [vmem:[#allocation11 + $0x644] ss:$16 sps:$4 sm:$0xff]  }
 0x32d   : > { %3494 = vst [vmem:[#allocation2 + $0x20] sm:$0xff] %v9510_v54  ;;  %3496 = vst [vmem:[#allocation2 + $0x30] sm:$0xff] %v9513_v55  ;;  %v9518_v17 = vsel %vm401_vm0, %v3467_v47, %v3472_v8  ;;  %v9521_v56 = vsel %vm401_vm0, %v3469_v48, %v3476_v53  ;;  %v8367_v38 = vld [vmem:[#allocation11 + $0x64c] ss:$16 sps:$4 sm:$0xff]   ;;  %v8362_v39 = vld [vmem:[#allocation11 + $0x640] ss:$16 sps:$4 sm:$0xff]  }
 0x32e   : > { %3499 = vst [vmem:[#allocation2 + $0x48] sm:$0x1] %v3472_v8  ;;  %3501 = vst [vmem:[#allocation2 + $0x58] sm:$0x1] %v3476_v53  ;;  %v8365_v40 = vld [vmem:[#allocation11 + $0x648] ss:$16 sps:$4 sm:$0xff]  }
 0x32f   : > { %3497 = vst [vmem:[#allocation2 + $0x38] sm:$0xff] %v9521_v56  ;;  %v8370_v41 = vld [vmem:[#allocation11 + $0x664] ss:$16 sps:$4 sm:$0xff]   ;;  %v8373_v42 = vld [vmem:[#allocation11 + $0x66c] ss:$16 sps:$4 sm:$0xff]  }
 0x330   : > { %v8368_v44 = vld [vmem:[#allocation11 + $0x660] ss:$16 sps:$4 sm:$0xff]   ;;  %v8371_v45 = vld [vmem:[#allocation11 + $0x668] ss:$16 sps:$4 sm:$0xff]   ;;  %v8376_v46 = vld [vmem:[#allocation11 + $0x684] ss:$16 sps:$4 sm:$0xff]  }
 0x331   : > { %v3642_v57 = vld [vmem:[#allocation2] sm:$0xfe]  ;;  %v8374_v48 = vld [vmem:[#allocation11 + $0x680] ss:$16 sps:$4 sm:$0xff]   ;;  %v8382_v50 = vld [vmem:[#allocation11 + $0x6a4] ss:$16 sps:$4 sm:$0xff]  }
 0x332   : > { %v3643_v58 = vld [vmem:[#allocation2 + $0x8] sm:$0xfe]  ;;  %v3650_v59 = vpack.c.bf16 %v9510_v54, %v3642_v57  ;;  %v3645_v60 = vld [vmem:[#allocation2 + $0x18] sm:$0xfe]  ;;  %v8379_v47 = vld [vmem:[#allocation11 + $0x68c] ss:$16 sps:$4 sm:$0xff]  }
 0x333   : > { %v3651_v61 = vpack.c.bf16 %v9518_v17, %v3643_v58  ;;  %v3646_v63 = vld [vmem:[#allocation2 + $0x40] sm:$0x1]  ;;  %v3653_v1 = vpack.c.bf16 %v9521_v56, %v3645_v60  ;;  %v8385_v51 = vld [vmem:[#allocation11 + $0x6ac] ss:$16 sps:$4 sm:$0xff]   ;;  %v8380_v52 = vld [vmem:[#allocation11 + $0x6a0] ss:$16 sps:$4 sm:$0xff]  }
 0x334   : > { %v3654_v5 = vpack.c.bf16 %v3646_v63, %v3646_v63  ;;  %v3790_v6 = vshll.u32 %v3650_v59, 16  ;;  %v3788_v11 = vshrl.u32 %v3650_v59, 16  ;;  %v8377_v49 = vld [vmem:[#allocation11 + $0x688] ss:$16 sps:$4 sm:$0xff]   ;;  %v8388_v53 = vld [vmem:[#allocation11 + $0x6c4] ss:$16 sps:$4 sm:$0xff]  }
 0x335   : > { %v3647_v4 = vld [vmem:[#allocation2 + $0x48] sm:$0x1]  ;;  %v3649_v7 = vld [vmem:[#allocation2 + $0x58] sm:$0x1]  ;;  %v3802_v15 = vshll.u32 %v3651_v61, 16  ;;  %v3826_v14 = vshll.u32 %v3653_v1, 16 }
 0x336   : > { %v3655_v9 = vpack.c.bf16 %v3647_v4, %v3647_v4  ;;  %v3657_v10 = vpack.c.bf16 %v3649_v7, %v3649_v7  ;;  %v3792_v12 = vrot.slane %v3790_v6, 1  ;;  %v3795_v13 = vshll.u32 %v3654_v5, 16  ;;  %v8383_v8 = vld [vmem:[#allocation11 + $0x6a8] ss:$16 sps:$4 sm:$0xff]   ;;  %v8391_v57 = vld [vmem:[#allocation11 + $0x6cc] ss:$16 sps:$4 sm:$0xff]  }
 0x337   : > { %v3800_v16 = vshrl.u32 %v3651_v61, 16  ;;  %v3804_v18 = vrot.slane %v3802_v15, 1  ;;  %v3824_v23 = vshrl.u32 %v3653_v1, 16  ;;  %v3828_v24 = vrot.slane %v3826_v14, 1  ;;  %v8386_v58 = vld [vmem:[#allocation11 + $0x6c0] ss:$16 sps:$4 sm:$0xff]  }
 0x338   : > { %v3807_v19 = vshll.u32 %v3655_v9, 16  ;;  %v3831_v20 = vshll.u32 %v3657_v10, 16  ;;  %v3793_v21 = vor.u32 %v3792_v12, %v3788_v11  ;;  %v3797_v22 = vrot.slane %v3795_v13, 1  ;;  %v8389_v59 = vld [vmem:[#allocation11 + $0x6c8] ss:$16 sps:$4 sm:$0xff]  }
 0x339   : > { %v3805_v25 = vor.u32 %v3804_v18, %v3800_v16  ;;  %v3829_v29 = vor.u32 %v3828_v24, %v3824_v23  ;;  %v8394_v60 = vld [vmem:[#allocation11 + $0x6e4] ss:$16 sps:$4 sm:$0xff]   ;;  %v8397_v61 = vld [vmem:[#allocation11 + $0x6ec] ss:$16 sps:$4 sm:$0xff]   ;;  %v8392_v63 = vld [vmem:[#allocation11 + $0x6e0] ss:$16 sps:$4 sm:$0xff]  }
 0x33a   : > { %v3809_v26 = vrot.slane %v3807_v19, 1  ;;  %v3833_v30 = vrot.slane %v3831_v20, 1  ;;  %v3798_v32 = vsel %vm723_vm1, %v3793_v21, %v3797_v22  ;;  %v8395_v1 = vld [vmem:[#allocation11 + $0x6e8] ss:$16 sps:$4 sm:$0xff]   ;;  %v8400_v4 = vld [vmem:[#allocation11 + $0x704] ss:$16 sps:$4 sm:$0xff]  }
 0x33b   : > { %v8403_v5 = vld [vmem:[#allocation11 + $0x70c] ss:$16 sps:$4 sm:$0xff]   ;;  %v8398_v6 = vld [vmem:[#allocation11 + $0x700] ss:$16 sps:$4 sm:$0xff]   ;;  %v8401_v7 = vld [vmem:[#allocation11 + $0x708] ss:$16 sps:$4 sm:$0xff]  }
 0x33c   : > { %v3810_v31 = vsel %vm723_vm1, %v3805_v25, %v3809_v26  ;;  %v3834_v35 = vsel %vm723_vm1, %v3829_v29, %v3833_v30  ;;  %v8406_v9 = vld [vmem:[#allocation11 + $0x724] ss:$16 sps:$4 sm:$0xff]   ;;  %v8409_v15 = vld [vmem:[#allocation11 + $0x72c] ss:$16 sps:$4 sm:$0xff]   ;;  %v8404_v10 = vld [vmem:[#allocation11 + $0x720] ss:$16 sps:$4 sm:$0xff]  }
 0x33d   : > { %4511 = vmatprep.mubr.bf16.mxu0 %v3810_v31  ;;  %4597 = vmatprep.mubr.bf16.mxu1 %v3810_v31  ;;  %v8407_v11 = vld [vmem:[#allocation11 + $0x728] ss:$16 sps:$4 sm:$0xff]   ;;  %v8412_v12 = vld [vmem:[#allocation11 + $0x744] ss:$16 sps:$4 sm:$0xff]   ;;  %v8415_v13 = vld [vmem:[#allocation11 + $0x74c] ss:$16 sps:$4 sm:$0xff]  }
 0x33e   : > { %4512 = vmatmul.mubr.bf16.vlgmr.msra.gmra.mrb[4].mxu0 %v3798_v32  ;;  %4598 = vmatmul.mubr.bf16.vlgmr.msra.gmra.mrb[4].mxu1 %v3798_v32  ;;  %v8410_v14 = vld [vmem:[#allocation11 + $0x740] ss:$16 sps:$4 sm:$0xff]   ;;  %v8413_v16 = vld [vmem:[#allocation11 + $0x748] ss:$16 sps:$4 sm:$0xff]   ;;  %v8418_v18 = vld [vmem:[#allocation11 + $0x764] ss:$16 sps:$4 sm:$0xff]  }
 0x33f   : > { %4523 = vmatpush1.bf16.msra.mxu0 %v8350_v27  ;;  %4609 = vmatpush1.bf16.msra.mxu1 %v8353_v28  ;;  %v8421_v19 = vld [vmem:[#allocation11 + $0x76c] ss:$16 sps:$4 sm:$0xff]   ;;  %v8416_v20 = vld [vmem:[#allocation11 + $0x760] ss:$16 sps:$4 sm:$0xff]   ;;  %v8419_v21 = vld [vmem:[#allocation11 + $0x768] ss:$16 sps:$4 sm:$0xff]  }
 0x340   : > { %4554 = vmatprep.mubr.bf16.mxu0 %v3834_v35  ;;  %4640 = vmatprep.mubr.bf16.mxu1 %v3834_v35  ;;  %v8424_v22 = vld [vmem:[#allocation11 + $0x784] ss:$16 sps:$4 sm:$0xff]   ;;  %v8427_v23 = vld [vmem:[#allocation11 + $0x78c] ss:$16 sps:$4 sm:$0xff]   ;;  %v8422_v25 = vld [vmem:[#allocation11 + $0x780] ss:$16 sps:$4 sm:$0xff]  }
 0x341   : > { %4524 = vmatprep.subr.bf16.mxu0 %v8358_v33  ;;  %4610 = vmatprep.subr.bf16.mxu1 %v8361_v34  ;;  %v3644_v24 = vld [vmem:[#allocation2 + $0x10] sm:$0xfe]  ;;  %v8430_v27 = vld [vmem:[#allocation11 + $0x7a4] ss:$16 sps:$4 sm:$0xff]   ;;  %v3648_v30 = vld [vmem:[#allocation2 + $0x50] sm:$0x1] }
 0x342   : > { %v8425_v26 = vld [vmem:[#allocation11 + $0x788] ss:$16 sps:$4 sm:$0xff]   ;;  %v8433_v28 = vld [vmem:[#allocation11 + $0x7ac] ss:$16 sps:$4 sm:$0xff]   ;;  %v3652_v29 = vpack.c.bf16 %v9513_v55, %v3644_v24  ;;  %v8428_v31 = vld [vmem:[#allocation11 + $0x7a0] ss:$16 sps:$4 sm:$0xff]   ;;  %v3656_v35 = vpack.c.bf16 %v3648_v30, %v3648_v30 }
 0x343   : > { %4525 = vmatpush1.bf16.msra.mxu0 %v8356_v36  ;;  %4611 = vmatpush1.bf16.msra.mxu1 %v8359_v62  ;;  %v8431_v32 = vld [vmem:[#allocation11 + $0x7a8] ss:$16 sps:$4 sm:$0xff]   ;;  %v8436_v33 = vld [vmem:[#allocation11 + $0x7c4] ss:$16 sps:$4 sm:$0xff]   ;;  %v8439_v34 = vld [vmem:[#allocation11 + $0x7cc] ss:$16 sps:$4 sm:$0xff]  }
 0x344   : > { %4526 = vmatprep.subr.bf16.mxu0 %v8364_v37  ;;  %4612 = vmatprep.subr.bf16.mxu1 %v8367_v38  ;;  %v3814_v36 = vshll.u32 %v3652_v29, 16  ;;  %v8434_v62 = vld [vmem:[#allocation11 + $0x7c0] ss:$16 sps:$4 sm:$0xff]   ;;  %v8437_v37 = vld [vmem:[#allocation11 + $0x7c8] ss:$16 sps:$4 sm:$0xff]  }
 0x345   : > { %v8442_v38 = vld [vmem:[#allocation11 + $0x7e4] ss:$16 sps:$4 sm:$0xff]   ;;  %v8493_v24 = vld [vmem:[#allocation11 + $0xec] ss:$16 sps:$4 sm:$0xff]   ;;  %v8497_v30 = vld [vmem:[#allocation11 + $0x108] ss:$16 sps:$4 sm:$0xff]  }
 0x347   : > { %4527 = vmatpush1.bf16.msra.mxu0 %v8362_v39  ;;  %4613 = vmatpush1.bf16.msra.mxu1 %v8365_v40  ;;  %v8445_v39 = vld [vmem:[#allocation11 + $0x7ec] ss:$16 sps:$4 sm:$0xff]   ;;  %v3816_v40 = vrot.slane %v3814_v36, 1 }
 0x348   : > { %4528 = vmatprep.subr.bf16.mxu0 %v8370_v41  ;;  %4614 = vmatprep.subr.bf16.mxu1 %v8373_v42  ;;  %v3819_v41 = vshll.u32 %v3656_v35, 16  ;;  %v8440_v42 = vld [vmem:[#allocation11 + $0x7e0] ss:$16 sps:$4 sm:$0xff]   ;;  %v8508_v35 = vld [vmem:[#allocation11 + $0x144] ss:$16 sps:$4 sm:$0xff]  }
 0x349   : > { %v8511_v36 = vld [vmem:[#allocation11 + $0x14c] ss:$16 sps:$4 sm:$0xff]  }
 0x34b   : > { %4529 = vmatpush1.bf16.msra.mxu0 %v8368_v44  ;;  %4615 = vmatpush1.bf16.msra.mxu1 %v8371_v45  ;;  %v8443_v44 = vld [vmem:[#allocation11 + $0x7e8] ss:$16 sps:$4 sm:$0xff]   ;;  %v3812_v45 = vshrl.u32 %v3652_v29, 16  ;;  %v8494_v29 = vld [vmem:[#allocation11 + $0x100] ss:$16 sps:$4 sm:$0xff]  }
 0x34c   : > { %4530 = vmatprep.subr.bf16.mxu0 %v8376_v46  ;;  %4616 = vmatprep.subr.bf16.mxu1 %v8379_v47  ;;  %v8448_v46 = vld [vmem:[#allocation11 + $0x4] ss:$16 sps:$4 sm:$0xff]   ;;  %v8451_v47 = vld [vmem:[#allocation11 + $0xc] ss:$16 sps:$4 sm:$0xff]  }
 0x34f   : > { %4531 = vmatpush1.bf16.msra.mxu0 %v8374_v48  ;;  %4617 = vmatpush1.bf16.msra.mxu1 %v8377_v49  ;;  %v3817_v48 = vor.u32 %v3816_v40, %v3812_v45  ;;  %v3821_v49 = vrot.slane %v3819_v41, 1  ;;  %v8512_v40 = vld [vmem:[#allocation11 + $0x160] ss:$16 sps:$4 sm:$0xff]   ;;  %v8515_v41 = vld [vmem:[#allocation11 + $0x168] ss:$16 sps:$4 sm:$0xff]  }
 0x350   : > { %4532 = vmatprep.subr.bf16.mxu0 %v8382_v50  ;;  %4618 = vmatprep.subr.bf16.mxu1 %v8385_v51  ;;  %v3503_v50 = vld [vmem:[#allocation2 + $0x8] sm:$0xff] }
 0x351   : > { %v8446_v51 = vld [vmem:[#allocation11] ss:$16 sps:$4 sm:$0xff]  }
 0x352   : > { %v8518_v45 = vld [vmem:[#allocation11 + $0x180] ss:$16 sps:$4 sm:$0xff]  }
 0x353   : > { %4533 = vmatpush1.bf16.msra.mxu0 %v8380_v52  ;;  %4619 = vmatpush1.bf16.msra.mxu1 %v8383_v8  ;;  %v8449_v52 = vld [vmem:[#allocation11 + $0x8] ss:$16 sps:$4 sm:$0xff]   ;;  %v3822_v8 = vsel %vm723_vm1, %v3817_v48, %v3821_v49  ;;  %v8529_v48 = vld [vmem:[#allocation11 + $0x1ac] ss:$16 sps:$4 sm:$0xff]   ;;  %v8524_v49 = vld [vmem:[#allocation11 + $0x1a0] ss:$16 sps:$4 sm:$0xff]  }
 0x354   : > { %4534 = vmatprep.subr.bf16.mxu0 %v8388_v53  ;;  %4620 = vmatprep.subr.bf16.mxu1 %v8391_v57  ;;  %v3511_v53 = vpack.c.bf16 %v9518_v17, %v3503_v50  ;;  %v8454_v57 = vld [vmem:[#allocation11 + $0x24] ss:$16 sps:$4 sm:$0xff]   ;;  %v8527_v50 = vld [vmem:[#allocation11 + $0x1a8] ss:$16 sps:$4 sm:$0xff]  }
 0x357   : > { %4535 = vmatpush1.bf16.msra.mxu0 %v8386_v58  ;;  %4621 = vmatpush1.bf16.msra.mxu1 %v8389_v59  ;;  %v8457_v58 = vld [vmem:[#allocation11 + $0x2c] ss:$16 sps:$4 sm:$0xff]   ;;  %v8452_v59 = vld [vmem:[#allocation11 + $0x20] ss:$16 sps:$4 sm:$0xff]  }
 0x358   : > { %4536 = vmatprep.subr.bf16.mxu0 %v8394_v60  ;;  %4622 = vmatprep.subr.bf16.mxu1 %v8397_v61  ;;  %v8455_v60 = vld [vmem:[#allocation11 + $0x28] ss:$16 sps:$4 sm:$0xff]   ;;  %v8460_v61 = vld [vmem:[#allocation11 + $0x44] ss:$16 sps:$4 sm:$0xff]  }
 0x35b   : > { %4537 = vmatpush1.bf16.msra.mxu0 %v8392_v63  ;;  %4623 = vmatpush1.bf16.msra.mxu1 %v8395_v1  ;;  %v8463_v63 = vld [vmem:[#allocation11 + $0x4c] ss:$16 sps:$4 sm:$0xff]   ;;  %v8458_v1 = vld [vmem:[#allocation11 + $0x40] ss:$16 sps:$4 sm:$0xff]  }
 0x35c   : > { %4538 = vmatprep.subr.bf16.mxu0 %v8400_v4  ;;  %4624 = vmatprep.subr.bf16.mxu1 %v8403_v5  ;;  %v8461_v4 = vld [vmem:[#allocation11 + $0x48] ss:$16 sps:$4 sm:$0xff]   ;;  %v8466_v5 = vld [vmem:[#allocation11 + $0x64] ss:$16 sps:$4 sm:$0xff]  }
 0x35f   : > { %4539 = vmatpush1.bf16.msra.mxu0 %v8398_v6  ;;  %4625 = vmatpush1.bf16.msra.mxu1 %v8401_v7  ;;  %v8469_v6 = vld [vmem:[#allocation11 + $0x6c] ss:$16 sps:$4 sm:$0xff]   ;;  %v8464_v7 = vld [vmem:[#allocation11 + $0x60] ss:$16 sps:$4 sm:$0xff]  }
 0x360   : > { %4540 = vmatprep.subr.bf16.mxu0 %v8406_v9  ;;  %4626 = vmatprep.subr.bf16.mxu1 %v8409_v15  ;;  %v8467_v9 = vld [vmem:[#allocation11 + $0x68] ss:$16 sps:$4 sm:$0xff]   ;;  %v8472_v15 = vld [vmem:[#allocation11 + $0x84] ss:$16 sps:$4 sm:$0xff]  }
 0x363   : > { %4541 = vmatpush1.bf16.msra.mxu0 %v8404_v10  ;;  %4627 = vmatpush1.bf16.msra.mxu1 %v8407_v11  ;;  %v8475_v10 = vld [vmem:[#allocation11 + $0x8c] ss:$16 sps:$4 sm:$0xff]   ;;  %v8470_v11 = vld [vmem:[#allocation11 + $0x80] ss:$16 sps:$4 sm:$0xff]  }
 0x364   : > { %4542 = vmatprep.subr.bf16.mxu0 %v8412_v12  ;;  %4628 = vmatprep.subr.bf16.mxu1 %v8415_v13  ;;  %v8473_v12 = vld [vmem:[#allocation11 + $0x88] ss:$16 sps:$4 sm:$0xff]   ;;  %v8478_v13 = vld [vmem:[#allocation11 + $0xa4] ss:$16 sps:$4 sm:$0xff]  }
 0x367   : > { %4543 = vmatpush1.bf16.msra.mxu0 %v8410_v14  ;;  %4629 = vmatpush1.bf16.msra.mxu1 %v8413_v16  ;;  %v8481_v14 = vld [vmem:[#allocation11 + $0xac] ss:$16 sps:$4 sm:$0xff]   ;;  %v8476_v16 = vld [vmem:[#allocation11 + $0xa0] ss:$16 sps:$4 sm:$0xff]  }
 0x368   : > { %4544 = vmatprep.subr.bf16.mxu0 %v8418_v18  ;;  %4630 = vmatprep.subr.bf16.mxu1 %v8421_v19  ;;  %v8479_v18 = vld [vmem:[#allocation11 + $0xa8] ss:$16 sps:$4 sm:$0xff]   ;;  %v8484_v19 = vld [vmem:[#allocation11 + $0xc4] ss:$16 sps:$4 sm:$0xff]  }
 0x36b   : > { %4545 = vmatpush1.bf16.msra.mxu0 %v8416_v20  ;;  %4631 = vmatpush1.bf16.msra.mxu1 %v8419_v21  ;;  %v8487_v20 = vld [vmem:[#allocation11 + $0xcc] ss:$16 sps:$4 sm:$0xff]   ;;  %v8482_v21 = vld [vmem:[#allocation11 + $0xc0] ss:$16 sps:$4 sm:$0xff]  }
 0x36c   : > { %4546 = vmatprep.subr.bf16.mxu0 %v8424_v22  ;;  %4632 = vmatprep.subr.bf16.mxu1 %v8427_v23  ;;  %v8485_v22 = vld [vmem:[#allocation11 + $0xc8] ss:$16 sps:$4 sm:$0xff]   ;;  %v8490_v23 = vld [vmem:[#allocation11 + $0xe4] ss:$16 sps:$4 sm:$0xff]  }
 0x36f   : > { %4547 = vmatpush1.bf16.msra.mxu0 %v8422_v25  ;;  %4633 = vmatpush1.bf16.msra.mxu1 %v8425_v26  ;;  %v8488_v25 = vld [vmem:[#allocation11 + $0xe0] ss:$16 sps:$4 sm:$0xff]   ;;  %v8491_v26 = vld [vmem:[#allocation11 + $0xe8] ss:$16 sps:$4 sm:$0xff]  }
 0x370   : > { %4548 = vmatprep.subr.bf16.mxu0 %v8430_v27  ;;  %4634 = vmatprep.subr.bf16.mxu1 %v8433_v28  ;;  %v8496_v27 = vld [vmem:[#allocation11 + $0x104] ss:$16 sps:$4 sm:$0xff]   ;;  %v8499_v28 = vld [vmem:[#allocation11 + $0x10c] ss:$16 sps:$4 sm:$0xff]  }
 0x373   : > { %4549 = vmatpush1.bf16.msra.mxu0 %v8428_v31  ;;  %4635 = vmatpush1.bf16.msra.mxu1 %v8431_v32  ;;  %v8502_v31 = vld [vmem:[#allocation11 + $0x124] ss:$16 sps:$4 sm:$0xff]   ;;  %v8505_v32 = vld [vmem:[#allocation11 + $0x12c] ss:$16 sps:$4 sm:$0xff]  }
 0x374   : > { %4550 = vmatprep.subr.bf16.mxu0 %v8436_v33  ;;  %4636 = vmatprep.subr.bf16.mxu1 %v8439_v34  ;;  %v8500_v33 = vld [vmem:[#allocation11 + $0x120] ss:$16 sps:$4 sm:$0xff]   ;;  %v8503_v34 = vld [vmem:[#allocation11 + $0x128] ss:$16 sps:$4 sm:$0xff]  }
 0x377   : > { %4551 = vmatpush1.bf16.msra.mxu0 %v8434_v62  ;;  %4637 = vmatpush1.bf16.msra.mxu1 %v8437_v37  ;;  %v8506_v62 = vld [vmem:[#allocation11 + $0x140] ss:$16 sps:$4 sm:$0xff]   ;;  %v8509_v37 = vld [vmem:[#allocation11 + $0x148] ss:$16 sps:$4 sm:$0xff]  }
 0x378   : > { %4552 = vmatprep.subr.bf16.mxu0 %v8442_v38  ;;  %4638 = vmatprep.subr.bf16.mxu1 %v8445_v39  ;;  %v8514_v38 = vld [vmem:[#allocation11 + $0x164] ss:$16 sps:$4 sm:$0xff]   ;;  %v8517_v39 = vld [vmem:[#allocation11 + $0x16c] ss:$16 sps:$4 sm:$0xff]  }
 0x37b   : > { %4553 = vmatpush1.bf16.msra.mxu0 %v8440_v42  ;;  %4639 = vmatpush1.bf16.msra.mxu1 %v8443_v44  ;;  %v8520_v42 = vld [vmem:[#allocation11 + $0x184] ss:$16 sps:$4 sm:$0xff]   ;;  %v8523_v44 = vld [vmem:[#allocation11 + $0x18c] ss:$16 sps:$4 sm:$0xff]  }
 0x37c   : > { %5291 = vmatprep.subr.bf16.mxu0 %v8448_v46  ;;  %5377 = vmatprep.subr.bf16.mxu1 %v8451_v47  ;;  %v8521_v46 = vld [vmem:[#allocation11 + $0x188] ss:$16 sps:$4 sm:$0xff]   ;;  %v8526_v47 = vld [vmem:[#allocation11 + $0x1a4] ss:$16 sps:$4 sm:$0xff]  }
 0x37e   : > { %4555 = vmatmul.mubr.bf16.vlgmr.msra.gmra.mrb[4].mxu0 %v3822_v8  ;;  %4641 = vmatmul.mubr.bf16.vlgmr.msra.gmra.mrb[4].mxu1 %v3822_v8  ;;  %v8530_v8 = vld [vmem:[#allocation11 + $0x1c0] ss:$16 sps:$4 sm:$0xff]  }
 0x37f   : > { %5292 = vmatpush1.bf16.msra.mxu0 %v8446_v51  ;;  %5323 = vmatprep.mubr.bf16.mxu0 %v3511_v53  ;;  %v8532_v51 = vld [vmem:[#allocation11 + $0x1c4] ss:$16 sps:$4 sm:$0xff]  }
 0x380   : > { %5378 = vmatpush1.bf16.msra.mxu1 %v8449_v52  ;;  %5409 = vmatprep.mubr.bf16.mxu1 %v3511_v53  ;;  %v8535_v52 = vld [vmem:[#allocation11 + $0x1cc] ss:$16 sps:$4 sm:$0xff]   ;;  %v8533_v53 = vld [vmem:[#allocation11 + $0x1c8] ss:$16 sps:$4 sm:$0xff]  }
 0x381   : > { %5293 = vmatprep.subr.bf16.mxu0 %v8454_v57  ;;  %5379 = vmatprep.subr.bf16.mxu1 %v8457_v58  ;;  %v8538_v57 = vld [vmem:[#allocation11 + $0x1e4] ss:$16 sps:$4 sm:$0xff]   ;;  %v8541_v58 = vld [vmem:[#allocation11 + $0x1ec] ss:$16 sps:$4 sm:$0xff]  }
 0x383   : > { %5294 = vmatpush1.bf16.msra.mxu0 %v8452_v59  ;;  %v8536_v59 = vld [vmem:[#allocation11 + $0x1e0] ss:$16 sps:$4 sm:$0xff]  }
 0x384   : > { %5380 = vmatpush1.bf16.msra.mxu1 %v8455_v60  ;;  %5295 = vmatprep.subr.bf16.mxu0 %v8460_v61  ;;  %v8539_v60 = vld [vmem:[#allocation11 + $0x1e8] ss:$16 sps:$4 sm:$0xff]   ;;  %v8544_v61 = vld [vmem:[#allocation11 + $0x204] ss:$16 sps:$4 sm:$0xff]  }
 0x385   : > { %5381 = vmatprep.subr.bf16.mxu1 %v8463_v63  ;;  %v3502_v63 = vld [vmem:[#allocation2] sm:$0xff] }
 0x387   : > { %5296 = vmatpush1.bf16.msra.mxu0 %v8458_v1  ;;  %v8547_v1 = vld [vmem:[#allocation11 + $0x20c] ss:$16 sps:$4 sm:$0xff]  }
 0x388   : > { %5382 = vmatpush1.bf16.msra.mxu1 %v8461_v4  ;;  %5297 = vmatprep.subr.bf16.mxu0 %v8466_v5  ;;  %v8542_v4 = vld [vmem:[#allocation11 + $0x200] ss:$16 sps:$4 sm:$0xff]  }
 0x389   : > { %5383 = vmatprep.subr.bf16.mxu1 %v8469_v6  ;;  %v3505_v5 = vld [vmem:[#allocation2 + $0x18] sm:$0xff]  ;;  %v3510_v6 = vpack.c.bf16 %v9510_v54, %v3502_v63  ;;  %v8623_v63 = vld [vmem:[#allocation11 + $0x3a8] ss:$16 sps:$4 sm:$0xff]  }
 0x38a   : > { %v8554_v54 = vld [vmem:[#allocation11 + $0x240] ss:$16 sps:$4 sm:$0xff]  }
 0x38b   : > { %5298 = vmatpush1.bf16.msra.mxu0 %v8464_v7  ;;  %v8545_v7 = vld [vmem:[#allocation11 + $0x208] ss:$16 sps:$4 sm:$0xff]  }
 0x38c   : > { %5384 = vmatpush1.bf16.msra.mxu1 %v8467_v9  ;;  %5299 = vmatprep.subr.bf16.mxu0 %v8472_v15  ;;  %v8550_v9 = vld [vmem:[#allocation11 + $0x224] ss:$16 sps:$4 sm:$0xff]   ;;  %v3513_v15 = vpack.c.bf16 %v9521_v56, %v3505_v5  ;;  %v8565_v56 = vld [vmem:[#allocation11 + $0x26c] ss:$16 sps:$4 sm:$0xff]   ;;  %v8626_v5 = vld [vmem:[#allocation11 + $0x3c0] ss:$16 sps:$4 sm:$0xff]  }
 0x38d   : > { %5385 = vmatprep.subr.bf16.mxu1 %v8475_v10  ;;  %v8553_v10 = vld [vmem:[#allocation11 + $0x22c] ss:$16 sps:$4 sm:$0xff]  }
 0x38f   : > { %5300 = vmatpush1.bf16.msra.mxu0 %v8470_v11  ;;  %v8548_v11 = vld [vmem:[#allocation11 + $0x220] ss:$16 sps:$4 sm:$0xff]  }
 0x390   : > { %5386 = vmatpush1.bf16.msra.mxu1 %v8473_v12  ;;  %5301 = vmatprep.subr.bf16.mxu0 %v8478_v13  ;;  %v8551_v12 = vld [vmem:[#allocation11 + $0x228] ss:$16 sps:$4 sm:$0xff]   ;;  %v8556_v13 = vld [vmem:[#allocation11 + $0x244] ss:$16 sps:$4 sm:$0xff]  }
 0x391   : > { %5387 = vmatprep.subr.bf16.mxu1 %v8481_v14  ;;  %v8559_v14 = vld [vmem:[#allocation11 + $0x24c] ss:$16 sps:$4 sm:$0xff]  }
 0x393   : > { %5302 = vmatpush1.bf16.msra.mxu0 %v8476_v16  ;;  %v8557_v16 = vld [vmem:[#allocation11 + $0x248] ss:$16 sps:$4 sm:$0xff]  }
 0x394   : > { %5388 = vmatpush1.bf16.msra.mxu1 %v8479_v18  ;;  %5303 = vmatprep.subr.bf16.mxu0 %v8484_v19  ;;  %v8562_v18 = vld [vmem:[#allocation11 + $0x264] ss:$16 sps:$4 sm:$0xff]   ;;  %v8560_v19 = vld [vmem:[#allocation11 + $0x260] ss:$16 sps:$4 sm:$0xff]  }
 0x395   : > { %5389 = vmatprep.subr.bf16.mxu1 %v8487_v20  ;;  %v8563_v20 = vld [vmem:[#allocation11 + $0x268] ss:$16 sps:$4 sm:$0xff]  }
 0x397   : > { %5304 = vmatpush1.bf16.msra.mxu0 %v8482_v21  ;;  %v8568_v21 = vld [vmem:[#allocation11 + $0x284] ss:$16 sps:$4 sm:$0xff]  }
 0x398   : > { %5390 = vmatpush1.bf16.msra.mxu1 %v8485_v22  ;;  %5305 = vmatprep.subr.bf16.mxu0 %v8490_v23  ;;  %v8571_v22 = vld [vmem:[#allocation11 + $0x28c] ss:$16 sps:$4 sm:$0xff]   ;;  %v8566_v23 = vld [vmem:[#allocation11 + $0x280] ss:$16 sps:$4 sm:$0xff]  }
 0x399   : > { %5391 = vmatprep.subr.bf16.mxu1 %v8493_v24  ;;  %v8569_v24 = vld [vmem:[#allocation11 + $0x288] ss:$16 sps:$4 sm:$0xff]  }
 0x39b   : > { %5306 = vmatpush1.bf16.msra.mxu0 %v8488_v25  ;;  %v8574_v25 = vld [vmem:[#allocation11 + $0x2a4] ss:$16 sps:$4 sm:$0xff]  }
 0x39c   : > { %5392 = vmatpush1.bf16.msra.mxu1 %v8491_v26  ;;  %5307 = vmatprep.subr.bf16.mxu0 %v8496_v27  ;;  %v8577_v26 = vld [vmem:[#allocation11 + $0x2ac] ss:$16 sps:$4 sm:$0xff]   ;;  %v8572_v27 = vld [vmem:[#allocation11 + $0x2a0] ss:$16 sps:$4 sm:$0xff]  }
 0x39d   : > { %5393 = vmatprep.subr.bf16.mxu1 %v8499_v28  ;;  %v8575_v28 = vld [vmem:[#allocation11 + $0x2a8] ss:$16 sps:$4 sm:$0xff]  }
 0x39f   : > { %5308 = vmatpush1.bf16.msra.mxu0 %v8494_v29  ;;  %v8580_v29 = vld [vmem:[#allocation11 + $0x2c4] ss:$16 sps:$4 sm:$0xff]  }
 0x3a0   : > { %5394 = vmatpush1.bf16.msra.mxu1 %v8497_v30  ;;  %5309 = vmatprep.subr.bf16.mxu0 %v8502_v31  ;;  %v8583_v30 = vld [vmem:[#allocation11 + $0x2cc] ss:$16 sps:$4 sm:$0xff]   ;;  %v8578_v31 = vld [vmem:[#allocation11 + $0x2c0] ss:$16 sps:$4 sm:$0xff]  }
 0x3a1   : > { %5395 = vmatprep.subr.bf16.mxu1 %v8505_v32  ;;  %v8581_v32 = vld [vmem:[#allocation11 + $0x2c8] ss:$16 sps:$4 sm:$0xff]  }
 0x3a3   : > { %5310 = vmatpush1.bf16.msra.mxu0 %v8500_v33  ;;  %v8586_v33 = vld [vmem:[#allocation11 + $0x2e4] ss:$16 sps:$4 sm:$0xff]  }
 0x3a4   : > { %5396 = vmatpush1.bf16.msra.mxu1 %v8503_v34  ;;  %5311 = vmatprep.subr.bf16.mxu0 %v8508_v35  ;;  %v8589_v34 = vld [vmem:[#allocation11 + $0x2ec] ss:$16 sps:$4 sm:$0xff]   ;;  %v8584_v35 = vld [vmem:[#allocation11 + $0x2e0] ss:$16 sps:$4 sm:$0xff]  }
 0x3a5   : > { %5397 = vmatprep.subr.bf16.mxu1 %v8511_v36  ;;  %v8587_v36 = vld [vmem:[#allocation11 + $0x2e8] ss:$16 sps:$4 sm:$0xff]  }
 0x3a7   : > { %5312 = vmatpush1.bf16.msra.mxu0 %v8506_v62  ;;  %v8592_v62 = vld [vmem:[#allocation11 + $0x304] ss:$16 sps:$4 sm:$0xff]  }
 0x3a8   : > { %5398 = vmatpush1.bf16.msra.mxu1 %v8509_v37  ;;  %5313 = vmatprep.subr.bf16.mxu0 %v8514_v38  ;;  %v8595_v37 = vld [vmem:[#allocation11 + $0x30c] ss:$16 sps:$4 sm:$0xff]   ;;  %v8590_v38 = vld [vmem:[#allocation11 + $0x300] ss:$16 sps:$4 sm:$0xff]  }
 0x3a9   : > { %5399 = vmatprep.subr.bf16.mxu1 %v8517_v39  ;;  %v8593_v39 = vld [vmem:[#allocation11 + $0x308] ss:$16 sps:$4 sm:$0xff]  }
 0x3ab   : > { %5314 = vmatpush1.bf16.msra.mxu0 %v8512_v40  ;;  %v8598_v40 = vld [vmem:[#allocation11 + $0x324] ss:$16 sps:$4 sm:$0xff]  }
 0x3ac   : > { %5400 = vmatpush1.bf16.msra.mxu1 %v8515_v41  ;;  %5315 = vmatprep.subr.bf16.mxu0 %v8520_v42  ;;  %v8601_v41 = vld [vmem:[#allocation11 + $0x32c] ss:$16 sps:$4 sm:$0xff]   ;;  %v8596_v42 = vld [vmem:[#allocation11 + $0x320] ss:$16 sps:$4 sm:$0xff]  }
 0x3ad   : > { %5401 = vmatprep.subr.bf16.mxu1 %v8523_v44  ;;  %v8599_v44 = vld [vmem:[#allocation11 + $0x328] ss:$16 sps:$4 sm:$0xff]  }
 0x3af   : > { %5316 = vmatpush1.bf16.msra.mxu0 %v8518_v45  ;;  %v8604_v45 = vld [vmem:[#allocation11 + $0x344] ss:$16 sps:$4 sm:$0xff]  }
 0x3b0   : > { %5402 = vmatpush1.bf16.msra.mxu1 %v8521_v46  ;;  %5317 = vmatprep.subr.bf16.mxu0 %v8526_v47  ;;  %v8607_v46 = vld [vmem:[#allocation11 + $0x34c] ss:$16 sps:$4 sm:$0xff]   ;;  %v8602_v47 = vld [vmem:[#allocation11 + $0x340] ss:$16 sps:$4 sm:$0xff]  }
 0x3b1   : > { %5403 = vmatprep.subr.bf16.mxu1 %v8529_v48  ;;  %v8605_v48 = vld [vmem:[#allocation11 + $0x348] ss:$16 sps:$4 sm:$0xff]  }
 0x3b3   : > { %5318 = vmatpush1.bf16.msra.mxu0 %v8524_v49  ;;  %v8610_v49 = vld [vmem:[#allocation11 + $0x364] ss:$16 sps:$4 sm:$0xff]  }
 0x3b4   : > { %5404 = vmatpush1.bf16.msra.mxu1 %v8527_v50  ;;  %5319 = vmatprep.subr.bf16.mxu0 %v8532_v51  ;;  %v8613_v50 = vld [vmem:[#allocation11 + $0x36c] ss:$16 sps:$4 sm:$0xff]   ;;  %v8608_v51 = vld [vmem:[#allocation11 + $0x360] ss:$16 sps:$4 sm:$0xff]  }
 0x3b5   : > { %5405 = vmatprep.subr.bf16.mxu1 %v8535_v52  ;;  %v8611_v52 = vld [vmem:[#allocation11 + $0x368] ss:$16 sps:$4 sm:$0xff]  }
 0x3b7   : > { %5320 = vmatpush1.bf16.msra.mxu0 %v8530_v8  ;;  %v8616_v8 = vld [vmem:[#allocation11 + $0x384] ss:$16 sps:$4 sm:$0xff]  }
 0x3b8   : > { %5406 = vmatpush1.bf16.msra.mxu1 %v8533_v53  ;;  %5321 = vmatprep.subr.bf16.mxu0 %v8538_v57  ;;  %v8619_v53 = vld [vmem:[#allocation11 + $0x38c] ss:$16 sps:$4 sm:$0xff]   ;;  %v8614_v57 = vld [vmem:[#allocation11 + $0x380] ss:$16 sps:$4 sm:$0xff]  }
 0x3b9   : > { %5407 = vmatprep.subr.bf16.mxu1 %v8541_v58  ;;  %v8617_v58 = vld [vmem:[#allocation11 + $0x388] ss:$16 sps:$4 sm:$0xff]  }
 0x3bb   : > { %5322 = vmatpush1.bf16.msra.mxu0 %v8536_v59  ;;  %v8622_v59 = vld [vmem:[#allocation11 + $0x3a4] ss:$16 sps:$4 sm:$0xff]  }
 0x3bc   : > { %5408 = vmatpush1.bf16.msra.mxu1 %v8539_v60  ;;  %5334 = vmatprep.subr.bf16.mxu0 %v8544_v61  ;;  %v8625_v60 = vld [vmem:[#allocation11 + $0x3ac] ss:$16 sps:$4 sm:$0xff]   ;;  %v8620_v61 = vld [vmem:[#allocation11 + $0x3a0] ss:$16 sps:$4 sm:$0xff]  }
 0x3bd   : > { %5420 = vmatprep.subr.bf16.mxu1 %v8547_v1  ;;  %v8628_v1 = vld [vmem:[#allocation11 + $0x3c4] ss:$16 sps:$4 sm:$0xff]  }
 0x3be   : > { %5324 = vmatmul.mubr.bf16.vlgmr.msra.gmra.mrb[4].mxu0 %v3510_v6 }
 0x3bf   : > { %5410 = vmatmul.mubr.bf16.vlgmr.msra.gmra.mrb[4].mxu1 %v3510_v6  ;;  %5335 = vmatpush1.bf16.msra.mxu0 %v8542_v4  ;;  %v8631_v4 = vld [vmem:[#allocation11 + $0x3cc] ss:$16 sps:$4 sm:$0xff]   ;;  %v8629_v6 = vld [vmem:[#allocation11 + $0x3c8] ss:$16 sps:$4 sm:$0xff]  }
 0x3c0   : > { %5366 = vmatprep.mubr.bf16.mxu0 %v3513_v15  ;;  %5421 = vmatpush1.bf16.msra.mxu1 %v8545_v7  ;;  %v8634_v7 = vld [vmem:[#allocation11 + $0x3e4] ss:$16 sps:$4 sm:$0xff]  }
 0x3c1   : > { %5452 = vmatprep.mubr.bf16.mxu1 %v3513_v15  ;;  %5336 = vmatprep.subr.bf16.mxu0 %v8550_v9  ;;  %v5468_v9 = vld [vmem:[#allocation2 + $0x48] sm:$0x3]  ;;  %v8637_v15 = vld [vmem:[#allocation11 + $0x3ec] ss:$16 sps:$4 sm:$0xff]  }
 0x3c2   : > { %5422 = vmatprep.subr.bf16.mxu1 %v8553_v10  ;;  %v5464_v10 = vld [vmem:[#allocation2 + $0x8] sm:$0xfc] }
 0x3c3   : > { %5337 = vmatpush1.bf16.msra.mxu0 %v8548_v11  ;;  %v8632_v11 = vld [vmem:[#allocation11 + $0x3e0] ss:$16 sps:$4 sm:$0xff]  }
 0x3c4   : > { %5423 = vmatpush1.bf16.msra.mxu1 %v8551_v12  ;;  %5338 = vmatprep.subr.bf16.mxu0 %v8556_v13  ;;  %v5476_v12 = vpack.c.bf16 %v5468_v9, %v5468_v9  ;;  %v8635_v13 = vld [vmem:[#allocation11 + $0x3e8] ss:$16 sps:$4 sm:$0xff]   ;;  %v8712_v9 = vld [vmem:[#allocation11 + $0x984] ss:$16 sps:$4 sm:$0xff]  }
 0x3c5   : > { %5424 = vmatprep.subr.bf16.mxu1 %v8559_v14  ;;  %v8640_v14 = vld [vmem:[#allocation11 + $0x804] ss:$16 sps:$4 sm:$0xff]  }
 0x3c7   : > { %5339 = vmatpush1.bf16.msra.mxu0 %v8554_v54  ;;  %v3504_v54 = vld [vmem:[#allocation2 + $0x10] sm:$0xff] }
 0x3c8   : > { %5425 = vmatpush1.bf16.msra.mxu1 %v8557_v16  ;;  %5340 = vmatprep.subr.bf16.mxu0 %v8562_v18  ;;  %v8643_v16 = vld [vmem:[#allocation11 + $0x80c] ss:$16 sps:$4 sm:$0xff]   ;;  %v5472_v18 = vpack.c.bf16 %v9518_v17, %v5464_v10  ;;  %v8647_v17 = vld [vmem:[#allocation11 + $0x828] ss:$16 sps:$4 sm:$0xff]   ;;  %v8710_v10 = vld [vmem:[#allocation11 + $0x980] ss:$16 sps:$4 sm:$0xff]  }
 0x3c9   : > { %5426 = vmatprep.subr.bf16.mxu1 %v8565_v56  ;;  %v8638_v56 = vld [vmem:[#allocation11 + $0x800] ss:$16 sps:$4 sm:$0xff]  }
 0x3cb   : > { %5341 = vmatpush1.bf16.msra.mxu0 %v8560_v19  ;;  %v5620_v19 = vrot.slane %v5476_v12, 1  ;;  %v8718_v12 = vld [vmem:[#allocation11 + $0x9a4] ss:$16 sps:$4 sm:$0xff]  }
 0x3cc   : > { %5427 = vmatpush1.bf16.msra.mxu1 %v8563_v20  ;;  %5342 = vmatprep.subr.bf16.mxu0 %v8568_v21  ;;  %v3512_v20 = vpack.c.bf16 %v9513_v55, %v3504_v54  ;;  %v8641_v21 = vld [vmem:[#allocation11 + $0x808] ss:$16 sps:$4 sm:$0xff]   ;;  %v8650_v55 = vld [vmem:[#allocation11 + $0x840] ss:$16 sps:$4 sm:$0xff]  }
 0x3cd   : > { %5428 = vmatprep.subr.bf16.mxu1 %v8571_v22  ;;  %v5619_v22 = vrot.slane %v5472_v18, 1  ;;  %v8719_v54 = vld [vmem:[#allocation11 + $0x9a8] ss:$16 sps:$4 sm:$0xff]   ;;  %v8727_v18 = vld [vmem:[#allocation11 + $0x9cc] ss:$16 sps:$4 sm:$0xff]  }
 0x3cf   : > { %5343 = vmatpush1.bf16.msra.mxu0 %v8566_v23  ;;  %v8646_v23 = vld [vmem:[#allocation11 + $0x824] ss:$16 sps:$4 sm:$0xff]  }
 0x3d0   : > { %5429 = vmatpush1.bf16.msra.mxu1 %v8569_v24  ;;  %5344 = vmatprep.subr.bf16.mxu0 %v8574_v25  ;;  %v8649_v24 = vld [vmem:[#allocation11 + $0x82c] ss:$16 sps:$4 sm:$0xff]   ;;  %v5621_v25 = vsel %vm2553_vm3, %v5619_v22, %v5620_v19  ;;  %v8722_v19 = vld [vmem:[#allocation11 + $0x9c0] ss:$16 sps:$4 sm:$0xff]   ;;  %v8730_v22 = vld [vmem:[#allocation11 + $0x9e4] ss:$16 sps:$4 sm:$0xff]  }
 0x3d1   : > { %5430 = vmatprep.subr.bf16.mxu1 %v8577_v26  ;;  %v8644_v26 = vld [vmem:[#allocation11 + $0x820] ss:$16 sps:$4 sm:$0xff]  }
 0x3d3   : > { %5345 = vmatpush1.bf16.msra.mxu0 %v8572_v27  ;;  %v8652_v27 = vld [vmem:[#allocation11 + $0x844] ss:$16 sps:$4 sm:$0xff]  }
 0x3d4   : > { %5431 = vmatpush1.bf16.msra.mxu1 %v8575_v28  ;;  %5346 = vmatprep.subr.bf16.mxu0 %v8580_v29  ;;  %v8655_v28 = vld [vmem:[#allocation11 + $0x84c] ss:$16 sps:$4 sm:$0xff]   ;;  %v8653_v29 = vld [vmem:[#allocation11 + $0x848] ss:$16 sps:$4 sm:$0xff]  }
 0x3d5   : > { %5432 = vmatprep.subr.bf16.mxu1 %v8583_v30  ;;  %v8658_v30 = vld [vmem:[#allocation11 + $0x864] ss:$16 sps:$4 sm:$0xff]  }
 0x3d7   : > { %5347 = vmatpush1.bf16.msra.mxu0 %v8578_v31  ;;  %v8661_v31 = vld [vmem:[#allocation11 + $0x86c] ss:$16 sps:$4 sm:$0xff]  }
 0x3d8   : > { %5433 = vmatpush1.bf16.msra.mxu1 %v8581_v32  ;;  %5348 = vmatprep.subr.bf16.mxu0 %v8586_v33  ;;  %v8656_v32 = vld [vmem:[#allocation11 + $0x860] ss:$16 sps:$4 sm:$0xff]   ;;  %v8659_v33 = vld [vmem:[#allocation11 + $0x868] ss:$16 sps:$4 sm:$0xff]  }
 0x3d9   : > { %5434 = vmatprep.subr.bf16.mxu1 %v8589_v34  ;;  %v8664_v34 = vld [vmem:[#allocation11 + $0x884] ss:$16 sps:$4 sm:$0xff]  }
 0x3db   : > { %5349 = vmatpush1.bf16.msra.mxu0 %v8584_v35  ;;  %v8667_v35 = vld [vmem:[#allocation11 + $0x88c] ss:$16 sps:$4 sm:$0xff]  }
 0x3dc   : > { %5435 = vmatpush1.bf16.msra.mxu1 %v8587_v36  ;;  %5350 = vmatprep.subr.bf16.mxu0 %v8592_v62  ;;  %v8662_v36 = vld [vmem:[#allocation11 + $0x880] ss:$16 sps:$4 sm:$0xff]   ;;  %v8665_v62 = vld [vmem:[#allocation11 + $0x888] ss:$16 sps:$4 sm:$0xff]  }
 0x3dd   : > { %5436 = vmatprep.subr.bf16.mxu1 %v8595_v37  ;;  %v8670_v37 = vld [vmem:[#allocation11 + $0x8a4] ss:$16 sps:$4 sm:$0xff]  }
 0x3df   : > { %5351 = vmatpush1.bf16.msra.mxu0 %v8590_v38  ;;  %v8673_v38 = vld [vmem:[#allocation11 + $0x8ac] ss:$16 sps:$4 sm:$0xff]  }
 0x3e0   : > { %5437 = vmatpush1.bf16.msra.mxu1 %v8593_v39  ;;  %5352 = vmatprep.subr.bf16.mxu0 %v8598_v40  ;;  %v8668_v39 = vld [vmem:[#allocation11 + $0x8a0] ss:$16 sps:$4 sm:$0xff]   ;;  %v8671_v40 = vld [vmem:[#allocation11 + $0x8a8] ss:$16 sps:$4 sm:$0xff]  }
 0x3e1   : > { %5438 = vmatprep.subr.bf16.mxu1 %v8601_v41  ;;  %v8676_v41 = vld [vmem:[#allocation11 + $0x8c4] ss:$16 sps:$4 sm:$0xff]  }
 0x3e3   : > { %5353 = vmatpush1.bf16.msra.mxu0 %v8596_v42  ;;  %v8679_v42 = vld [vmem:[#allocation11 + $0x8cc] ss:$16 sps:$4 sm:$0xff]  }
 0x3e4   : > { %5439 = vmatpush1.bf16.msra.mxu1 %v8599_v44  ;;  %5354 = vmatprep.subr.bf16.mxu0 %v8604_v45  ;;  %v8674_v44 = vld [vmem:[#allocation11 + $0x8c0] ss:$16 sps:$4 sm:$0xff]   ;;  %v8677_v45 = vld [vmem:[#allocation11 + $0x8c8] ss:$16 sps:$4 sm:$0xff]  }
 0x3e5   : > { %5440 = vmatprep.subr.bf16.mxu1 %v8607_v46  ;;  %v8682_v46 = vld [vmem:[#allocation11 + $0x8e4] ss:$16 sps:$4 sm:$0xff]  }
 0x3e7   : > { %5355 = vmatpush1.bf16.msra.mxu0 %v8602_v47  ;;  %v8685_v47 = vld [vmem:[#allocation11 + $0x8ec] ss:$16 sps:$4 sm:$0xff]  }
 0x3e8   : > { %5441 = vmatpush1.bf16.msra.mxu1 %v8605_v48  ;;  %5356 = vmatprep.subr.bf16.mxu0 %v8610_v49  ;;  %v8680_v48 = vld [vmem:[#allocation11 + $0x8e0] ss:$16 sps:$4 sm:$0xff]   ;;  %v8683_v49 = vld [vmem:[#allocation11 + $0x8e8] ss:$16 sps:$4 sm:$0xff]  }
 0x3e9   : > { %5442 = vmatprep.subr.bf16.mxu1 %v8613_v50  ;;  %v8688_v50 = vld [vmem:[#allocation11 + $0x904] ss:$16 sps:$4 sm:$0xff]  }
 0x3eb   : > { %5357 = vmatpush1.bf16.msra.mxu0 %v8608_v51  ;;  %v8691_v51 = vld [vmem:[#allocation11 + $0x90c] ss:$16 sps:$4 sm:$0xff]  }
 0x3ec   : > { %5443 = vmatpush1.bf16.msra.mxu1 %v8611_v52  ;;  %5358 = vmatprep.subr.bf16.mxu0 %v8616_v8  ;;  %v8686_v52 = vld [vmem:[#allocation11 + $0x900] ss:$16 sps:$4 sm:$0xff]   ;;  %v8689_v8 = vld [vmem:[#allocation11 + $0x908] ss:$16 sps:$4 sm:$0xff]  }
 0x3ed   : > { %5444 = vmatprep.subr.bf16.mxu1 %v8619_v53  ;;  %v8694_v53 = vld [vmem:[#allocation11 + $0x924] ss:$16 sps:$4 sm:$0xff]  }
 0x3ef   : > { %5359 = vmatpush1.bf16.msra.mxu0 %v8614_v57  ;;  %v8697_v57 = vld [vmem:[#allocation11 + $0x92c] ss:$16 sps:$4 sm:$0xff]  }
 0x3f0   : > { %5445 = vmatpush1.bf16.msra.mxu1 %v8617_v58  ;;  %5360 = vmatprep.subr.bf16.mxu0 %v8622_v59  ;;  %v8692_v58 = vld [vmem:[#allocation11 + $0x920] ss:$16 sps:$4 sm:$0xff]   ;;  %v8695_v59 = vld [vmem:[#allocation11 + $0x928] ss:$16 sps:$4 sm:$0xff]  }
 0x3f1   : > { %5446 = vmatprep.subr.bf16.mxu1 %v8625_v60  ;;  %v8700_v60 = vld [vmem:[#allocation11 + $0x944] ss:$16 sps:$4 sm:$0xff]  }
 0x3f3   : > { %5361 = vmatpush1.bf16.msra.mxu0 %v8620_v61  ;;  %v8703_v61 = vld [vmem:[#allocation11 + $0x94c] ss:$16 sps:$4 sm:$0xff]  }
 0x3f4   : > { %5447 = vmatpush1.bf16.msra.mxu1 %v8623_v63  ;;  %5362 = vmatprep.subr.bf16.mxu0 %v8628_v1  ;;  %v8698_v63 = vld [vmem:[#allocation11 + $0x940] ss:$16 sps:$4 sm:$0xff]   ;;  %v8701_v1 = vld [vmem:[#allocation11 + $0x948] ss:$16 sps:$4 sm:$0xff]  }
 0x3f5   : > { %5448 = vmatprep.subr.bf16.mxu1 %v8631_v4  ;;  %v8706_v4 = vld [vmem:[#allocation11 + $0x964] ss:$16 sps:$4 sm:$0xff]  }
 0x3f7   : > { %5363 = vmatpush1.bf16.msra.mxu0 %v8626_v5  ;;  %v8709_v5 = vld [vmem:[#allocation11 + $0x96c] ss:$16 sps:$4 sm:$0xff]  }
 0x3f8   : > { %5449 = vmatpush1.bf16.msra.mxu1 %v8629_v6  ;;  %5364 = vmatprep.subr.bf16.mxu0 %v8634_v7  ;;  %v8704_v6 = vld [vmem:[#allocation11 + $0x960] ss:$16 sps:$4 sm:$0xff]   ;;  %v8707_v7 = vld [vmem:[#allocation11 + $0x968] ss:$16 sps:$4 sm:$0xff]  }
 0x3f9   : > { %5450 = vmatprep.subr.bf16.mxu1 %v8637_v15  ;;  %v8715_v15 = vld [vmem:[#allocation11 + $0x98c] ss:$16 sps:$4 sm:$0xff]  }
 0x3fb   : > { %5365 = vmatpush1.bf16.msra.mxu0 %v8632_v11  ;;  %v8713_v11 = vld [vmem:[#allocation11 + $0x988] ss:$16 sps:$4 sm:$0xff]  }
 0x3fc   : > { %5451 = vmatpush1.bf16.msra.mxu1 %v8635_v13  ;;  %6272 = vmatprep.subr.bf16.mxu0 %v8640_v14  ;;  %v8721_v13 = vld [vmem:[#allocation11 + $0x9ac] ss:$16 sps:$4 sm:$0xff]   ;;  %v8716_v14 = vld [vmem:[#allocation11 + $0x9a0] ss:$16 sps:$4 sm:$0xff]  }
 0x3fd   : > { %6358 = vmatprep.subr.bf16.mxu1 %v8643_v16  ;;  %v8724_v16 = vld [vmem:[#allocation11 + $0x9c4] ss:$16 sps:$4 sm:$0xff]  }
 0x3fe   : > { %5367 = vmatmul.mubr.bf16.vlgmr.msra.gmra.mrb[4].mxu0 %v3512_v20 }
 0x3ff   : > { %5453 = vmatmul.mubr.bf16.vlgmr.msra.gmra.mrb[4].mxu1 %v3512_v20  ;;  %6273 = vmatpush1.bf16.msra.mxu0 %v8638_v56  ;;  %v5467_v56 = vld [vmem:[#allocation2 + $0x40] sm:$0x3]  ;;  %v5463_v20 = vld [vmem:[#allocation2] sm:$0xfc] }
 0x400   : > { %6304 = vmatprep.mubr.bf16.mxu0 %v5621_v25  ;;  %6359 = vmatpush1.bf16.msra.mxu1 %v8641_v21  ;;  %v8725_v21 = vld [vmem:[#allocation11 + $0x9c8] ss:$16 sps:$4 sm:$0xff]  }
 0x401   : > { %6390 = vmatprep.mubr.bf16.mxu1 %v5621_v25  ;;  %6274 = vmatprep.subr.bf16.mxu0 %v8646_v23  ;;  %v5470_v23 = vld [vmem:[#allocation2 + $0x58] sm:$0x3]  ;;  %v5475_v25 = vpack.c.bf16 %v5467_v56, %v5467_v56 }
 0x402   : > { %6360 = vmatprep.subr.bf16.mxu1 %v8649_v24  ;;  %v8733_v24 = vld [vmem:[#allocation11 + $0x9ec] ss:$16 sps:$4 sm:$0xff]   ;;  %v8788_v56 = vld [vmem:[#allocation11 + $0xb20] ss:$16 sps:$4 sm:$0xff]  }
 0x403   : > { %6275 = vmatpush1.bf16.msra.mxu0 %v8644_v26  ;;  %v5466_v26 = vld [vmem:[#allocation2 + $0x18] sm:$0xfc] }
 0x404   : > { %6361 = vmatpush1.bf16.msra.mxu1 %v8647_v17  ;;  %6276 = vmatprep.subr.bf16.mxu0 %v8652_v27  ;;  %v8728_v17 = vld [vmem:[#allocation11 + $0x9e0] ss:$16 sps:$4 sm:$0xff]   ;;  %v8830_v27 = vld [vmem:[#allocation2 + $0x20] sm:$0xff] }
 0x405   : > { %6362 = vmatprep.subr.bf16.mxu1 %v8655_v28  ;;  %v5471_v28 = vpack.c.bf16 %v8830_v27, %v5463_v20  ;;  %v8796_v20 = vld [vmem:[#allocation11 + $0xb44] ss:$16 sps:$4 sm:$0xff]  }
 0x406   : > { %v8808_v27 = vld [vmem:[#allocation11 + $0xb84] ss:$16 sps:$4 sm:$0xff]  }
 0x407   : > { %6277 = vmatpush1.bf16.msra.mxu0 %v8650_v55  ;;  %v5478_v55 = vpack.c.bf16 %v5470_v23, %v5470_v23  ;;  %v8797_v23 = vld [vmem:[#allocation11 + $0xb48] ss:$16 sps:$4 sm:$0xff]  }
 0x408   : > { %6363 = vmatpush1.bf16.msra.mxu1 %v8653_v29  ;;  %6278 = vmatprep.subr.bf16.mxu0 %v8658_v30  ;;  %v8731_v29 = vld [vmem:[#allocation11 + $0x9e8] ss:$16 sps:$4 sm:$0xff]   ;;  %v8736_v30 = vld [vmem:[#allocation11 + $0xa04] ss:$16 sps:$4 sm:$0xff]  }
 0x409   : > { %6364 = vmatprep.subr.bf16.mxu1 %v8661_v31  ;;  %v5617_v31 = vrot.slane %v5475_v25, 1  ;;  %v8805_v25 = vld [vmem:[#allocation11 + $0xb6c] ss:$16 sps:$4 sm:$0xff]  }
 0x40b   : > { %6279 = vmatpush1.bf16.msra.mxu0 %v8656_v32  ;;  %v8739_v32 = vld [vmem:[#allocation11 + $0xa0c] ss:$16 sps:$4 sm:$0xff]  }
 0x40c   : > { %6365 = vmatpush1.bf16.msra.mxu1 %v8659_v33  ;;  %6280 = vmatprep.subr.bf16.mxu0 %v8664_v34  ;;  %v8831_v33 = vld [vmem:[#allocation2 + $0x38] sm:$0xff] }
 0x40d   : > { %6366 = vmatprep.subr.bf16.mxu1 %v8667_v35  ;;  %v5474_v34 = vpack.c.bf16 %v8831_v33, %v5466_v26  ;;  %v5616_v35 = vrot.slane %v5471_v28, 1  ;;  %v8800_v26 = vld [vmem:[#allocation11 + $0xb60] ss:$16 sps:$4 sm:$0xff]   ;;  %v8811_v28 = vld [vmem:[#allocation11 + $0xb8c] ss:$16 sps:$4 sm:$0xff]  }
 0x40e   : > { %v8815_v33 = vld [vmem:[#allocation11 + $0xba8] ss:$16 sps:$4 sm:$0xff]  }
 0x40f   : > { %6281 = vmatpush1.bf16.msra.mxu0 %v8662_v36  ;;  %v8734_v36 = vld [vmem:[#allocation11 + $0xa00] ss:$16 sps:$4 sm:$0xff]  }
 0x410   : > { %6367 = vmatpush1.bf16.msra.mxu1 %v8665_v62  ;;  %6282 = vmatprep.subr.bf16.mxu0 %v8670_v37  ;;  %v5626_v62 = vrot.slane %v5478_v55, 1  ;;  %v8737_v37 = vld [vmem:[#allocation11 + $0xa08] ss:$16 sps:$4 sm:$0xff]   ;;  %v8806_v55 = vld [vmem:[#allocation11 + $0xb80] ss:$16 sps:$4 sm:$0xff]  }
 0x411   : > { %6368 = vmatprep.subr.bf16.mxu1 %v8673_v38  ;;  %v5618_v38 = vsel %vm2553_vm3, %v5616_v35, %v5617_v31  ;;  %v8817_v31 = vld [vmem:[#allocation11 + $0xbac] ss:$16 sps:$4 sm:$0xff]  }
 0x412   : > { %v8823_v35 = vld [vmem:[#allocation11 + $0xbcc] ss:$16 sps:$4 sm:$0xff]  }
 0x413   : > { %6283 = vmatpush1.bf16.msra.mxu0 %v8668_v39  ;;  %v5625_v39 = vrot.slane %v5474_v34, 1  ;;  %v8820_v34 = vld [vmem:[#allocation11 + $0xbc4] ss:$16 sps:$4 sm:$0xff]  }
 0x414   : > { %6369 = vmatpush1.bf16.msra.mxu1 %v8671_v40  ;;  %6284 = vmatprep.subr.bf16.mxu0 %v8676_v41  ;;  %v8742_v40 = vld [vmem:[#allocation11 + $0xa24] ss:$16 sps:$4 sm:$0xff]   ;;  %v8745_v41 = vld [vmem:[#allocation11 + $0xa2c] ss:$16 sps:$4 sm:$0xff]  }
 0x415   : > { %6370 = vmatprep.subr.bf16.mxu1 %v8679_v42  ;;  %v5627_v42 = vsel %vm2553_vm3, %v5625_v39, %v5626_v62  ;;  %v8818_v62 = vld [vmem:[#allocation11 + $0xbc0] ss:$16 sps:$4 sm:$0xff]   ;;  %v5465_v39 = vld [vmem:[#allocation2 + $0x10] sm:$0xfc] }
 0x417   : > { %6285 = vmatpush1.bf16.msra.mxu0 %v8674_v44  ;;  %v8740_v44 = vld [vmem:[#allocation11 + $0xa20] ss:$16 sps:$4 sm:$0xff]  }
 0x418   : > { %6371 = vmatpush1.bf16.msra.mxu1 %v8677_v45  ;;  %6286 = vmatprep.subr.bf16.mxu0 %v8682_v46  ;;  %v8743_v45 = vld [vmem:[#allocation11 + $0xa28] ss:$16 sps:$4 sm:$0xff]   ;;  %v8748_v46 = vld [vmem:[#allocation11 + $0xa44] ss:$16 sps:$4 sm:$0xff]  }
 0x419   : > { %6372 = vmatprep.subr.bf16.mxu1 %v8685_v47  ;;  %v8751_v47 = vld [vmem:[#allocation11 + $0xa4c] ss:$16 sps:$4 sm:$0xff]  }
 0x41b   : > { %6287 = vmatpush1.bf16.msra.mxu0 %v8680_v48  ;;  %v8746_v48 = vld [vmem:[#allocation11 + $0xa40] ss:$16 sps:$4 sm:$0xff]  }
 0x41c   : > { %6373 = vmatpush1.bf16.msra.mxu1 %v8683_v49  ;;  %6288 = vmatprep.subr.bf16.mxu0 %v8688_v50  ;;  %v8749_v49 = vld [vmem:[#allocation11 + $0xa48] ss:$16 sps:$4 sm:$0xff]   ;;  %v8754_v50 = vld [vmem:[#allocation11 + $0xa64] ss:$16 sps:$4 sm:$0xff]  }
 0x41d   : > { %6374 = vmatprep.subr.bf16.mxu1 %v8691_v51  ;;  %v8757_v51 = vld [vmem:[#allocation11 + $0xa6c] ss:$16 sps:$4 sm:$0xff]  }
 0x41f   : > { %6289 = vmatpush1.bf16.msra.mxu0 %v8686_v52  ;;  %v8752_v52 = vld [vmem:[#allocation11 + $0xa60] ss:$16 sps:$4 sm:$0xff]  }
 0x420   : > { %6375 = vmatpush1.bf16.msra.mxu1 %v8689_v8  ;;  %6290 = vmatprep.subr.bf16.mxu0 %v8694_v53  ;;  %v8755_v8 = vld [vmem:[#allocation11 + $0xa68] ss:$16 sps:$4 sm:$0xff]   ;;  %v8760_v53 = vld [vmem:[#allocation11 + $0xa84] ss:$16 sps:$4 sm:$0xff]  }
 0x421   : > { %6376 = vmatprep.subr.bf16.mxu1 %v8697_v57  ;;  %v8763_v57 = vld [vmem:[#allocation11 + $0xa8c] ss:$16 sps:$4 sm:$0xff]  }
 0x423   : > { %6291 = vmatpush1.bf16.msra.mxu0 %v8692_v58  ;;  %v8758_v58 = vld [vmem:[#allocation11 + $0xa80] ss:$16 sps:$4 sm:$0xff]  }
 0x424   : > { %6377 = vmatpush1.bf16.msra.mxu1 %v8695_v59  ;;  %6292 = vmatprep.subr.bf16.mxu0 %v8700_v60  ;;  %v8761_v59 = vld [vmem:[#allocation11 + $0xa88] ss:$16 sps:$4 sm:$0xff]   ;;  %v8766_v60 = vld [vmem:[#allocation11 + $0xaa4] ss:$16 sps:$4 sm:$0xff]  }
 0x425   : > { %6378 = vmatprep.subr.bf16.mxu1 %v8703_v61  ;;  %v8769_v61 = vld [vmem:[#allocation11 + $0xaac] ss:$16 sps:$4 sm:$0xff]  }
 0x427   : > { %6293 = vmatpush1.bf16.msra.mxu0 %v8698_v63  ;;  %v8764_v63 = vld [vmem:[#allocation11 + $0xaa0] ss:$16 sps:$4 sm:$0xff]  }
 0x428   : > { %6379 = vmatpush1.bf16.msra.mxu1 %v8701_v1  ;;  %6294 = vmatprep.subr.bf16.mxu0 %v8706_v4  ;;  %v8767_v1 = vld [vmem:[#allocation11 + $0xaa8] ss:$16 sps:$4 sm:$0xff]   ;;  %v8772_v4 = vld [vmem:[#allocation11 + $0xac4] ss:$16 sps:$4 sm:$0xff]  }
 0x429   : > { %6380 = vmatprep.subr.bf16.mxu1 %v8709_v5  ;;  %v8775_v5 = vld [vmem:[#allocation11 + $0xacc] ss:$16 sps:$4 sm:$0xff]  }
 0x42b   : > { %6295 = vmatpush1.bf16.msra.mxu0 %v8704_v6  ;;  %v8770_v6 = vld [vmem:[#allocation11 + $0xac0] ss:$16 sps:$4 sm:$0xff]  }
 0x42c   : > { %6381 = vmatpush1.bf16.msra.mxu1 %v8707_v7  ;;  %6296 = vmatprep.subr.bf16.mxu0 %v8712_v9  ;;  %v8773_v7 = vld [vmem:[#allocation11 + $0xac8] ss:$16 sps:$4 sm:$0xff]   ;;  %v8778_v9 = vld [vmem:[#allocation11 + $0xae4] ss:$16 sps:$4 sm:$0xff]  }
 0x42d   : > { %6382 = vmatprep.subr.bf16.mxu1 %v8715_v15  ;;  %v8781_v15 = vld [vmem:[#allocation11 + $0xaec] ss:$16 sps:$4 sm:$0xff]  }
 0x42f   : > { %6297 = vmatpush1.bf16.msra.mxu0 %v8710_v10  ;;  %v8776_v10 = vld [vmem:[#allocation11 + $0xae0] ss:$16 sps:$4 sm:$0xff]  }
 0x430   : > { %6383 = vmatpush1.bf16.msra.mxu1 %v8713_v11  ;;  %6298 = vmatprep.subr.bf16.mxu0 %v8718_v12  ;;  %v8779_v11 = vld [vmem:[#allocation11 + $0xae8] ss:$16 sps:$4 sm:$0xff]   ;;  %v8784_v12 = vld [vmem:[#allocation11 + $0xb04] ss:$16 sps:$4 sm:$0xff]  }
 0x431   : > { %6384 = vmatprep.subr.bf16.mxu1 %v8721_v13  ;;  %v8787_v13 = vld [vmem:[#allocation11 + $0xb0c] ss:$16 sps:$4 sm:$0xff]  }
 0x433   : > { %6299 = vmatpush1.bf16.msra.mxu0 %v8716_v14  ;;  %v8782_v14 = vld [vmem:[#allocation11 + $0xb00] ss:$16 sps:$4 sm:$0xff]  }
 0x434   : > { %6385 = vmatpush1.bf16.msra.mxu1 %v8719_v54  ;;  %6300 = vmatprep.subr.bf16.mxu0 %v8724_v16  ;;  %v8785_v54 = vld [vmem:[#allocation11 + $0xb08] ss:$16 sps:$4 sm:$0xff]   ;;  %v8790_v16 = vld [vmem:[#allocation11 + $0xb24] ss:$16 sps:$4 sm:$0xff]  }
 0x435   : > { %6386 = vmatprep.subr.bf16.mxu1 %v8727_v18  ;;  %v8793_v18 = vld [vmem:[#allocation11 + $0xb2c] ss:$16 sps:$4 sm:$0xff]  }
 0x437   : > { %6301 = vmatpush1.bf16.msra.mxu0 %v8722_v19  ;;  %v8791_v19 = vld [vmem:[#allocation11 + $0xb28] ss:$16 sps:$4 sm:$0xff]  }
 0x438   : > { %6387 = vmatpush1.bf16.msra.mxu1 %v8725_v21  ;;  %6302 = vmatprep.subr.bf16.mxu0 %v8730_v22  ;;  %v8799_v21 = vld [vmem:[#allocation11 + $0xb4c] ss:$16 sps:$4 sm:$0xff]   ;;  %v8794_v22 = vld [vmem:[#allocation11 + $0xb40] ss:$16 sps:$4 sm:$0xff]  }
 0x439   : > { %6388 = vmatprep.subr.bf16.mxu1 %v8733_v24  ;;  %v8802_v24 = vld [vmem:[#allocation11 + $0xb64] ss:$16 sps:$4 sm:$0xff]  }
 0x43b   : > { %6303 = vmatpush1.bf16.msra.mxu0 %v8728_v17  ;;  %v8803_v17 = vld [vmem:[#allocation11 + $0xb68] ss:$16 sps:$4 sm:$0xff]  }
 0x43c   : > { %6389 = vmatpush1.bf16.msra.mxu1 %v8731_v29  ;;  %6315 = vmatprep.subr.bf16.mxu0 %v8736_v30  ;;  %v8809_v29 = vld [vmem:[#allocation11 + $0xb88] ss:$16 sps:$4 sm:$0xff]   ;;  %v8814_v30 = vld [vmem:[#allocation11 + $0xba4] ss:$16 sps:$4 sm:$0xff]  }
 0x43d   : > { %6401 = vmatprep.subr.bf16.mxu1 %v8739_v32  ;;  %v8812_v32 = vld [vmem:[#allocation11 + $0xba0] ss:$16 sps:$4 sm:$0xff]  }
 0x43e   : > { %6305 = vmatmul.mubr.bf16.vlgmr.msra.gmra.mrb[4].mxu0 %v5618_v38 }
 0x43f   : > { %6391 = vmatmul.mubr.bf16.vlgmr.msra.gmra.mrb[4].mxu1 %v5618_v38  ;;  %6316 = vmatpush1.bf16.msra.mxu0 %v8734_v36  ;;  %v5469_v36 = vld [vmem:[#allocation2 + $0x50] sm:$0x3]  ;;  %v8826_v38 = vld [vmem:[#allocation11 + $0xbe4] ss:$16 sps:$4 sm:$0xff]  }
 0x440   : > { %6347 = vmatprep.mubr.bf16.mxu0 %v5627_v42  ;;  %6402 = vmatpush1.bf16.msra.mxu1 %v8737_v37  ;;  %v8821_v37 = vld [vmem:[#allocation11 + $0xbc8] ss:$16 sps:$4 sm:$0xff]  }
 0x441   : > { %6433 = vmatprep.mubr.bf16.mxu1 %v5627_v42  ;;  %6317 = vmatprep.subr.bf16.mxu0 %v8742_v40  ;;  %v8829_v40 = vld [vmem:[#allocation11 + $0xbec] ss:$16 sps:$4 sm:$0xff]   ;;  %v8824_v42 = vld [vmem:[#allocation11 + $0xbe0] ss:$16 sps:$4 sm:$0xff]  }
 0x442   : > { %6403 = vmatprep.subr.bf16.mxu1 %v8745_v41  ;;  %v5477_v41 = vpack.c.bf16 %v5469_v36, %v5469_v36 }
 0x443   : > { %6318 = vmatpush1.bf16.msra.mxu0 %v8740_v44  ;;  %v8832_v44 = vld [vmem:[#allocation2 + $0x30] sm:$0xff] }
 0x444   : > { %6404 = vmatpush1.bf16.msra.mxu1 %v8743_v45  ;;  %6319 = vmatprep.subr.bf16.mxu0 %v8748_v46  ;;  %v5473_v45 = vpack.c.bf16 %v8832_v44, %v5465_v39  ;;  %v8827_v46 = vld [vmem:[#allocation11 + $0xbe8] ss:$16 sps:$4 sm:$0xff]  }
 0x445   : > { %6405 = vmatprep.subr.bf16.mxu1 %v8751_v47  ;;  %v5623_v47 = vrot.slane %v5477_v41, 1 }
 0x447   : > { %6320 = vmatpush1.bf16.msra.mxu0 %v8746_v48  ;;  %v5622_v48 = vrot.slane %v5473_v45, 1 }
 0x448   : > { %6406 = vmatpush1.bf16.msra.mxu1 %v8749_v49  ;;  %6321 = vmatprep.subr.bf16.mxu0 %v8754_v50  ;;  %v6452_v50 = vld [vmem:[#allocation12] sm:$0xf] }
 0x449   : > { %6407 = vmatprep.subr.bf16.mxu1 %v8757_v51  ;;  %v5624_v49 = vsel %vm2553_vm3, %v5622_v48, %v5623_v47  ;;  %v6482_v51 = vld [vmem:[#allocation14] sm:$0xf] }
 0x44b   : > { %6322 = vmatpush1.bf16.msra.mxu0 %v8752_v52  ;;  %v6457_v52 = vrot.slane %v6452_v50, %v9493_v0 }
 0x44c   : > { %6408 = vmatpush1.bf16.msra.mxu1 %v8755_v8  ;;  %6323 = vmatprep.subr.bf16.mxu0 %v8760_v53  ;;  %v6465_v8 = vrot.slane %v6452_v50, %v9495_v43  ;;  %v6461_v53 = vrot.slane %v6452_v50, %v9497_v2 }
 0x44d   : > { %6409 = vmatprep.subr.bf16.mxu1 %v8763_v57  ;;  %v6487_v57 = vrot.slane %v6482_v51, %v9493_v0 }
 0x44f   : > { %6324 = vmatpush1.bf16.msra.mxu0 %v8758_v58  ;;  %v6469_v58 = vrot.slane %v6452_v50, %v9499_v3 }
 0x450   : > { %6410 = vmatpush1.bf16.msra.mxu1 %v8761_v59  ;;  %6325 = vmatprep.subr.bf16.mxu0 %v8766_v60  ;;  %v6495_v60 = vrot.slane %v6482_v51, %v9495_v43 }
 0x451   : > { %6411 = vmatprep.subr.bf16.mxu1 %v8769_v61  ;;  %v6491_v61 = vrot.slane %v6482_v51, %v9497_v2 }
 0x453   : > { %6326 = vmatpush1.bf16.msra.mxu0 %v8764_v63 }
 0x454   : > { %6412 = vmatpush1.bf16.msra.mxu1 %v8767_v1  ;;  %6327 = vmatprep.subr.bf16.mxu0 %v8772_v4 }
 0x455   : > { %6413 = vmatprep.subr.bf16.mxu1 %v8775_v5  ;;  %v6499_v5 = vrot.slane %v6482_v51, %v9499_v3  ;;  %v6516_v3 = vld [vmem:[%s9433_s28 + $0x20] sm:$0xff] }
 0x457   : > { %6328 = vmatpush1.bf16.msra.mxu0 %v8770_v6  ;;  %v6512_v6 = vld [vmem:[%s9433_s28] sm:$0xff] }
 0x458   : > { %6414 = vmatpush1.bf16.msra.mxu1 %v8773_v7  ;;  %6329 = vmatprep.subr.bf16.mxu0 %v8778_v9 }
 0x459   : > { %6415 = vmatprep.subr.bf16.mxu1 %v8781_v15 }
 0x45b   : > { %6330 = vmatpush1.bf16.msra.mxu0 %v8776_v10 }
 0x45c   : > { %6416 = vmatpush1.bf16.msra.mxu1 %v8779_v11  ;;  %6331 = vmatprep.subr.bf16.mxu0 %v8784_v12  ;;  %v6514_v11 = vld [vmem:[%s9433_s28 + $0x10] sm:$0xff]  ;;  %v6513_v12 = vld [vmem:[%s9433_s28 + $0x8] sm:$0xff] }
 0x45d   : > { %6417 = vmatprep.subr.bf16.mxu1 %v8787_v13 }
 0x45f   : > { %6332 = vmatpush1.bf16.msra.mxu0 %v8782_v14 }
 0x460   : > { %6418 = vmatpush1.bf16.msra.mxu1 %v8785_v54  ;;  %6333 = vmatprep.subr.bf16.mxu0 %v8790_v16 }
 0x461   : > { %6419 = vmatprep.subr.bf16.mxu1 %v8793_v18  ;;  %v6515_v18 = vld [vmem:[%s9433_s28 + $0x18] sm:$0xff] }
 0x463   : > { %6334 = vmatpush1.bf16.msra.mxu0 %v8788_v56 }
 0x464   : > { %6420 = vmatpush1.bf16.msra.mxu1 %v8791_v19  ;;  %6335 = vmatprep.subr.bf16.mxu0 %v8796_v20 }
 0x465   : > { %6421 = vmatprep.subr.bf16.mxu1 %v8799_v21 }
 0x467   : > { %6336 = vmatpush1.bf16.msra.mxu0 %v8794_v22 }
 0x468   : > { %6422 = vmatpush1.bf16.msra.mxu1 %v8797_v23  ;;  %6337 = vmatprep.subr.bf16.mxu0 %v8802_v24  ;;  %v6518_v24 = vld [vmem:[%s9433_s28 + $0x30] sm:$0xff] }
 0x469   : > { %6423 = vmatprep.subr.bf16.mxu1 %v8805_v25  ;;  %v6517_v25 = vld [vmem:[%s9433_s28 + $0x28] sm:$0xff] }
 0x46b   : > { %6338 = vmatpush1.bf16.msra.mxu0 %v8800_v26 }
 0x46c   : > { %6424 = vmatpush1.bf16.msra.mxu1 %v8803_v17  ;;  %6339 = vmatprep.subr.bf16.mxu0 %v8808_v27 }
 0x46d   : > { %6425 = vmatprep.subr.bf16.mxu1 %v8811_v28 }
 0x46f   : > { %6340 = vmatpush1.bf16.msra.mxu0 %v8806_v55 }
 0x470   : > { %6426 = vmatpush1.bf16.msra.mxu1 %v8809_v29  ;;  %6341 = vmatprep.subr.bf16.mxu0 %v8814_v30  ;;  %v6519_v29 = vld [vmem:[%s9433_s28 + $0x38] sm:$0xff] }
 0x471   : > { %6427 = vmatprep.subr.bf16.mxu1 %v8817_v31 }
 0x473   : > { %6342 = vmatpush1.bf16.msra.mxu0 %v8812_v32 }
 0x474   : > { %6428 = vmatpush1.bf16.msra.mxu1 %v8815_v33  ;;  %6343 = vmatprep.subr.bf16.mxu0 %v8820_v34 }
 0x475   : > { %6429 = vmatprep.subr.bf16.mxu1 %v8823_v35 }
 0x477   : > { %6344 = vmatpush1.bf16.msra.mxu0 %v8818_v62 }
 0x478   : > { %6430 = vmatpush1.bf16.msra.mxu1 %v8821_v37  ;;  %6345 = vmatprep.subr.bf16.mxu0 %v8826_v38 }
 0x479   : > { %6431 = vmatprep.subr.bf16.mxu1 %v8829_v40 }
 0x47b   : > { %6346 = vmatpush1.bf16.msra.mxu0 %v8824_v42 }
 0x47c   : > { %6432 = vmatpush1.bf16.msra.mxu1 %v8827_v46 }
 0x47e   : > { %6348 = vmatmul.mubr.bf16.vlgmr.msra.gmra.mrb[4].mxu0 %v5624_v49 }
 0x47f   : > { %6434 = vmatmul.mubr.bf16.vlgmr.msra.gmra.mrb[4].mxu1 %v5624_v49 }
 0x551   : > { %v6349_v59 = vpop.f32.mrb[4].mxu0 }
 0x552   : > { %v6474_v63 = vmul.f32 %v6457_v52, %v6349_v59  ;;  %v6435_v1 = vpop.f32.mrb[4].mxu1  ;;  %v6351_v4 = vpop.f32.mrb[5].mxu0 }
 0x553   : > { %v6476_v7 = vmul.f32 %v6465_v8, %v6435_v1  ;;  %v6475_v9 = vmul.f32 %v6461_v53, %v6351_v4  ;;  %v6437_v15 = vpop.f32.mrb[5].mxu1  ;;  %v6353_v0 = vpop.f32.mrb[6].mxu0 }
 0x554   : > { %v6504_v10 = vadd.f32 %v6487_v57, %v6474_v63  ;;  %v6477_v43 = vmul.f32 %v6469_v58, %v6437_v15  ;;  %v6478_v13 = vmul.f32 %v6457_v52, %v6353_v0  ;;  %v6439_v2 = vpop.f32.mrb[6].mxu1  ;;  %v6355_v14 = vpop.f32.mrb[7].mxu0 }
 0x555   : > { %v6506_v54 = vadd.f32 %v6495_v60, %v6476_v7  ;;  %v6505_v16 = vadd.f32 %v6491_v61, %v6475_v9  ;;  %v6480_v56 = vmul.f32 %v6465_v8, %v6439_v2  ;;  %v6479_v19 = vmul.f32 %v6461_v53, %v6355_v14  ;;  %v6441_v20 = vpop.f32.mrb[7].mxu1 }
 0x556   : > { %v6520_v21 = vadd.f32 %v6512_v6, %v6504_v10  ;;  %v6507_v22 = vadd.f32 %v6499_v5, %v6477_v43  ;;  %v6508_v23 = vadd.f32 %v6487_v57, %v6478_v13  ;;  %v6481_v26 = vmul.f32 %v6469_v58, %v6441_v20 }
 0x557   : > { %v6522_v17 = vadd.f32 %v6514_v11, %v6506_v54  ;;  %v6521_v27 = vadd.f32 %v6513_v12, %v6505_v16  ;;  %v6510_v28 = vadd.f32 %v6495_v60, %v6480_v56  ;;  %v6509_v55 = vadd.f32 %v6491_v61, %v6479_v19 }
 0x558   : > { %v6528_v30 = vmax.f32 %v6520_v21, 0.0  ;;  %v6523_v31 = vadd.f32 %v6515_v18, %v6507_v22  ;;  %v6524_v32 = vadd.f32 %v6516_v3, %v6508_v23  ;;  %v6511_v33 = vadd.f32 %v6499_v5, %v6481_v26 }
 0x559   : > { %v6530_v34 = vmax.f32 %v6522_v17, 0.0  ;;  %v6529_v35 = vmax.f32 %v6521_v27, 0.0  ;;  %v6526_v36 = vadd.f32 %v6518_v24, %v6510_v28  ;;  %v6525_v62 = vadd.f32 %v6517_v25, %v6509_v55 }
 0x55a   : > { %6536 = vst [vmem:[%s375_s22] sm:$0xff] %v6528_v30  ;;  %v6531_v37 = vmax.f32 %v6523_v31, 0.0  ;;  %v6532_v38 = vmax.f32 %v6524_v32, 0.0  ;;  %v6527_v39 = vadd.f32 %v6519_v29, %v6511_v33 }
 0x55b   : > { %6538 = vst [vmem:[%s375_s22 + $0x10] sm:$0xff] %v6530_v34  ;;  %6537 = vst [vmem:[%s375_s22 + $0x8] sm:$0xff] %v6529_v35  ;;  %v6534_v40 = vmax.f32 %v6526_v36, 0.0  ;;  %v6533_v41 = vmax.f32 %v6525_v62, 0.0 }
 0x55c   : > { %6539 = vst [vmem:[%s375_s22 + $0x18] sm:$0xff] %v6531_v37  ;;  %6540 = vst [vmem:[%s375_s22 + $0x20] sm:$0xff] %v6532_v38  ;;  %v6535_v42 = vmax.f32 %v6527_v39, 0.0 }
 0x55d   : > { %6542 = vst [vmem:[%s375_s22 + $0x30] sm:$0xff] %v6534_v40  ;;  %6541 = vst [vmem:[%s375_s22 + $0x28] sm:$0xff] %v6533_v41 }
 0x55e   : > { %6543 = vst [vmem:[%s375_s22 + $0x38] sm:$0xff] %v6535_v42 }
 0x55f   : > { %9044 = shalt.err (!%p9041_p8)
}
 0x560   : > { %s9045_s10 = scalar_lea.hbm %s9563_s30, 1024  ;;  %s9049_s8 = scalar_lea.hbm %s9616_s7, 2048 }
 0x561   : > { %p9046_p4 = scmp.ne.s32.totalorder %s9563_s30, %s9045_s10  ;;  %p9050_p0 = scmp.lt.u32.totalorder %s9563_s30, %s9616_s7 }
 0x562   : > { %p9051_p5 = scmp.lt.u32.totalorder %s9049_s8, %s9045_s10  ;;  %p9053_p6 = scmp.lt.u32.totalorder %s9045_s10, %s9563_s30 }
 0x563   : > { %p9047_p10 = pnand %p9046_p4, %p9636_p9 }
 0x564   : > { %p9052_p7 = por %p9051_p5, %p9050_p0 }
 0x565   : > { %p9048_p11 = pneg %p9047_p10 }
 0x566   : > { %p9054_p12 = por %p9053_p6, %p9052_p7 }
 0x568   : > { %p9055_p13 = pnand %p9054_p12, %p9048_p11 }
 0x56a   : > { %9058 = shalt.err (!%p9055_p13)
}
 0x56b   : > { %s9124_s19 = smov 512   ;;  %s9125_s17 = smov 32  }
 0x56c   : > { %7590 = dma.vmem_to_hbm [thread:$0]  (%p9636_p9), %s9565_s23, 1024, %s9563_s30, %s6545_s21, %s9124_s19, %s9124_s19, %s9125_s17  }
 0x56d PF: > { %s6573_s18 = sand.u32 1, %s9097_s24   ;;  %p9637_p1 = scmp.ne.s32.totalorder %s9627_s16, 0 }
 0x56e   : > { %p9638_p3 = scmp.ge.s32.totalorder %s9109_s27, 2  ;;  %s6574_s9 = scalar_lea.sflag [#allocation5], %s6573_s18 }
 0x570   : > { %p7616_p2 = pnand %p9638_p3, %p9637_p1 }
 0x572   : > { %9092 = dma.done.wait (!%p7616_p2), %s6574_s9, 1024  }
 0x573   : > { %9094 = vsyncadd (!%p7616_p2), %s6574_s9, 4294966272  ;;  %p23_p8 = scmp.ge.s32.totalorder %s9348_s11, 4   ;;  %s9639_s24 = smov %s9101_s25 }
 0x574   : > { %s9640_s25 = smov %s9105_s26  ;;  %s9641_s26 = smov %s9359_s13 }
 0x575   : > { %s9642_s27 = smov %s9348_s11  ;;  %25 = sbr.rel (!%p23_p8) target bundleno = 8 (0x8), region = 122 }
 0x57c   :  { %6579 = vsyncpa [#allocation4], 1 }
 0x57d   :  { %6581 = vsyncpa [#allocation4 + $0x1], 1 }
 0x57e   :  { %6582 = vsyncpa [#allocation7], 1 }
 0x57f   :  { %6583 = vsyncpa [#allocation10], 1 }
 0x580   :  { %6584 = vsyncpa [#allocation13], 1 }
 0x581   :  { %6585 = vsyncpa [#allocation5], 1 }
 0x582   :  { %6587 = vsyncpa [#allocation5 + $0x1], 1 }

</bundles_post_ra>
